<compile_context>
chip_gen: v5e
topology: v5e:2x2
jax: 0.10.0
libtpu: 0.0.40
codegen_flags: <defaults>
</compile_context>

<pallas_src>
import functools

import jax
import jax.numpy as jnp
from jax.experimental import pallas as pl
from jax.experimental.pallas import tpu as pltpu


def _round_up(v, m):
    return (v + m - 1) // m * m


def _make_kernel(kh, kw, wp, m_rows):
    # Static tap table: (weight index, row offset into the flattened padded image).
    taps = [(di * kw + dj, di * wp + dj) for di in range(kh) for dj in range(kw)]

    def kernel(x_ref, w_ref, b_ref, o_ref, acc_ref):
        # x_ref : (Lpad, Cin_pad)                  flattened zero-padded NHWC image
        # w_ref : (2, KH*KW, Cin_pad, Cout_pad)    [0] = W_pos, [1] = W_neg
        # b_ref : (1, Cout_pad)
        # o_ref : (M_rows, Cout_pad)               M_rows = OH * Wp (cols trimmed later)
        acc_ref[...] = jnp.zeros_like(acc_ref)
        for t, off in taps:
            s = x_ref[pl.ds(off, m_rows), :]
            # clamp(x, max=0) -> positive weights;  clamp(x, min=0) -> negative weights
            acc_ref[...] += (
                jnp.dot(jnp.minimum(s, 0.0), w_ref[0, t],
                        preferred_element_type=jnp.float32)
                + jnp.dot(jnp.maximum(s, 0.0), w_ref[1, t],
                          preferred_element_type=jnp.float32))
        # Bias folded into the single lane-dense finalize store.
        o_ref[...] = (acc_ref[...] + b_ref[...]).astype(o_ref.dtype)

    return kernel


@functools.partial(jax.jit, static_argnames=("padding",))
def negnet_conv(x, weight, bias, *, padding=1):
    """x: (N, Cin, H, W) f32; weight: (Cout, Cin, KH, KW); bias: (Cout,)."""
    n, cin, h, w = x.shape
    cout, _, kh, kw = weight.shape

    hp, wp = h + 2 * padding, w + 2 * padding
    oh, ow = hp - kh + 1, wp - kw + 1

    cin_pad = _round_up(cin, 8)          # sublane-aligned contraction dim
    cout_pad = _round_up(cout, 128)      # lane-dense output
    m_rows = oh * wp                     # rows computed per image (incl. garbage cols)
    l_pad = (hp + 1) * wp                # +1 zero row keeps every tap slice in bounds

    # ---- layout glue (no patch-matrix materialization) ----------------------
    x_nhwc = jnp.transpose(x, (0, 2, 3, 1))
    x_padded = jnp.pad(
        x_nhwc,
        ((0, 0), (padding, padding + 1), (padding, padding), (0, cin_pad - cin)))
    x_flat = x_padded.reshape(n, l_pad, cin_pad)

    # weight (Cout, Cin, KH, KW) -> (KH*KW, Cin_pad, Cout_pad), pos/neg stacked once.
    w_t = jnp.transpose(weight, (2, 3, 1, 0)).reshape(kh * kw, cin, cout)
    w_t = jnp.pad(w_t, ((0, 0), (0, cin_pad - cin), (0, cout_pad - cout)))
    w_cat = jnp.stack([jnp.maximum(w_t, 0.0), jnp.minimum(w_t, 0.0)], axis=0)

    # clamp(b, min=0) + clamp(b, max=0) == b exactly.
    b_pad = jnp.pad(bias, (0, cout_pad - cout)).reshape(1, cout_pad)

    kernel = _make_kernel(kh, kw, wp, m_rows)

    flops = 2 * 2 * n * m_rows * cin_pad * cout_pad * kh * kw
    bytes_accessed = 4 * (x_flat.size + w_cat.size + b_pad.size
                          + n * m_rows * cout_pad)

    out = pl.pallas_call(
        kernel,
        out_shape=jax.ShapeDtypeStruct((n, m_rows, cout_pad), x.dtype),
        grid_spec=pltpu.PrefetchScalarGridSpec(
            num_scalar_prefetch=0,
            grid=(n,),
            in_specs=[
                pl.BlockSpec((None, l_pad, cin_pad), lambda i: (i, 0, 0)),
                pl.BlockSpec((2, kh * kw, cin_pad, cout_pad),
                             lambda i: (0, 0, 0, 0)),
                pl.BlockSpec((1, cout_pad), lambda i: (0, 0)),
            ],
            out_specs=pl.BlockSpec((None, m_rows, cout_pad), lambda i: (i, 0, 0)),
            scratch_shapes=[pltpu.VMEM((m_rows, cout_pad), jnp.float32)],
        ),
        compiler_params=pltpu.CompilerParams(
            dimension_semantics=("parallel",)),
        cost_estimate=pl.CostEstimate(
            flops=flops, transcendentals=0, bytes_accessed=bytes_accessed),
    )(x_flat, w_cat, b_pad)

    # (N, OH*Wp, Cout_pad) -> trim garbage columns / channel padding -> NCHW
    out = out.reshape(n, oh, wp, cout_pad)[:, :, :ow, :cout]
    return jnp.transpose(out, (0, 3, 1, 2))


def _reference(x, weight, bias, padding=1):
    # pure-JAX reference of the PyTorch forward
    w_pos = jnp.maximum(weight, 0.0)
    w_neg = jnp.minimum(weight, 0.0)
    b_pos = jnp.maximum(bias, 0.0)
    b_neg = jnp.minimum(bias, 0.0)
    dn = jax.lax.conv_dimension_numbers(x.shape, weight.shape,
                                        ("NCHW", "OIHW", "NCHW"))
    conv = functools.partial(jax.lax.conv_general_dilated,
                             window_strides=(1, 1),
                             padding=[(padding, padding), (padding, padding)],
                             dimension_numbers=dn)
    vp = conv(jnp.minimum(x, 0.0), w_pos) + b_pos.reshape(1, -1, 1, 1)
    vn = conv(jnp.maximum(x, 0.0), w_neg) + b_neg.reshape(1, -1, 1, 1)
    return vp + vn


if __name__ == "__main__":
    key = jax.random.PRNGKey(0)
    kx, kwt, kb = jax.random.split(key, 3)

    N, Cin, H, W = 2, 4, 16, 16
    Cout, KH, KW = 8, 3, 3

    x = jax.random.normal(kx, (N, Cin, H, W), dtype=jnp.float32)
    weight = jax.random.normal(kwt, (Cout, Cin, KH, KW), dtype=jnp.float32) * 0.1
    bias = jax.random.normal(kb, (Cout,), dtype=jnp.float32) * 0.1

    out = negnet_conv(x, weight, bias, padding=1)
    out = jax.block_until_ready(out)

    ref = _reference(x, weight, bias, padding=1)
    assert out.shape == (N, Cout, H, W), out.shape
    err = float(jnp.abs(out - ref).max())
    assert jnp.allclose(out, ref, atol=1e-4, rtol=1e-4), err

    print("KERNEL_OK")
</pallas_src>

<mosaic_0001>
module attributes {stable_mosaic.version = 11 : i64} {
  func.func @kernel(%arg0: i32, %arg1: memref<1x342x8xf32, #tpu.memory_space<vmem>>, %arg2: memref<2x9x8x128xf32, #tpu.memory_space<vmem>>, %arg3: memref<1x128xf32, #tpu.memory_space<vmem>>, %arg4: memref<1x288x128xf32, #tpu.memory_space<vmem>>, %arg5: memref<288x128xf32, #tpu.memory_space<vmem>>) attributes {dimension_semantics = [#tpu.dimension_semantics<parallel>], iteration_bounds = array<i64: 2>, scalar_prefetch = 0 : i64, scratch_operands = 1 : i64, tpu.core_type = #tpu.core_type<tc>, window_params = [{transform_indices = @transform_0, window_bounds = array<i64: 1, 342, 8>}, {pipeline_mode = #tpu.pipeline_mode<synchronous>, transform_indices = @transform_1, window_bounds = array<i64: 2, 9, 8, 128>}, {pipeline_mode = #tpu.pipeline_mode<synchronous>, transform_indices = @transform_2, window_bounds = array<i64: 1, 128>}, {transform_indices = @transform_3, window_bounds = array<i64: 1, 288, 128>}]} {
    %cst = arith.constant 0.000000e+00 : f32
    %0 = vector.broadcast %cst : f32 to vector<288x128xf32>
    %c0 = arith.constant 0 : index
    %c0_0 = arith.constant 0 : index
    %1 = vector.load %arg5[%c0, %c0_0] : memref<288x128xf32, #tpu.memory_space<vmem>>, vector<288x128xf32>
    tpu.vector_store %arg5[%c0, %c0_0], %0 {strides = array<i32>} : memref<288x128xf32, #tpu.memory_space<vmem>>, vector<288x128xf32>,
    %c0_1 = arith.constant 0 : index
    %c0_2 = arith.constant 0 : index
    %c0_3 = arith.constant 0 : index
    %2 = vector.load %arg1[%c0_1, %c0_2, %c0_3] : memref<1x342x8xf32, #tpu.memory_space<vmem>>, vector<1x288x8xf32>
    %3 = vector.shape_cast %2 : vector<1x288x8xf32> to vector<288x8xf32>
    %c0_4 = arith.constant 0 : index
    %c0_5 = arith.constant 0 : index
    %4 = vector.load %arg5[%c0_4, %c0_5] : memref<288x128xf32, #tpu.memory_space<vmem>>, vector<288x128xf32>
    %cst_6 = arith.constant 0.000000e+00 : f32
    %5 = vector.broadcast %cst_6 : f32 to vector<288x8xf32>
    %6 = arith.minimumf %3, %5 : vector<288x8xf32>
    %c0_7 = arith.constant 0 : index
    %c0_8 = arith.constant 0 : index
    %c0_9 = arith.constant 0 : index
    %c0_10 = arith.constant 0 : index
    %7 = vector.load %arg2[%c0_7, %c0_8, %c0_9, %c0_10] : memref<2x9x8x128xf32, #tpu.memory_space<vmem>>, vector<1x1x8x128xf32>
    %8 = vector.shape_cast %7 : vector<1x1x8x128xf32> to vector<8x128xf32>
    %cst_11 = arith.constant dense<0.000000e+00> : vector<288x128xf32>
    %9 = tpu.matmul %6, %8, %cst_11 {dimension_numbers = #tpu.dot_dimension_numbers<[1], [0], [0], [1], [0, 0, 1, 1], [], []>} : vector<288x8xf32>, vector<8x128xf32>, vector<288x128xf32> -> vector<288x128xf32>
    %cst_12 = arith.constant 0.000000e+00 : f32
    %10 = vector.broadcast %cst_12 : f32 to vector<288x8xf32>
    %11 = arith.maximumf %3, %10 : vector<288x8xf32>
    %c1 = arith.constant 1 : index
    %c0_13 = arith.constant 0 : index
    %c0_14 = arith.constant 0 : index
    %c0_15 = arith.constant 0 : index
    %12 = vector.load %arg2[%c1, %c0_13, %c0_14, %c0_15] : memref<2x9x8x128xf32, #tpu.memory_space<vmem>>, vector<1x1x8x128xf32>
    %13 = vector.shape_cast %12 : vector<1x1x8x128xf32> to vector<8x128xf32>
    %cst_16 = arith.constant dense<0.000000e+00> : vector<288x128xf32>
    %14 = tpu.matmul %11, %13, %cst_16 {dimension_numbers = #tpu.dot_dimension_numbers<[1], [0], [0], [1], [0, 0, 1, 1], [], []>} : vector<288x8xf32>, vector<8x128xf32>, vector<288x128xf32> -> vector<288x128xf32>
    %15 = arith.addf %9, %14 : vector<288x128xf32>
    %16 = arith.addf %4, %15 : vector<288x128xf32>
    %c0_17 = arith.constant 0 : index
    %c0_18 = arith.constant 0 : index
    %17 = vector.load %arg5[%c0_17, %c0_18] : memref<288x128xf32, #tpu.memory_space<vmem>>, vector<288x128xf32>
    tpu.vector_store %arg5[%c0_17, %c0_18], %16 {strides = array<i32>} : memref<288x128xf32, #tpu.memory_space<vmem>>, vector<288x128xf32>,
    %c0_19 = arith.constant 0 : index
    %c1_20 = arith.constant 1 : index
    %c0_21 = arith.constant 0 : index
    %18 = vector.load %arg1[%c0_19, %c1_20, %c0_21] : memref<1x342x8xf32, #tpu.memory_space<vmem>>, vector<1x288x8xf32>
    %19 = vector.shape_cast %18 : vector<1x288x8xf32> to vector<288x8xf32>
    %c0_22 = arith.constant 0 : index
    %c0_23 = arith.constant 0 : index
    %20 = vector.load %arg5[%c0_22, %c0_23] : memref<288x128xf32, #tpu.memory_space<vmem>>, vector<288x128xf32>
    %cst_24 = arith.constant 0.000000e+00 : f32
    %21 = vector.broadcast %cst_24 : f32 to vector<288x8xf32>
    %22 = arith.minimumf %19, %21 : vector<288x8xf32>
    %c0_25 = arith.constant 0 : index
    %c1_26 = arith.constant 1 : index
    %c0_27 = arith.constant 0 : index
    %c0_28 = arith.constant 0 : index
    %23 = vector.load %arg2[%c0_25, %c1_26, %c0_27, %c0_28] : memref<2x9x8x128xf32, #tpu.memory_space<vmem>>, vector<1x1x8x128xf32>
    %24 = vector.shape_cast %23 : vector<1x1x8x128xf32> to vector<8x128xf32>
    %cst_29 = arith.constant dense<0.000000e+00> : vector<288x128xf32>
    %25 = tpu.matmul %22, %24, %cst_29 {dimension_numbers = #tpu.dot_dimension_numbers<[1], [0], [0], [1], [0, 0, 1, 1], [], []>} : vector<288x8xf32>, vector<8x128xf32>, vector<288x128xf32> -> vector<288x128xf32>
    %cst_30 = arith.constant 0.000000e+00 : f32
    %26 = vector.broadcast %cst_30 : f32 to vector<288x8xf32>
    %27 = arith.maximumf %19, %26 : vector<288x8xf32>
    %c1_31 = arith.constant 1 : index
    %c1_32 = arith.constant 1 : index
    %c0_33 = arith.constant 0 : index
    %c0_34 = arith.constant 0 : index
    %28 = vector.load %arg2[%c1_31, %c1_32, %c0_33, %c0_34] : memref<2x9x8x128xf32, #tpu.memory_space<vmem>>, vector<1x1x8x128xf32>
    %29 = vector.shape_cast %28 : vector<1x1x8x128xf32> to vector<8x128xf32>
    %cst_35 = arith.constant dense<0.000000e+00> : vector<288x128xf32>
    %30 = tpu.matmul %27, %29, %cst_35 {dimension_numbers = #tpu.dot_dimension_numbers<[1], [0], [0], [1], [0, 0, 1, 1], [], []>} : vector<288x8xf32>, vector<8x128xf32>, vector<288x128xf32> -> vector<288x128xf32>
    %31 = arith.addf %25, %30 : vector<288x128xf32>
    %32 = arith.addf %20, %31 : vector<288x128xf32>
    %c0_36 = arith.constant 0 : index
    %c0_37 = arith.constant 0 : index
    %33 = vector.load %arg5[%c0_36, %c0_37] : memref<288x128xf32, #tpu.memory_space<vmem>>, vector<288x128xf32>
    tpu.vector_store %arg5[%c0_36, %c0_37], %32 {strides = array<i32>} : memref<288x128xf32, #tpu.memory_space<vmem>>, vector<288x128xf32>,
    %c0_38 = arith.constant 0 : index
    %c2 = arith.constant 2 : index
    %c0_39 = arith.constant 0 : index
    %34 = vector.load %arg1[%c0_38, %c2, %c0_39] : memref<1x342x8xf32, #tpu.memory_space<vmem>>, vector<1x288x8xf32>
    %35 = vector.shape_cast %34 : vector<1x288x8xf32> to vector<288x8xf32>
    %c0_40 = arith.constant 0 : index
    %c0_41 = arith.constant 0 : index
    %36 = vector.load %arg5[%c0_40, %c0_41] : memref<288x128xf32, #tpu.memory_space<vmem>>, vector<288x128xf32>
    %cst_42 = arith.constant 0.000000e+00 : f32
    %37 = vector.broadcast %cst_42 : f32 to vector<288x8xf32>
    %38 = arith.minimumf %35, %37 : vector<288x8xf32>
    %c0_43 = arith.constant 0 : index
    %c2_44 = arith.constant 2 : index
    %c0_45 = arith.constant 0 : index
    %c0_46 = arith.constant 0 : index
    %39 = vector.load %arg2[%c0_43, %c2_44, %c0_45, %c0_46] : memref<2x9x8x128xf32, #tpu.memory_space<vmem>>, vector<1x1x8x128xf32>
    %40 = vector.shape_cast %39 : vector<1x1x8x128xf32> to vector<8x128xf32>
    %cst_47 = arith.constant dense<0.000000e+00> : vector<288x128xf32>
    %41 = tpu.matmul %38, %40, %cst_47 {dimension_numbers = #tpu.dot_dimension_numbers<[1], [0], [0], [1], [0, 0, 1, 1], [], []>} : vector<288x8xf32>, vector<8x128xf32>, vector<288x128xf32> -> vector<288x128xf32>
    %cst_48 = arith.constant 0.000000e+00 : f32
    %42 = vector.broadcast %cst_48 : f32 to vector<288x8xf32>
    %43 = arith.maximumf %35, %42 : vector<288x8xf32>
    %c1_49 = arith.constant 1 : index
    %c2_50 = arith.constant 2 : index
    %c0_51 = arith.constant 0 : index
    %c0_52 = arith.constant 0 : index
    %44 = vector.load %arg2[%c1_49, %c2_50, %c0_51, %c0_52] : memref<2x9x8x128xf32, #tpu.memory_space<vmem>>, vector<1x1x8x128xf32>
    %45 = vector.shape_cast %44 : vector<1x1x8x128xf32> to vector<8x128xf32>
    %cst_53 = arith.constant dense<0.000000e+00> : vector<288x128xf32>
    %46 = tpu.matmul %43, %45, %cst_53 {dimension_numbers = #tpu.dot_dimension_numbers<[1], [0], [0], [1], [0, 0, 1, 1], [], []>} : vector<288x8xf32>, vector<8x128xf32>, vector<288x128xf32> -> vector<288x128xf32>
    %47 = arith.addf %41, %46 : vector<288x128xf32>
    %48 = arith.addf %36, %47 : vector<288x128xf32>
    %c0_54 = arith.constant 0 : index
    %c0_55 = arith.constant 0 : index
    %49 = vector.load %arg5[%c0_54, %c0_55] : memref<288x128xf32, #tpu.memory_space<vmem>>, vector<288x128xf32>
    tpu.vector_store %arg5[%c0_54, %c0_55], %48 {strides = array<i32>} : memref<288x128xf32, #tpu.memory_space<vmem>>, vector<288x128xf32>,
    %c0_56 = arith.constant 0 : index
    %c18 = arith.constant 18 : index
    %c0_57 = arith.constant 0 : index
    %50 = vector.load %arg1[%c0_56, %c18, %c0_57] : memref<1x342x8xf32, #tpu.memory_space<vmem>>, vector<1x288x8xf32>
    %51 = vector.shape_cast %50 : vector<1x288x8xf32> to vector<288x8xf32>
    %c0_58 = arith.constant 0 : index
    %c0_59 = arith.constant 0 : index
    %52 = vector.load %arg5[%c0_58, %c0_59] : memref<288x128xf32, #tpu.memory_space<vmem>>, vector<288x128xf32>
    %cst_60 = arith.constant 0.000000e+00 : f32
    %53 = vector.broadcast %cst_60 : f32 to vector<288x8xf32>
    %54 = arith.minimumf %51, %53 : vector<288x8xf32>
    %c0_61 = arith.constant 0 : index
    %c3 = arith.constant 3 : index
    %c0_62 = arith.constant 0 : index
    %c0_63 = arith.constant 0 : index
    %55 = vector.load %arg2[%c0_61, %c3, %c0_62, %c0_63] : memref<2x9x8x128xf32, #tpu.memory_space<vmem>>, vector<1x1x8x128xf32>
    %56 = vector.shape_cast %55 : vector<1x1x8x128xf32> to vector<8x128xf32>
    %cst_64 = arith.constant dense<0.000000e+00> : vector<288x128xf32>
    %57 = tpu.matmul %54, %56, %cst_64 {dimension_numbers = #tpu.dot_dimension_numbers<[1], [0], [0], [1], [0, 0, 1, 1], [], []>} : vector<288x8xf32>, vector<8x128xf32>, vector<288x128xf32> -> vector<288x128xf32>
    %cst_65 = arith.constant 0.000000e+00 : f32
    %58 = vector.broadcast %cst_65 : f32 to vector<288x8xf32>
    %59 = arith.maximumf %51, %58 : vector<288x8xf32>
    %c1_66 = arith.constant 1 : index
    %c3_67 = arith.constant 3 : index
    %c0_68 = arith.constant 0 : index
    %c0_69 = arith.constant 0 : index
    %60 = vector.load %arg2[%c1_66, %c3_67, %c0_68, %c0_69] : memref<2x9x8x128xf32, #tpu.memory_space<vmem>>, vector<1x1x8x128xf32>
    %61 = vector.shape_cast %60 : vector<1x1x8x128xf32> to vector<8x128xf32>
    %cst_70 = arith.constant dense<0.000000e+00> : vector<288x128xf32>
    %62 = tpu.matmul %59, %61, %cst_70 {dimension_numbers = #tpu.dot_dimension_numbers<[1], [0], [0], [1], [0, 0, 1, 1], [], []>} : vector<288x8xf32>, vector<8x128xf32>, vector<288x128xf32> -> vector<288x128xf32>
    %63 = arith.addf %57, %62 : vector<288x128xf32>
    %64 = arith.addf %52, %63 : vector<288x128xf32>
    %c0_71 = arith.constant 0 : index
    %c0_72 = arith.constant 0 : index
    %65 = vector.load %arg5[%c0_71, %c0_72] : memref<288x128xf32, #tpu.memory_space<vmem>>, vector<288x128xf32>
    tpu.vector_store %arg5[%c0_71, %c0_72], %64 {strides = array<i32>} : memref<288x128xf32, #tpu.memory_space<vmem>>, vector<288x128xf32>,
    %c0_73 = arith.constant 0 : index
    %c19 = arith.constant 19 : index
    %c0_74 = arith.constant 0 : index
    %66 = vector.load %arg1[%c0_73, %c19, %c0_74] : memref<1x342x8xf32, #tpu.memory_space<vmem>>, vector<1x288x8xf32>
    %67 = vector.shape_cast %66 : vector<1x288x8xf32> to vector<288x8xf32>
    %c0_75 = arith.constant 0 : index
    %c0_76 = arith.constant 0 : index
    %68 = vector.load %arg5[%c0_75, %c0_76] : memref<288x128xf32, #tpu.memory_space<vmem>>, vector<288x128xf32>
    %cst_77 = arith.constant 0.000000e+00 : f32
    %69 = vector.broadcast %cst_77 : f32 to vector<288x8xf32>
    %70 = arith.minimumf %67, %69 : vector<288x8xf32>
    %c0_78 = arith.constant 0 : index
    %c4 = arith.constant 4 : index
    %c0_79 = arith.constant 0 : index
    %c0_80 = arith.constant 0 : index
    %71 = vector.load %arg2[%c0_78, %c4, %c0_79, %c0_80] : memref<2x9x8x128xf32, #tpu.memory_space<vmem>>, vector<1x1x8x128xf32>
    %72 = vector.shape_cast %71 : vector<1x1x8x128xf32> to vector<8x128xf32>
    %cst_81 = arith.constant dense<0.000000e+00> : vector<288x128xf32>
    %73 = tpu.matmul %70, %72, %cst_81 {dimension_numbers = #tpu.dot_dimension_numbers<[1], [0], [0], [1], [0, 0, 1, 1], [], []>} : vector<288x8xf32>, vector<8x128xf32>, vector<288x128xf32> -> vector<288x128xf32>
    %cst_82 = arith.constant 0.000000e+00 : f32
    %74 = vector.broadcast %cst_82 : f32 to vector<288x8xf32>
    %75 = arith.maximumf %67, %74 : vector<288x8xf32>
    %c1_83 = arith.constant 1 : index
    %c4_84 = arith.constant 4 : index
    %c0_85 = arith.constant 0 : index
    %c0_86 = arith.constant 0 : index
    %76 = vector.load %arg2[%c1_83, %c4_84, %c0_85, %c0_86] : memref<2x9x8x128xf32, #tpu.memory_space<vmem>>, vector<1x1x8x128xf32>
    %77 = vector.shape_cast %76 : vector<1x1x8x128xf32> to vector<8x128xf32>
    %cst_87 = arith.constant dense<0.000000e+00> : vector<288x128xf32>
    %78 = tpu.matmul %75, %77, %cst_87 {dimension_numbers = #tpu.dot_dimension_numbers<[1], [0], [0], [1], [0, 0, 1, 1], [], []>} : vector<288x8xf32>, vector<8x128xf32>, vector<288x128xf32> -> vector<288x128xf32>
    %79 = arith.addf %73, %78 : vector<288x128xf32>
    %80 = arith.addf %68, %79 : vector<288x128xf32>
    %c0_88 = arith.constant 0 : index
    %c0_89 = arith.constant 0 : index
    %81 = vector.load %arg5[%c0_88, %c0_89] : memref<288x128xf32, #tpu.memory_space<vmem>>, vector<288x128xf32>
    tpu.vector_store %arg5[%c0_88, %c0_89], %80 {strides = array<i32>} : memref<288x128xf32, #tpu.memory_space<vmem>>, vector<288x128xf32>,
    %c0_90 = arith.constant 0 : index
    %c20 = arith.constant 20 : index
    %c0_91 = arith.constant 0 : index
    %82 = vector.load %arg1[%c0_90, %c20, %c0_91] : memref<1x342x8xf32, #tpu.memory_space<vmem>>, vector<1x288x8xf32>
    %83 = vector.shape_cast %82 : vector<1x288x8xf32> to vector<288x8xf32>
    %c0_92 = arith.constant 0 : index
    %c0_93 = arith.constant 0 : index
    %84 = vector.load %arg5[%c0_92, %c0_93] : memref<288x128xf32, #tpu.memory_space<vmem>>, vector<288x128xf32>
    %cst_94 = arith.constant 0.000000e+00 : f32
    %85 = vector.broadcast %cst_94 : f32 to vector<288x8xf32>
    %86 = arith.minimumf %83, %85 : vector<288x8xf32>
    %c0_95 = arith.constant 0 : index
    %c5 = arith.constant 5 : index
    %c0_96 = arith.constant 0 : index
    %c0_97 = arith.constant 0 : index
    %87 = vector.load %arg2[%c0_95, %c5, %c0_96, %c0_97] : memref<2x9x8x128xf32, #tpu.memory_space<vmem>>, vector<1x1x8x128xf32>
    %88 = vector.shape_cast %87 : vector<1x1x8x128xf32> to vector<8x128xf32>
    %cst_98 = arith.constant dense<0.000000e+00> : vector<288x128xf32>
    %89 = tpu.matmul %86, %88, %cst_98 {dimension_numbers = #tpu.dot_dimension_numbers<[1], [0], [0], [1], [0, 0, 1, 1], [], []>} : vector<288x8xf32>, vector<8x128xf32>, vector<288x128xf32> -> vector<288x128xf32>
    %cst_99 = arith.constant 0.000000e+00 : f32
    %90 = vector.broadcast %cst_99 : f32 to vector<288x8xf32>
    %91 = arith.maximumf %83, %90 : vector<288x8xf32>
    %c1_100 = arith.constant 1 : index
    %c5_101 = arith.constant 5 : index
    %c0_102 = arith.constant 0 : index
    %c0_103 = arith.constant 0 : index
    %92 = vector.load %arg2[%c1_100, %c5_101, %c0_102, %c0_103] : memref<2x9x8x128xf32, #tpu.memory_space<vmem>>, vector<1x1x8x128xf32>
    %93 = vector.shape_cast %92 : vector<1x1x8x128xf32> to vector<8x128xf32>
    %cst_104 = arith.constant dense<0.000000e+00> : vector<288x128xf32>
    %94 = tpu.matmul %91, %93, %cst_104 {dimension_numbers = #tpu.dot_dimension_numbers<[1], [0], [0], [1], [0, 0, 1, 1], [], []>} : vector<288x8xf32>, vector<8x128xf32>, vector<288x128xf32> -> vector<288x128xf32>
    %95 = arith.addf %89, %94 : vector<288x128xf32>
    %96 = arith.addf %84, %95 : vector<288x128xf32>
    %c0_105 = arith.constant 0 : index
    %c0_106 = arith.constant 0 : index
    %97 = vector.load %arg5[%c0_105, %c0_106] : memref<288x128xf32, #tpu.memory_space<vmem>>, vector<288x128xf32>
    tpu.vector_store %arg5[%c0_105, %c0_106], %96 {strides = array<i32>} : memref<288x128xf32, #tpu.memory_space<vmem>>, vector<288x128xf32>,
    %c0_107 = arith.constant 0 : index
    %c36 = arith.constant 36 : index
    %c0_108 = arith.constant 0 : index
    %98 = vector.load %arg1[%c0_107, %c36, %c0_108] : memref<1x342x8xf32, #tpu.memory_space<vmem>>, vector<1x288x8xf32>
    %99 = vector.shape_cast %98 : vector<1x288x8xf32> to vector<288x8xf32>
    %c0_109 = arith.constant 0 : index
    %c0_110 = arith.constant 0 : index
    %100 = vector.load %arg5[%c0_109, %c0_110] : memref<288x128xf32, #tpu.memory_space<vmem>>, vector<288x128xf32>
    %cst_111 = arith.constant 0.000000e+00 : f32
    %101 = vector.broadcast %cst_111 : f32 to vector<288x8xf32>
    %102 = arith.minimumf %99, %101 : vector<288x8xf32>
    %c0_112 = arith.constant 0 : index
    %c6 = arith.constant 6 : index
    %c0_113 = arith.constant 0 : index
    %c0_114 = arith.constant 0 : index
    %103 = vector.load %arg2[%c0_112, %c6, %c0_113, %c0_114] : memref<2x9x8x128xf32, #tpu.memory_space<vmem>>, vector<1x1x8x128xf32>
    %104 = vector.shape_cast %103 : vector<1x1x8x128xf32> to vector<8x128xf32>
    %cst_115 = arith.constant dense<0.000000e+00> : vector<288x128xf32>
    %105 = tpu.matmul %102, %104, %cst_115 {dimension_numbers = #tpu.dot_dimension_numbers<[1], [0], [0], [1], [0, 0, 1, 1], [], []>} : vector<288x8xf32>, vector<8x128xf32>, vector<288x128xf32> -> vector<288x128xf32>
    %cst_116 = arith.constant 0.000000e+00 : f32
    %106 = vector.broadcast %cst_116 : f32 to vector<288x8xf32>
    %107 = arith.maximumf %99, %106 : vector<288x8xf32>
    %c1_117 = arith.constant 1 : index
    %c6_118 = arith.constant 6 : index
    %c0_119 = arith.constant 0 : index
    %c0_120 = arith.constant 0 : index
    %108 = vector.load %arg2[%c1_117, %c6_118, %c0_119, %c0_120] : memref<2x9x8x128xf32, #tpu.memory_space<vmem>>, vector<1x1x8x128xf32>
    %109 = vector.shape_cast %108 : vector<1x1x8x128xf32> to vector<8x128xf32>
    %cst_121 = arith.constant dense<0.000000e+00> : vector<288x128xf32>
    %110 = tpu.matmul %107, %109, %cst_121 {dimension_numbers = #tpu.dot_dimension_numbers<[1], [0], [0], [1], [0, 0, 1, 1], [], []>} : vector<288x8xf32>, vector<8x128xf32>, vector<288x128xf32> -> vector<288x128xf32>
    %111 = arith.addf %105, %110 : vector<288x128xf32>
    %112 = arith.addf %100, %111 : vector<288x128xf32>
    %c0_122 = arith.constant 0 : index
    %c0_123 = arith.constant 0 : index
    %113 = vector.load %arg5[%c0_122, %c0_123] : memref<288x128xf32, #tpu.memory_space<vmem>>, vector<288x128xf32>
    tpu.vector_store %arg5[%c0_122, %c0_123], %112 {strides = array<i32>} : memref<288x128xf32, #tpu.memory_space<vmem>>, vector<288x128xf32>,
    %c0_124 = arith.constant 0 : index
    %c37 = arith.constant 37 : index
    %c0_125 = arith.constant 0 : index
    %114 = vector.load %arg1[%c0_124, %c37, %c0_125] : memref<1x342x8xf32, #tpu.memory_space<vmem>>, vector<1x288x8xf32>
    %115 = vector.shape_cast %114 : vector<1x288x8xf32> to vector<288x8xf32>
    %c0_126 = arith.constant 0 : index
    %c0_127 = arith.constant 0 : index
    %116 = vector.load %arg5[%c0_126, %c0_127] : memref<288x128xf32, #tpu.memory_space<vmem>>, vector<288x128xf32>
    %cst_128 = arith.constant 0.000000e+00 : f32
    %117 = vector.broadcast %cst_128 : f32 to vector<288x8xf32>
    %118 = arith.minimumf %115, %117 : vector<288x8xf32>
    %c0_129 = arith.constant 0 : index
    %c7 = arith.constant 7 : index
    %c0_130 = arith.constant 0 : index
    %c0_131 = arith.constant 0 : index
    %119 = vector.load %arg2[%c0_129, %c7, %c0_130, %c0_131] : memref<2x9x8x128xf32, #tpu.memory_space<vmem>>, vector<1x1x8x128xf32>
    %120 = vector.shape_cast %119 : vector<1x1x8x128xf32> to vector<8x128xf32>
    %cst_132 = arith.constant dense<0.000000e+00> : vector<288x128xf32>
    %121 = tpu.matmul %118, %120, %cst_132 {dimension_numbers = #tpu.dot_dimension_numbers<[1], [0], [0], [1], [0, 0, 1, 1], [], []>} : vector<288x8xf32>, vector<8x128xf32>, vector<288x128xf32> -> vector<288x128xf32>
    %cst_133 = arith.constant 0.000000e+00 : f32
    %122 = vector.broadcast %cst_133 : f32 to vector<288x8xf32>
    %123 = arith.maximumf %115, %122 : vector<288x8xf32>
    %c1_134 = arith.constant 1 : index
    %c7_135 = arith.constant 7 : index
    %c0_136 = arith.constant 0 : index
    %c0_137 = arith.constant 0 : index
    %124 = vector.load %arg2[%c1_134, %c7_135, %c0_136, %c0_137] : memref<2x9x8x128xf32, #tpu.memory_space<vmem>>, vector<1x1x8x128xf32>
    %125 = vector.shape_cast %124 : vector<1x1x8x128xf32> to vector<8x128xf32>
    %cst_138 = arith.constant dense<0.000000e+00> : vector<288x128xf32>
    %126 = tpu.matmul %123, %125, %cst_138 {dimension_numbers = #tpu.dot_dimension_numbers<[1], [0], [0], [1], [0, 0, 1, 1], [], []>} : vector<288x8xf32>, vector<8x128xf32>, vector<288x128xf32> -> vector<288x128xf32>
    %127 = arith.addf %121, %126 : vector<288x128xf32>
    %128 = arith.addf %116, %127 : vector<288x128xf32>
    %c0_139 = arith.constant 0 : index
    %c0_140 = arith.constant 0 : index
    %129 = vector.load %arg5[%c0_139, %c0_140] : memref<288x128xf32, #tpu.memory_space<vmem>>, vector<288x128xf32>
    tpu.vector_store %arg5[%c0_139, %c0_140], %128 {strides = array<i32>} : memref<288x128xf32, #tpu.memory_space<vmem>>, vector<288x128xf32>,
    %c0_141 = arith.constant 0 : index
    %c38 = arith.constant 38 : index
    %c0_142 = arith.constant 0 : index
    %130 = vector.load %arg1[%c0_141, %c38, %c0_142] : memref<1x342x8xf32, #tpu.memory_space<vmem>>, vector<1x288x8xf32>
    %131 = vector.shape_cast %130 : vector<1x288x8xf32> to vector<288x8xf32>
    %c0_143 = arith.constant 0 : index
    %c0_144 = arith.constant 0 : index
    %132 = vector.load %arg5[%c0_143, %c0_144] : memref<288x128xf32, #tpu.memory_space<vmem>>, vector<288x128xf32>
    %cst_145 = arith.constant 0.000000e+00 : f32
    %133 = vector.broadcast %cst_145 : f32 to vector<288x8xf32>
    %134 = arith.minimumf %131, %133 : vector<288x8xf32>
    %c0_146 = arith.constant 0 : index
    %c8 = arith.constant 8 : index
    %c0_147 = arith.constant 0 : index
    %c0_148 = arith.constant 0 : index
    %135 = vector.load %arg2[%c0_146, %c8, %c0_147, %c0_148] : memref<2x9x8x128xf32, #tpu.memory_space<vmem>>, vector<1x1x8x128xf32>
    %136 = vector.shape_cast %135 : vector<1x1x8x128xf32> to vector<8x128xf32>
    %cst_149 = arith.constant dense<0.000000e+00> : vector<288x128xf32>
    %137 = tpu.matmul %134, %136, %cst_149 {dimension_numbers = #tpu.dot_dimension_numbers<[1], [0], [0], [1], [0, 0, 1, 1], [], []>} : vector<288x8xf32>, vector<8x128xf32>, vector<288x128xf32> -> vector<288x128xf32>
    %cst_150 = arith.constant 0.000000e+00 : f32
    %138 = vector.broadcast %cst_150 : f32 to vector<288x8xf32>
    %139 = arith.maximumf %131, %138 : vector<288x8xf32>
    %c1_151 = arith.constant 1 : index
    %c8_152 = arith.constant 8 : index
    %c0_153 = arith.constant 0 : index
    %c0_154 = arith.constant 0 : index
    %140 = vector.load %arg2[%c1_151, %c8_152, %c0_153, %c0_154] : memref<2x9x8x128xf32, #tpu.memory_space<vmem>>, vector<1x1x8x128xf32>
    %141 = vector.shape_cast %140 : vector<1x1x8x128xf32> to vector<8x128xf32>
    %cst_155 = arith.constant dense<0.000000e+00> : vector<288x128xf32>
    %142 = tpu.matmul %139, %141, %cst_155 {dimension_numbers = #tpu.dot_dimension_numbers<[1], [0], [0], [1], [0, 0, 1, 1], [], []>} : vector<288x8xf32>, vector<8x128xf32>, vector<288x128xf32> -> vector<288x128xf32>
    %143 = arith.addf %137, %142 : vector<288x128xf32>
    %144 = arith.addf %132, %143 : vector<288x128xf32>
    %c0_156 = arith.constant 0 : index
    %c0_157 = arith.constant 0 : index
    %145 = vector.load %arg5[%c0_156, %c0_157] : memref<288x128xf32, #tpu.memory_space<vmem>>, vector<288x128xf32>
    tpu.vector_store %arg5[%c0_156, %c0_157], %144 {strides = array<i32>} : memref<288x128xf32, #tpu.memory_space<vmem>>, vector<288x128xf32>,
    %c0_158 = arith.constant 0 : index
    %c0_159 = arith.constant 0 : index
    %146 = vector.load %arg5[%c0_158, %c0_159] : memref<288x128xf32, #tpu.memory_space<vmem>>, vector<288x128xf32>
    %c0_160 = arith.constant 0 : index
    %c0_161 = arith.constant 0 : index
    %147 = vector.load %arg3[%c0_160, %c0_161] : memref<1x128xf32, #tpu.memory_space<vmem>>, vector<1x128xf32>
    %148 = vector.broadcast %147 : vector<1x128xf32> to vector<288x128xf32>
    %149 = arith.addf %146, %148 : vector<288x128xf32>
    %c0_162 = arith.constant 0 : index
    %c0_163 = arith.constant 0 : index
    %c0_164 = arith.constant 0 : index
    %150 = vector.load %arg4[%c0_162, %c0_163, %c0_164] : memref<1x288x128xf32, #tpu.memory_space<vmem>>, vector<1x288x128xf32>
    %151 = vector.shape_cast %150 : vector<1x288x128xf32> to vector<288x128xf32>
    %152 = vector.shape_cast %149 : vector<288x128xf32> to vector<1x288x128xf32>
    tpu.vector_store %arg4[%c0_162, %c0_163, %c0_164], %152 {strides = array<i32>} : memref<1x288x128xf32, #tpu.memory_space<vmem>>, vector<1x288x128xf32>,
    return
  }
  func.func @transform_0(%arg0: i32) -> (i32, i32, i32) {
    %c0_i32 = arith.constant 0 : i32
    %c0_i32_0 = arith.constant 0 : i32
    %c0_i32_1 = arith.constant 0 : i32
    return %arg0, %c0_i32, %c0_i32_0 : i32, i32, i32
  }
  func.func @transform_1(%arg0: i32) -> (i32, i32, i32, i32) {
    %c0_i32 = arith.constant 0 : i32
    %c0_i32_0 = arith.constant 0 : i32
    %c0_i32_1 = arith.constant 0 : i32
    %c0_i32_2 = arith.constant 0 : i32
    %c0_i32_3 = arith.constant 0 : i32
    return %c0_i32, %c0_i32_0, %c0_i32_1, %c0_i32_2 : i32, i32, i32, i32
  }
  func.func @transform_2(%arg0: i32) -> (i32, i32) {
    %c0_i32 = arith.constant 0 : i32
    %c0_i32_0 = arith.constant 0 : i32
    %c0_i32_1 = arith.constant 0 : i32
    return %c0_i32, %c0_i32_0 : i32, i32
  }
  func.func @transform_3(%arg0: i32) -> (i32, i32, i32) {
    %c0_i32 = arith.constant 0 : i32
    %c0_i32_0 = arith.constant 0 : i32
    %c0_i32_1 = arith.constant 0 : i32
    return %arg0, %c0_i32, %c0_i32_0 : i32, i32, i32
  }
}

</mosaic_0001>

<bundles_post_ra>
// kernel: negnet_conv.1
= control target key start
LH: loop header
LB: loop body
LE: loop exit
PB: predicated region body
PF: predicated region fallthrough
CT: control target
= control target key end

     0   :  { %s7264_s12 = smov 0   ;;  %s9497_s0 = inlined_call_operand.vmem [shape: f32[2,342,8], index: 0, kind: input, shape index: {}]   ;;  %s9498_s1 = inlined_call_operand.vmem [shape: f32[2,9,8,128], index: 1, kind: input, shape index: {}]   ;;  %s9499_s2 = inlined_call_operand.vmem [shape: f32[1,128], index: 2, kind: input, shape index: {}]   ;;  %s9500_s3 = inlined_call_operand.vmem [shape: f32[2,288,128], index: 3, kind: output, shape index: {}]  }
   0x1 LB: > { %s6548_s13 = sadd.s32 4294967295, %s7242_s12   ;;  %p6552_p0 = scmp.ge.s32.totalorder %s7242_s12, 1  ;;  %s7242_s12 = sphi %s7264_s12, %s13_s12  }
   0x2   : > { %p137_p1 = scmp.lt.s32.totalorder %s7242_s12, 3 }
   0x4   : > { %p138_p2 = pnand %p6552_p0, %p137_p1 }
   0x6   : > { %141 = sbr.rel (%p138_p2) target bundleno = 1449 (0x5a9), region = 32 }
   0xb   : > { %v6555_v0 = vld [vmem:[%s9498_s1 + $0x48] sm:$0xff]  ;;  %v315_v1 = vld [vmem:[%s9498_s1] sm:$0xff]  ;;  %p161_p3 = scmp.lt.s32.totalorder %s6548_s13, 1  ;;  %v6629_v2 = vld [vmem:[%s9498_s1 + $0x50] sm:$0xff]  ;;  %vm354_vm0 = vcmask 64512  }
   0xc   : > { %7222 = vmatpush.msra.mxu2 %v6555_v0  ;;  %7223 = vmatpush.msra.mxu3 %v315_v1  ;;  %v6628_v3 = vld [vmem:[%s9498_s1 + $0x8] sm:$0xff]  ;;  %v6703_v4 = vld [vmem:[%s9498_s1 + $0x58] sm:$0xff]  ;;  %v6702_v5 = vld [vmem:[%s9498_s1 + $0x10] sm:$0xff] }
   0xd   : > { %s9932_s13 = smov (!%p161_p3, %s6548_s13), 1  ;;  %478 = vmatpush.msra.mxu0 %v6555_v0  ;;  %711 = vmatpush.msra.mxu1 %v315_v1 }
   0xe   : > { %1164 = vmatpush.msrb.mxu2 %v6629_v2  ;;  %1397 = vmatpush.msrb.mxu3 %v6628_v3  ;;  %s7224_s26 = smul.u32 344, %s9932_s13 }
   0xf   : > { %1850 = vmatpush.msrb.mxu0 %v6703_v4  ;;  %2083 = vmatpush.msrb.mxu1 %v6702_v5  ;;  %s7225_s30 = smul.u32 288, %s9932_s13 }
  0x10   : > { %s7296_s29 = scalar_lea.vmem %s9497_s0, %s7224_s26 }
  0x11   : > { %v225_v6 = vld [vmem:[%s7296_s29 + $0x90] sm:$0xff]  ;;  %v207_v7 = vld [vmem:[%s7296_s29] sm:$0xff]  ;;  %v226_v12 = vld [vmem:[%s7296_s29 + $0x98] sm:$0xff]  ;;  %s9202_s7 = scalar_lea.vmem %s9500_s3, %s7225_s30 }
  0x12   : > { %v334_v8 = vmax.f32 %v225_v6, 0.0  ;;  %v297_v9 = vmin.f32 %v225_v6, 0.0  ;;  %v316_v10 = vmax.f32 %v207_v7, 0.0  ;;  %v279_v11 = vmin.f32 %v207_v7, 0.0  ;;  %v208_v13 = vld [vmem:[%s7296_s29 + $0x8] sm:$0xff]  ;;  %v227_v18 = vld [vmem:[%s7296_s29 + $0xa0] sm:$0xff] }
  0x13   : > { %v335_v14 = vmax.f32 %v226_v12, 0.0  ;;  %v298_v15 = vmin.f32 %v226_v12, 0.0  ;;  %v317_v16 = vmax.f32 %v208_v13, 0.0  ;;  %v280_v17 = vmin.f32 %v208_v13, 0.0  ;;  %v209_v19 = vld [vmem:[%s7296_s29 + $0x10] sm:$0xff]  ;;  %v228_v24 = vld [vmem:[%s7296_s29 + $0xa8] sm:$0xff] }
  0x14   : > { %6574 = vmatmul.msk.f32.vlgmr.msra.gmra.mxu2 %vm354_vm0, %v334_v8  ;;  %6610 = vmatmul.msk.f32.vlgmr.msra.gmra.mxu3 %vm354_vm0, %v297_v9  ;;  %v336_v20 = vmax.f32 %v227_v18, 0.0  ;;  %v299_v21 = vmin.f32 %v227_v18, 0.0  ;;  %v318_v22 = vmax.f32 %v209_v19, 0.0  ;;  %v281_v23 = vmin.f32 %v209_v19, 0.0  ;;  %v210_v25 = vld [vmem:[%s7296_s29 + $0x18] sm:$0xff]  ;;  %v229_v30 = vld [vmem:[%s7296_s29 + $0xb0] sm:$0xff] }
  0x15   : > { %6556 = vmatmul.msk.f32.vlgmr.msra.gmra.mxu0 %vm354_vm0, %v316_v10  ;;  %6592 = vmatmul.msk.f32.vlgmr.msra.gmra.mxu1 %vm354_vm0, %v279_v11  ;;  %v337_v26 = vmax.f32 %v228_v24, 0.0  ;;  %v300_v27 = vmin.f32 %v228_v24, 0.0  ;;  %v319_v28 = vmax.f32 %v210_v25, 0.0  ;;  %v282_v29 = vmin.f32 %v210_v25, 0.0  ;;  %v211_v31 = vld [vmem:[%s7296_s29 + $0x20] sm:$0xff]  ;;  %v230_v36 = vld [vmem:[%s7296_s29 + $0xb8] sm:$0xff] }
  0x16   : > { %v338_v32 = vmax.f32 %v229_v30, 0.0  ;;  %v301_v33 = vmin.f32 %v229_v30, 0.0  ;;  %v320_v34 = vmax.f32 %v211_v31, 0.0  ;;  %v283_v35 = vmin.f32 %v211_v31, 0.0  ;;  %v212_v37 = vld [vmem:[%s7296_s29 + $0x28] sm:$0xff]  ;;  %v231_v42 = vld [vmem:[%s7296_s29 + $0xc0] sm:$0xff] }
  0x17   : > { %v339_v38 = vmax.f32 %v230_v36, 0.0  ;;  %v302_v39 = vmin.f32 %v230_v36, 0.0  ;;  %v321_v40 = vmax.f32 %v212_v37, 0.0  ;;  %v284_v41 = vmin.f32 %v212_v37, 0.0  ;;  %v213_v43 = vld [vmem:[%s7296_s29 + $0x30] sm:$0xff]  ;;  %v232_v48 = vld [vmem:[%s7296_s29 + $0xc8] sm:$0xff] }
  0x18   : > { %v340_v44 = vmax.f32 %v231_v42, 0.0  ;;  %v303_v45 = vmin.f32 %v231_v42, 0.0  ;;  %v322_v46 = vmax.f32 %v213_v43, 0.0  ;;  %v285_v47 = vmin.f32 %v213_v43, 0.0  ;;  %v214_v49 = vld [vmem:[%s7296_s29 + $0x38] sm:$0xff]  ;;  %v233_v54 = vld [vmem:[%s7296_s29 + $0xd0] sm:$0xff] }
  0x19   : > { %v341_v50 = vmax.f32 %v232_v48, 0.0  ;;  %v304_v51 = vmin.f32 %v232_v48, 0.0  ;;  %v323_v52 = vmax.f32 %v214_v49, 0.0  ;;  %v286_v53 = vmin.f32 %v214_v49, 0.0  ;;  %v215_v55 = vld [vmem:[%s7296_s29 + $0x40] sm:$0xff]  ;;  %v234_v60 = vld [vmem:[%s7296_s29 + $0xd8] sm:$0xff] }
  0x1a   : > { %v342_v56 = vmax.f32 %v233_v54, 0.0  ;;  %v305_v57 = vmin.f32 %v233_v54, 0.0  ;;  %v324_v58 = vmax.f32 %v215_v55, 0.0  ;;  %v287_v59 = vmin.f32 %v215_v55, 0.0  ;;  %v216_v61 = vld [vmem:[%s7296_s29 + $0x48] sm:$0xff]  ;;  %v235_v2 = vld [vmem:[%s7296_s29 + $0xe0] sm:$0xff] }
  0x1b   : > { %v343_v62 = vmax.f32 %v234_v60, 0.0  ;;  %v306_v63 = vmin.f32 %v234_v60, 0.0  ;;  %v325_v0 = vmax.f32 %v216_v61, 0.0  ;;  %v288_v1 = vmin.f32 %v216_v61, 0.0  ;;  %v217_v3 = vld [vmem:[%s7296_s29 + $0x50] sm:$0xff]  ;;  %v236_v8 = vld [vmem:[%s7296_s29 + $0xe8] sm:$0xff] }
  0x1c   : > { %6575 = vmatmul.msk.f32.gmra.mxu2 %vm354_vm0, %v335_v14  ;;  %6611 = vmatmul.msk.f32.gmra.mxu3 %vm354_vm0, %v298_v15  ;;  %v344_v4 = vmax.f32 %v235_v2, 0.0  ;;  %v307_v5 = vmin.f32 %v235_v2, 0.0  ;;  %v326_v6 = vmax.f32 %v217_v3, 0.0  ;;  %v289_v7 = vmin.f32 %v217_v3, 0.0  ;;  %v218_v9 = vld [vmem:[%s7296_s29 + $0x58] sm:$0xff]  ;;  %v237_v14 = vld [vmem:[%s7296_s29 + $0xf0] sm:$0xff] }
  0x1d   : > { %6557 = vmatmul.msk.f32.gmra.mxu0 %vm354_vm0, %v317_v16  ;;  %6593 = vmatmul.msk.f32.gmra.mxu1 %vm354_vm0, %v280_v17  ;;  %v345_v10 = vmax.f32 %v236_v8, 0.0  ;;  %v308_v11 = vmin.f32 %v236_v8, 0.0  ;;  %v327_v12 = vmax.f32 %v218_v9, 0.0  ;;  %v290_v13 = vmin.f32 %v218_v9, 0.0  ;;  %v219_v15 = vld [vmem:[%s7296_s29 + $0x60] sm:$0xff]  ;;  %v241_v42 = vld [vmem:[%s7296_s29 + $0x110] sm:$0xff] }
  0x1e   : > { %v346_v16 = vmax.f32 %v237_v14, 0.0  ;;  %v309_v17 = vmin.f32 %v237_v14, 0.0  ;;  %v328_v18 = vmax.f32 %v219_v15, 0.0  ;;  %v291_v19 = vmin.f32 %v219_v15, 0.0  ;;  %v223_v43 = vld [vmem:[%s7296_s29 + $0x80] sm:$0xff]  ;;  %v894_v8 = vld [vmem:[%s7296_s29 + $0x9] sm:$0xff] }
  0x1f   : > { %v893_v61 = vld [vmem:[%s7296_s29 + $0x1] sm:$0xff]  ;;  %v1580_v9 = vld [vmem:[%s7296_s29 + $0xa] sm:$0xff]  ;;  %v966_v14 = vmin.f32 %v894_v8, 0.0 }
  0x20   : > { %v1003_v2 = vmax.f32 %v893_v61, 0.0  ;;  %v965_v3 = vmin.f32 %v893_v61, 0.0  ;;  %v1690_v15 = vmax.f32 %v1580_v9, 0.0 }
  0x24   : > { %6576 = vmatmul.msk.f32.gmra.mxu2 %vm354_vm0, %v336_v20  ;;  %6612 = vmatmul.msk.f32.gmra.mxu3 %vm354_vm0, %v299_v21  ;;  %v238_v20 = vld [vmem:[%s7296_s29 + $0xf8] sm:$0xff]  ;;  %v220_v21 = vld [vmem:[%s7296_s29 + $0x68] sm:$0xff] }
  0x25   : > { %6558 = vmatmul.msk.f32.gmra.mxu0 %vm354_vm0, %v318_v22  ;;  %6594 = vmatmul.msk.f32.gmra.mxu1 %vm354_vm0, %v281_v23  ;;  %v347_v22 = vmax.f32 %v238_v20, 0.0  ;;  %v310_v23 = vmin.f32 %v238_v20, 0.0  ;;  %v329_v24 = vmax.f32 %v220_v21, 0.0  ;;  %v292_v25 = vmin.f32 %v220_v21, 0.0  ;;  %v1581_v20 = vld [vmem:[%s7296_s29 + $0x12] sm:$0xff] }
  0x2c   : > { %6577 = vmatmul.msk.f32.gmra.mxu2 %vm354_vm0, %v337_v26  ;;  %6613 = vmatmul.msk.f32.gmra.mxu3 %vm354_vm0, %v300_v27  ;;  %v239_v26 = vld [vmem:[%s7296_s29 + $0x100] sm:$0xff]  ;;  %v221_v27 = vld [vmem:[%s7296_s29 + $0x70] sm:$0xff] }
  0x2d   : > { %6559 = vmatmul.msk.f32.gmra.mxu0 %vm354_vm0, %v319_v28  ;;  %6595 = vmatmul.msk.f32.gmra.mxu1 %vm354_vm0, %v282_v29  ;;  %v348_v28 = vmax.f32 %v239_v26, 0.0  ;;  %v311_v29 = vmin.f32 %v239_v26, 0.0  ;;  %v330_v30 = vmax.f32 %v221_v27, 0.0  ;;  %v293_v31 = vmin.f32 %v221_v27, 0.0 }
  0x2e   : > { %v1691_v26 = vmax.f32 %v1581_v20, 0.0  ;;  %v1653_v27 = vmin.f32 %v1581_v20, 0.0 }
  0x34   : > { %6578 = vmatmul.msk.f32.gmra.mxu2 %vm354_vm0, %v338_v32  ;;  %6614 = vmatmul.msk.f32.gmra.mxu3 %vm354_vm0, %v301_v33  ;;  %v6777_v32 = vld [vmem:[%s9498_s1 + $0x60] sm:$0xff]  ;;  %v6776_v33 = vld [vmem:[%s9498_s1 + $0x18] sm:$0xff] }
  0x35   : > { %6560 = vmatmul.msk.f32.gmra.mxu0 %vm354_vm0, %v320_v34  ;;  %6596 = vmatmul.msk.f32.gmra.mxu1 %vm354_vm0, %v283_v35  ;;  %v240_v34 = vld [vmem:[%s7296_s29 + $0x108] sm:$0xff]  ;;  %v222_v35 = vld [vmem:[%s7296_s29 + $0x78] sm:$0xff] }
  0x36   : > { %2536 = vmatpush.msra.mxu2 %v6777_v32  ;;  %2769 = vmatpush.msra.mxu3 %v6776_v33  ;;  %v349_v36 = vmax.f32 %v240_v34, 0.0  ;;  %v312_v37 = vmin.f32 %v240_v34, 0.0 }
  0x3c   : > { %6579 = vmatmul.msk.f32.gmra.mxu2 %vm354_vm0, %v339_v38  ;;  %6615 = vmatmul.msk.f32.gmra.mxu3 %vm354_vm0, %v302_v39  ;;  %v331_v38 = vmax.f32 %v222_v35, 0.0  ;;  %v294_v39 = vmin.f32 %v222_v35, 0.0 }
  0x3d   : > { %6561 = vmatmul.msk.f32.gmra.mxu0 %vm354_vm0, %v321_v40  ;;  %6597 = vmatmul.msk.f32.gmra.mxu1 %vm354_vm0, %v284_v41  ;;  %v6851_v40 = vld [vmem:[%s9498_s1 + $0x68] sm:$0xff]  ;;  %v6850_v41 = vld [vmem:[%s9498_s1 + $0x20] sm:$0xff] }
  0x3e   : > { %3222 = vmatpush.msra.mxu0 %v6851_v40  ;;  %3455 = vmatpush.msra.mxu1 %v6850_v41  ;;  %v897_v41 = vld [vmem:[%s7296_s29 + $0x21] sm:$0xff] }
  0x44   : > { %6580 = vmatmul.msk.f32.gmra.mxu2 %vm354_vm0, %v340_v44  ;;  %6616 = vmatmul.msk.f32.gmra.mxu3 %vm354_vm0, %v303_v45  ;;  %v350_v44 = vmax.f32 %v241_v42, 0.0  ;;  %v313_v45 = vmin.f32 %v241_v42, 0.0  ;;  %v1583_v42 = vld [vmem:[%s7296_s29 + $0x22] sm:$0xff] }
  0x45   : > { %6562 = vmatmul.msk.f32.gmra.mxu0 %vm354_vm0, %v322_v46  ;;  %6598 = vmatmul.msk.f32.gmra.mxu1 %vm354_vm0, %v285_v47  ;;  %v332_v46 = vmax.f32 %v223_v43, 0.0  ;;  %v295_v47 = vmin.f32 %v223_v43, 0.0 }
  0x4c   : > { %6581 = vmatmul.msk.f32.gmra.mxu2 %vm354_vm0, %v341_v50  ;;  %6617 = vmatmul.msk.f32.gmra.mxu3 %vm354_vm0, %v304_v51  ;;  %v242_v50 = vld [vmem:[%s7296_s29 + $0x118] sm:$0xff]  ;;  %v224_v51 = vld [vmem:[%s7296_s29 + $0x88] sm:$0xff] }
  0x4d   : > { %6563 = vmatmul.msk.f32.gmra.mxu0 %vm354_vm0, %v323_v52  ;;  %6599 = vmatmul.msk.f32.gmra.mxu1 %vm354_vm0, %v286_v53  ;;  %v351_v55 = vmax.f32 %v242_v50, 0.0 }
  0x54   : > { %6582 = vmatmul.msk.f32.gmra.mxu2 %vm354_vm0, %v342_v56  ;;  %6618 = vmatmul.msk.f32.gmra.mxu3 %vm354_vm0, %v305_v57  ;;  %v314_v56 = vmin.f32 %v242_v50, 0.0  ;;  %v333_v57 = vmax.f32 %v224_v51, 0.0  ;;  %v1693_v50 = vmax.f32 %v1583_v42, 0.0 }
  0x55   : > { %6564 = vmatmul.msk.f32.gmra.mxu0 %vm354_vm0, %v324_v58  ;;  %6600 = vmatmul.msk.f32.gmra.mxu1 %vm354_vm0, %v287_v59  ;;  %v296_v58 = vmin.f32 %v224_v51, 0.0  ;;  %v1655_v51 = vmin.f32 %v1583_v42, 0.0 }
  0x5c   : > { %6583 = vmatmul.msk.f32.gmra.mxu2 %vm354_vm0, %v343_v62  ;;  %6619 = vmatmul.msk.f32.gmra.mxu3 %vm354_vm0, %v306_v63  ;;  %v1579_v62 = vld [vmem:[%s7296_s29 + $0x2] sm:$0xff] }
  0x5d   : > { %6565 = vmatmul.msk.f32.gmra.mxu0 %vm354_vm0, %v325_v0  ;;  %6601 = vmatmul.msk.f32.gmra.mxu1 %vm354_vm0, %v288_v1 }
  0x64   : > { %6584 = vmatmul.msk.f32.gmra.mxu2 %vm354_vm0, %v344_v4  ;;  %6620 = vmatmul.msk.f32.gmra.mxu3 %vm354_vm0, %v307_v5  ;;  %v1689_v4 = vmax.f32 %v1579_v62, 0.0  ;;  %v1651_v5 = vmin.f32 %v1579_v62, 0.0 }
  0x65   : > { %6566 = vmatmul.msk.f32.gmra.mxu0 %vm354_vm0, %v326_v6  ;;  %6602 = vmatmul.msk.f32.gmra.mxu1 %vm354_vm0, %v289_v7 }
  0x6c   : > { %6585 = vmatmul.msk.f32.gmra.mxu2 %vm354_vm0, %v345_v10  ;;  %6621 = vmatmul.msk.f32.gmra.mxu3 %vm354_vm0, %v308_v11 }
  0x6d   : > { %6567 = vmatmul.msk.f32.gmra.mxu0 %vm354_vm0, %v327_v12  ;;  %6603 = vmatmul.msk.f32.gmra.mxu1 %vm354_vm0, %v290_v13  ;;  %v1004_v13 = vmax.f32 %v894_v8, 0.0  ;;  %v1585_v8 = vld [vmem:[%s7296_s29 + $0x32] sm:$0xff] }
  0x74   : > { %6586 = vmatmul.msk.f32.gmra.mxu2 %vm354_vm0, %v346_v16  ;;  %6622 = vmatmul.msk.f32.gmra.mxu3 %vm354_vm0, %v309_v17  ;;  %v1652_v16 = vmin.f32 %v1580_v9, 0.0 }
  0x75   : > { %6568 = vmatmul.msk.f32.gmra.mxu0 %vm354_vm0, %v328_v18  ;;  %6604 = vmatmul.msk.f32.gmra.mxu1 %vm354_vm0, %v291_v19  ;;  %v895_v19 = vld [vmem:[%s7296_s29 + $0x11] sm:$0xff] }
  0x7c   : > { %6587 = vmatmul.msk.f32.gmra.mxu2 %vm354_vm0, %v347_v22  ;;  %6623 = vmatmul.msk.f32.gmra.mxu3 %vm354_vm0, %v310_v23 }
  0x7d   : > { %6569 = vmatmul.msk.f32.gmra.mxu0 %vm354_vm0, %v329_v24  ;;  %6605 = vmatmul.msk.f32.gmra.mxu1 %vm354_vm0, %v292_v25  ;;  %v1005_v24 = vmax.f32 %v895_v19, 0.0  ;;  %v967_v25 = vmin.f32 %v895_v19, 0.0 }
  0x84   : > { %6588 = vmatmul.msk.f32.gmra.mxu2 %vm354_vm0, %v348_v28  ;;  %6624 = vmatmul.msk.f32.gmra.mxu3 %vm354_vm0, %v311_v29 }
  0x85   : > { %6570 = vmatmul.msk.f32.gmra.mxu0 %vm354_vm0, %v330_v30  ;;  %6606 = vmatmul.msk.f32.gmra.mxu1 %vm354_vm0, %v293_v31  ;;  %v896_v30 = vld [vmem:[%s7296_s29 + $0x19] sm:$0xff] }
  0x86   : > { %v1582_v31 = vld [vmem:[%s7296_s29 + $0x1a] sm:$0xff]  ;;  %v1006_v35 = vmax.f32 %v896_v30, 0.0 }
  0x8c   : > { %6589 = vmatmul.msk.f32.gmra.mxu2 %vm354_vm0, %v349_v36  ;;  %6625 = vmatmul.msk.f32.gmra.mxu3 %vm354_vm0, %v312_v37  ;;  %v968_v36 = vmin.f32 %v896_v30, 0.0  ;;  %v1692_v37 = vmax.f32 %v1582_v31, 0.0 }
  0x8d   : > { %6571 = vmatmul.msk.f32.gmra.mxu0 %vm354_vm0, %v331_v38  ;;  %6607 = vmatmul.msk.f32.gmra.mxu1 %vm354_vm0, %v294_v39  ;;  %v1654_v38 = vmin.f32 %v1582_v31, 0.0 }
  0x92   : > { %v7408_v48 = vpop.f32.mrf.mxu0  ;;  %v7410_v49 = vpop.f32.mrf.mxu1 }
  0x94   : > { %6590 = vmatmul.msk.f32.gmra.mxu2 %vm354_vm0, %v350_v44  ;;  %6626 = vmatmul.msk.f32.gmra.mxu3 %vm354_vm0, %v313_v45 }
  0x95   : > { %6572 = vmatmul.msk.f32.gmra.mxu0 %vm354_vm0, %v332_v46  ;;  %6608 = vmatmul.msk.f32.gmra.mxu1 %vm354_vm0, %v295_v47  ;;  %v1007_v46 = vmax.f32 %v897_v41, 0.0  ;;  %v969_v47 = vmin.f32 %v897_v41, 0.0 }
  0x97   : > { %v534_v52 = vpop.f32.mrf.mxu2  ;;  %v767_v53 = vpop.f32.mrf.mxu3 }
  0x98   : > { %v7418_v54 = vadd.f32 %v767_v53, %v534_v52 }
  0x9a   : > { %v7420_v59 = vpop.f32.mrf.mxu0  ;;  %v7422_v60 = vpop.f32.mrf.mxu1 }
  0x9c   : > { %6591 = vmatmul.msk.f32.gmra.mxu2 %vm354_vm0, %v351_v55  ;;  %6627 = vmatmul.msk.f32.gmra.mxu3 %vm354_vm0, %v314_v56  ;;  %v898_v55 = vld [vmem:[%s7296_s29 + $0x29] sm:$0xff] }
  0x9d   : > { %6573 = vmatmul.msk.f32.gmra.mxu0 %vm354_vm0, %v333_v57  ;;  %6609 = vmatmul.msk.f32.gmra.mxu1 %vm354_vm0, %v296_v58  ;;  %v1584_v56 = vld [vmem:[%s7296_s29 + $0x2a] sm:$0xff]  ;;  %v1008_v62 = vmax.f32 %v898_v55, 0.0 }
  0x9f   : > { %v537_v63 = vpop.f32.mrf.mxu2  ;;  %v770_v0 = vpop.f32.mrf.mxu3 }
  0xa0   : > { %v7430_v1 = vadd.f32 %v770_v0, %v537_v63  ;;  %v970_v63 = vmin.f32 %v898_v55, 0.0  ;;  %v1694_v0 = vmax.f32 %v1584_v56, 0.0  ;;  %v902_v55 = vld [vmem:[%s7296_s29 + $0x49] sm:$0xff] }
  0xa2   : > { %v7432_v6 = vpop.f32.mrf.mxu0  ;;  %v7434_v7 = vpop.f32.mrf.mxu1 }
  0xa4   : > { %6630 = vmatmul.msk.f32.vlgmr.msrb.gmra.mxu2 %vm354_vm0, %v1003_v2  ;;  %6666 = vmatmul.msk.f32.vlgmr.msrb.gmra.mxu3 %vm354_vm0, %v965_v3  ;;  %v1656_v2 = vmin.f32 %v1584_v56, 0.0  ;;  %v1588_v56 = vld [vmem:[%s7296_s29 + $0x4a] sm:$0xff] }
  0xa5   : > { %6704 = vmatmul.msk.f32.vlgmr.msrb.gmra.mxu0 %vm354_vm0, %v1689_v4  ;;  %6740 = vmatmul.msk.f32.vlgmr.msrb.gmra.mxu1 %vm354_vm0, %v1651_v5  ;;  %v899_v5 = vld [vmem:[%s7296_s29 + $0x31] sm:$0xff] }
  0xa7   : > { %v540_v10 = vpop.f32.mrf.mxu2  ;;  %v773_v11 = vpop.f32.mrf.mxu3 }
  0xa8   : > { %v7442_v12 = vadd.f32 %v773_v11, %v540_v10 }
  0xaa   : > { %v7444_v17 = vpop.f32.mrf.mxu0  ;;  %v7446_v18 = vpop.f32.mrf.mxu1 }
  0xac   : > { %6631 = vmatmul.msk.f32.gmra.mxu2 %vm354_vm0, %v1004_v13  ;;  %6667 = vmatmul.msk.f32.gmra.mxu3 %vm354_vm0, %v966_v14  ;;  %v1009_v13 = vmax.f32 %v899_v5, 0.0  ;;  %v971_v14 = vmin.f32 %v899_v5, 0.0  ;;  %v1660_v5 = vmin.f32 %v1588_v56, 0.0 }
  0xad   : > { %6705 = vmatmul.msk.f32.gmra.mxu0 %vm354_vm0, %v1690_v15  ;;  %6741 = vmatmul.msk.f32.gmra.mxu1 %vm354_vm0, %v1652_v16  ;;  %v1695_v15 = vmax.f32 %v1585_v8, 0.0  ;;  %v1657_v16 = vmin.f32 %v1585_v8, 0.0 }
  0xaf   : > { %v543_v21 = vpop.f32.mrf.mxu2  ;;  %v776_v22 = vpop.f32.mrf.mxu3 }
  0xb0   : > { %v7454_v23 = vadd.f32 %v776_v22, %v543_v21  ;;  %v900_v21 = vld [vmem:[%s7296_s29 + $0x39] sm:$0xff] }
  0xb1   : > { %v1586_v22 = vld [vmem:[%s7296_s29 + $0x3a] sm:$0xff]  ;;  %v972_v30 = vmin.f32 %v900_v21, 0.0 }
  0xb2   : > { %v7456_v28 = vpop.f32.mrf.mxu0  ;;  %v7458_v29 = vpop.f32.mrf.mxu1  ;;  %v1696_v31 = vmax.f32 %v1586_v22, 0.0 }
  0xb4   : > { %6632 = vmatmul.msk.f32.gmra.mxu2 %vm354_vm0, %v1005_v24  ;;  %6668 = vmatmul.msk.f32.gmra.mxu3 %vm354_vm0, %v967_v25 }
  0xb5   : > { %6706 = vmatmul.msk.f32.gmra.mxu0 %vm354_vm0, %v1691_v26  ;;  %6742 = vmatmul.msk.f32.gmra.mxu1 %vm354_vm0, %v1653_v27  ;;  %v1010_v27 = vmax.f32 %v900_v21, 0.0 }
  0xb7   : > { %v546_v32 = vpop.f32.mrf.mxu2  ;;  %v779_v33 = vpop.f32.mrf.mxu3 }
  0xb8   : > { %v7466_v34 = vadd.f32 %v779_v33, %v546_v32  ;;  %v1658_v32 = vmin.f32 %v1586_v22, 0.0 }
  0xba   : > { %v7468_v39 = vpop.f32.mrf.mxu0  ;;  %v7470_v40 = vpop.f32.mrf.mxu1 }
  0xbc   : > { %6633 = vmatmul.msk.f32.gmra.mxu2 %vm354_vm0, %v1006_v35  ;;  %6669 = vmatmul.msk.f32.gmra.mxu3 %vm354_vm0, %v968_v36  ;;  %v901_v36 = vld [vmem:[%s7296_s29 + $0x41] sm:$0xff] }
  0xbd   : > { %6707 = vmatmul.msk.f32.gmra.mxu0 %vm354_vm0, %v1692_v37  ;;  %6743 = vmatmul.msk.f32.gmra.mxu1 %vm354_vm0, %v1654_v38  ;;  %v1587_v37 = vld [vmem:[%s7296_s29 + $0x42] sm:$0xff] }
  0xbf   : > { %v549_v43 = vpop.f32.mrf.mxu2  ;;  %v782_v44 = vpop.f32.mrf.mxu3 }
  0xc0   : > { %v7478_v45 = vadd.f32 %v782_v44, %v549_v43  ;;  %v1011_v43 = vmax.f32 %v901_v36, 0.0  ;;  %v973_v44 = vmin.f32 %v901_v36, 0.0 }
  0xc2   : > { %v7480_v52 = vpop.f32.mrf.mxu0  ;;  %v7482_v53 = vpop.f32.mrf.mxu1 }
  0xc3   : > { %9501 = vst [vmem:[#allocation3_spill] sm:$0xff] %v7482_v53 }
  0xc4   : > { %6634 = vmatmul.msk.f32.gmra.mxu2 %vm354_vm0, %v1007_v46  ;;  %6670 = vmatmul.msk.f32.gmra.mxu3 %vm354_vm0, %v969_v47  ;;  %v1697_v46 = vmax.f32 %v1587_v37, 0.0  ;;  %v1659_v47 = vmin.f32 %v1587_v37, 0.0 }
  0xc5   : > { %6708 = vmatmul.msk.f32.gmra.mxu0 %vm354_vm0, %v1693_v50  ;;  %6744 = vmatmul.msk.f32.gmra.mxu1 %vm354_vm0, %v1655_v51 }
  0xc7   : > { %v552_v57 = vpop.f32.mrf.mxu2  ;;  %v785_v58 = vpop.f32.mrf.mxu3 }
  0xc8   : > { %v7490_v61 = vadd.f32 %v785_v58, %v552_v57 }
  0xca   : > { %v7492_v3 = vpop.f32.mrf.mxu0  ;;  %v7494_v4 = vpop.f32.mrf.mxu1 }
  0xcb   : > { %9502 = vst [vmem:[#allocation4_spill] sm:$0xff] %v7492_v3 }
  0xcc   : > { %9503 = vst [vmem:[#allocation5_spill] sm:$0xff] %v7494_v4  ;;  %6635 = vmatmul.msk.f32.gmra.mxu2 %vm354_vm0, %v1008_v62  ;;  %6671 = vmatmul.msk.f32.gmra.mxu3 %vm354_vm0, %v970_v63  ;;  %v1012_v63 = vmax.f32 %v902_v55, 0.0 }
  0xcd   : > { %6709 = vmatmul.msk.f32.gmra.mxu0 %vm354_vm0, %v1694_v0  ;;  %6745 = vmatmul.msk.f32.gmra.mxu1 %vm354_vm0, %v1656_v2  ;;  %v974_v0 = vmin.f32 %v902_v55, 0.0  ;;  %v1698_v2 = vmax.f32 %v1588_v56, 0.0  ;;  %v905_v56 = vld [vmem:[%s7296_s29 + $0x61] sm:$0xff] }
  0xcf   : > { %v555_v9 = vpop.f32.mrf.mxu2  ;;  %v788_v10 = vpop.f32.mrf.mxu3 }
  0xd0   : > { %v7502_v11 = vadd.f32 %v788_v10, %v555_v9  ;;  %v903_v10 = vld [vmem:[%s7296_s29 + $0x51] sm:$0xff] }
  0xd1   : > { %v1013_v21 = vmax.f32 %v903_v10, 0.0  ;;  %v975_v22 = vmin.f32 %v903_v10, 0.0 }
  0xd2   : > { %v7504_v19 = vpop.f32.mrf.mxu0  ;;  %v7506_v20 = vpop.f32.mrf.mxu1 }
  0xd3   : > { %9504 = vst [vmem:[#allocation6_spill] sm:$0xff] %v7504_v19 }
  0xd4   : > { %9505 = vst [vmem:[#allocation7_spill] sm:$0xff] %v7506_v20  ;;  %6636 = vmatmul.msk.f32.gmra.mxu2 %vm354_vm0, %v1009_v13  ;;  %6672 = vmatmul.msk.f32.gmra.mxu3 %vm354_vm0, %v971_v14  ;;  %v1589_v13 = vld [vmem:[%s7296_s29 + $0x52] sm:$0xff] }
  0xd5   : > { %6710 = vmatmul.msk.f32.gmra.mxu0 %vm354_vm0, %v1695_v15  ;;  %6746 = vmatmul.msk.f32.gmra.mxu1 %vm354_vm0, %v1657_v16 }
  0xd7   : > { %v558_v24 = vpop.f32.mrf.mxu2  ;;  %v791_v25 = vpop.f32.mrf.mxu3 }
  0xd8   : > { %v7514_v26 = vadd.f32 %v791_v25, %v558_v24  ;;  %v1699_v24 = vmax.f32 %v1589_v13, 0.0  ;;  %v1661_v25 = vmin.f32 %v1589_v13, 0.0 }
  0xda   : > { %v7516_v33 = vpop.f32.mrf.mxu0  ;;  %v7518_v35 = vpop.f32.mrf.mxu1 }
  0xdb   : > { %9506 = vst [vmem:[#allocation8_spill] sm:$0xff] %v7516_v33 }
  0xdc   : > { %9507 = vst [vmem:[#allocation9_spill] sm:$0xff] %v7518_v35  ;;  %6637 = vmatmul.msk.f32.gmra.mxu2 %vm354_vm0, %v1010_v27  ;;  %6673 = vmatmul.msk.f32.gmra.mxu3 %vm354_vm0, %v972_v30 }
  0xdd   : > { %6711 = vmatmul.msk.f32.gmra.mxu0 %vm354_vm0, %v1696_v31  ;;  %6747 = vmatmul.msk.f32.gmra.mxu1 %vm354_vm0, %v1658_v32  ;;  %v904_v31 = vld [vmem:[%s7296_s29 + $0x59] sm:$0xff] }
  0xde   : > { %v1590_v32 = vld [vmem:[%s7296_s29 + $0x5a] sm:$0xff] }
  0xdf   : > { %v561_v38 = vpop.f32.mrf.mxu2  ;;  %v794_v41 = vpop.f32.mrf.mxu3 }
  0xe0   : > { %v7526_v42 = vadd.f32 %v794_v41, %v561_v38  ;;  %v1014_v41 = vmax.f32 %v904_v31, 0.0 }
  0xe2   : > { %v7528_v50 = vpop.f32.mrf.mxu0  ;;  %v7530_v51 = vpop.f32.mrf.mxu1 }
  0xe3   : > { %9508 = vst [vmem:[#allocation10_spill] sm:$0xff] %v7528_v50 }
  0xe4   : > { %9509 = vst [vmem:[#allocation11_spill] sm:$0xff] %v7530_v51  ;;  %6638 = vmatmul.msk.f32.gmra.mxu2 %vm354_vm0, %v1011_v43  ;;  %6674 = vmatmul.msk.f32.gmra.mxu3 %vm354_vm0, %v973_v44  ;;  %v976_v43 = vmin.f32 %v904_v31, 0.0  ;;  %v1700_v44 = vmax.f32 %v1590_v32, 0.0 }
  0xe5   : > { %6712 = vmatmul.msk.f32.gmra.mxu0 %vm354_vm0, %v1697_v46  ;;  %6748 = vmatmul.msk.f32.gmra.mxu1 %vm354_vm0, %v1659_v47  ;;  %v1662_v46 = vmin.f32 %v1590_v32, 0.0 }
  0xe7   : > { %v564_v57 = vpop.f32.mrf.mxu2  ;;  %v797_v58 = vpop.f32.mrf.mxu3 }
  0xe8   : > { %v7538_v62 = vadd.f32 %v797_v58, %v564_v57  ;;  %v1591_v57 = vld [vmem:[%s7296_s29 + $0x62] sm:$0xff] }
  0xe9   : > { %v1701_v10 = vmax.f32 %v1591_v57, 0.0  ;;  %v1663_v13 = vmin.f32 %v1591_v57, 0.0 }
  0xea   : > { %v7540_v8 = vpop.f32.mrf.mxu0  ;;  %v7542_v9 = vpop.f32.mrf.mxu1 }
  0xeb   : > { %9510 = vst [vmem:[#allocation12_spill] sm:$0xff] %v7540_v8 }
  0xec   : > { %9511 = vst [vmem:[#allocation13_spill] sm:$0xff] %v7542_v9  ;;  %6639 = vmatmul.msk.f32.gmra.mxu2 %vm354_vm0, %v1012_v63  ;;  %6675 = vmatmul.msk.f32.gmra.mxu3 %vm354_vm0, %v974_v0 }
  0xed   : > { %6713 = vmatmul.msk.f32.gmra.mxu0 %vm354_vm0, %v1698_v2  ;;  %6749 = vmatmul.msk.f32.gmra.mxu1 %vm354_vm0, %v1660_v5  ;;  %v1015_v2 = vmax.f32 %v905_v56, 0.0  ;;  %v977_v5 = vmin.f32 %v905_v56, 0.0  ;;  %v1593_v56 = vld [vmem:[%s7296_s29 + $0x72] sm:$0xff] }
  0xef   : > { %v567_v14 = vpop.f32.mrf.mxu2  ;;  %v800_v15 = vpop.f32.mrf.mxu3 }
  0xf0   : > { %v7550_v16 = vadd.f32 %v800_v15, %v567_v14 }
  0xf2   : > { %v7552_v27 = vpop.f32.mrf.mxu0  ;;  %v7554_v30 = vpop.f32.mrf.mxu1 }
  0xf3   : > { %9512 = vst [vmem:[#allocation14_spill] sm:$0xff] %v7552_v27 }
  0xf4   : > { %9513 = vst [vmem:[#allocation15_spill] sm:$0xff] %v7554_v30  ;;  %6640 = vmatmul.msk.f32.gmra.mxu2 %vm354_vm0, %v1013_v21  ;;  %6676 = vmatmul.msk.f32.gmra.mxu3 %vm354_vm0, %v975_v22  ;;  %v906_v21 = vld [vmem:[%s7296_s29 + $0x69] sm:$0xff] }
  0xf5   : > { %6714 = vmatmul.msk.f32.gmra.mxu0 %vm354_vm0, %v1699_v24  ;;  %6750 = vmatmul.msk.f32.gmra.mxu1 %vm354_vm0, %v1661_v25  ;;  %v1592_v22 = vld [vmem:[%s7296_s29 + $0x6a] sm:$0xff]  ;;  %v1016_v32 = vmax.f32 %v906_v21, 0.0 }
  0xf7   : > { %v570_v36 = vpop.f32.mrf.mxu2  ;;  %v803_v37 = vpop.f32.mrf.mxu3 }
  0xf8   : > { %v7562_v38 = vadd.f32 %v803_v37, %v570_v36  ;;  %v978_v36 = vmin.f32 %v906_v21, 0.0  ;;  %v1702_v37 = vmax.f32 %v1592_v22, 0.0 }
  0xfa   : > { %v7564_v47 = vpop.f32.mrf.mxu0  ;;  %v7566_v55 = vpop.f32.mrf.mxu1 }
  0xfb   : > { %9514 = vst [vmem:[#allocation16_spill] sm:$0xff] %v7564_v47 }
  0xfc   : > { %9515 = vst [vmem:[#allocation17_spill] sm:$0xff] %v7566_v55  ;;  %6641 = vmatmul.msk.f32.gmra.mxu2 %vm354_vm0, %v1014_v41  ;;  %6677 = vmatmul.msk.f32.gmra.mxu3 %vm354_vm0, %v976_v43  ;;  %v1664_v41 = vmin.f32 %v1592_v22, 0.0 }
  0xfd   : > { %6715 = vmatmul.msk.f32.gmra.mxu0 %vm354_vm0, %v1700_v44  ;;  %6751 = vmatmul.msk.f32.gmra.mxu1 %vm354_vm0, %v1662_v46  ;;  %v907_v46 = vld [vmem:[%s7296_s29 + $0x71] sm:$0xff] }
  0xff   : > { %v573_v58 = vpop.f32.mrf.mxu2  ;;  %v806_v63 = vpop.f32.mrf.mxu3 }
 0x100   : > { %v7574_v0 = vadd.f32 %v806_v63, %v573_v58 }
 0x102   : > { %v7576_v14 = vpop.f32.mrf.mxu0  ;;  %v7578_v15 = vpop.f32.mrf.mxu1 }
 0x103   : > { %9516 = vst [vmem:[#allocation18_spill] sm:$0xff] %v7576_v14 }
 0x104   : > { %9517 = vst [vmem:[#allocation19_spill] sm:$0xff] %v7578_v15  ;;  %6642 = vmatmul.msk.f32.gmra.mxu2 %vm354_vm0, %v1015_v2  ;;  %6678 = vmatmul.msk.f32.gmra.mxu3 %vm354_vm0, %v977_v5  ;;  %v1017_v2 = vmax.f32 %v907_v46, 0.0  ;;  %v979_v5 = vmin.f32 %v907_v46, 0.0 }
 0x105   : > { %6716 = vmatmul.msk.f32.gmra.mxu0 %vm354_vm0, %v1701_v10  ;;  %6752 = vmatmul.msk.f32.gmra.mxu1 %vm354_vm0, %v1663_v13  ;;  %v1703_v10 = vmax.f32 %v1593_v56, 0.0  ;;  %v1665_v13 = vmin.f32 %v1593_v56, 0.0 }
 0x107   : > { %v576_v24 = vpop.f32.mrf.mxu2  ;;  %v809_v25 = vpop.f32.mrf.mxu3 }
 0x108   : > { %v7586_v31 = vadd.f32 %v809_v25, %v576_v24  ;;  %v908_v24 = vld [vmem:[%s7296_s29 + $0x79] sm:$0xff] }
 0x109   : > { %v1594_v25 = vld [vmem:[%s7296_s29 + $0x7a] sm:$0xff]  ;;  %v980_v46 = vmin.f32 %v908_v24, 0.0 }
 0x10a   : > { %v7588_v43 = vpop.f32.mrf.mxu0  ;;  %v7590_v44 = vpop.f32.mrf.mxu1  ;;  %v1704_v56 = vmax.f32 %v1594_v25, 0.0 }
 0x10b   : > { %9518 = vst [vmem:[#allocation20_spill] sm:$0xff] %v7588_v43 }
 0x10c   : > { %9519 = vst [vmem:[#allocation21_spill] sm:$0xff] %v7590_v44  ;;  %6643 = vmatmul.msk.f32.gmra.mxu2 %vm354_vm0, %v1016_v32  ;;  %6679 = vmatmul.msk.f32.gmra.mxu3 %vm354_vm0, %v978_v36 }
 0x10d   : > { %6717 = vmatmul.msk.f32.gmra.mxu0 %vm354_vm0, %v1702_v37  ;;  %6753 = vmatmul.msk.f32.gmra.mxu1 %vm354_vm0, %v1664_v41  ;;  %v1018_v41 = vmax.f32 %v908_v24, 0.0 }
 0x10f   : > { %v579_v57 = vpop.f32.mrf.mxu2  ;;  %v812_v58 = vpop.f32.mrf.mxu3 }
 0x110   : > { %v7598_v63 = vadd.f32 %v812_v58, %v579_v57  ;;  %v1666_v57 = vmin.f32 %v1594_v25, 0.0 }
 0x112   : > { %v7600_v21 = vpop.f32.mrf.mxu0  ;;  %v7602_v22 = vpop.f32.mrf.mxu1 }
 0x113   : > { %9520 = vst [vmem:[#allocation22_spill] sm:$0xff] %v7600_v21 }
 0x114   : > { %9521 = vst [vmem:[#allocation23_spill] sm:$0xff] %v7602_v22  ;;  %6644 = vmatmul.msk.f32.gmra.mxu2 %vm354_vm0, %v1017_v2  ;;  %6680 = vmatmul.msk.f32.gmra.mxu3 %vm354_vm0, %v979_v5  ;;  %v909_v5 = vld [vmem:[%s7296_s29 + $0x81] sm:$0xff] }
 0x115   : > { %6718 = vmatmul.msk.f32.gmra.mxu0 %vm354_vm0, %v1703_v10  ;;  %6754 = vmatmul.msk.f32.gmra.mxu1 %vm354_vm0, %v1665_v13  ;;  %v1595_v10 = vld [vmem:[%s7296_s29 + $0x82] sm:$0xff]  ;;  %v1019_v25 = vmax.f32 %v909_v5, 0.0 }
 0x117   : > { %v582_v32 = vpop.f32.mrf.mxu2  ;;  %v815_v36 = vpop.f32.mrf.mxu3 }
 0x118   : > { %v7610_v37 = vadd.f32 %v815_v36, %v582_v32  ;;  %v981_v36 = vmin.f32 %v909_v5, 0.0 }
 0x11a   : > { %v7612_v58 = vpop.f32.mrf.mxu0  ;;  %v7614_v2 = vpop.f32.mrf.mxu1 }
 0x11b   : > { %9522 = vst [vmem:[#allocation24_spill] sm:$0xff] %v7612_v58  ;;  %v1705_v58 = vmax.f32 %v1595_v10, 0.0 }
 0x11c   : > { %9523 = vst [vmem:[#allocation25_spill] sm:$0xff] %v7614_v2  ;;  %6645 = vmatmul.msk.f32.gmra.mxu2 %vm354_vm0, %v1018_v41  ;;  %6681 = vmatmul.msk.f32.gmra.mxu3 %vm354_vm0, %v980_v46  ;;  %v1667_v2 = vmin.f32 %v1595_v10, 0.0  ;;  %v910_v46 = vld [vmem:[%s7296_s29 + $0x89] sm:$0xff] }
 0x11d   : > { %6719 = vmatmul.msk.f32.gmra.mxu0 %vm354_vm0, %v1704_v56  ;;  %6755 = vmatmul.msk.f32.gmra.mxu1 %vm354_vm0, %v1666_v57  ;;  %v1596_v56 = vld [vmem:[%s7296_s29 + $0x8a] sm:$0xff]  ;;  %v1020_v10 = vmax.f32 %v910_v46, 0.0 }
 0x11e   : > { %v1706_v21 = vmax.f32 %v1596_v56, 0.0  ;;  %v1668_v44 = vmin.f32 %v1596_v56, 0.0 }
 0x11f   : > { %v585_v13 = vpop.f32.mrf.mxu2  ;;  %v818_v24 = vpop.f32.mrf.mxu3 }
 0x120   : > { %v7622_v32 = vadd.f32 %v818_v24, %v585_v13  ;;  %v982_v24 = vmin.f32 %v910_v46, 0.0 }
 0x122   : > { %v7624_v22 = vpop.f32.mrf.mxu0  ;;  %v7626_v41 = vpop.f32.mrf.mxu1 }
 0x124   : > { %6646 = vmatmul.msk.f32.gmra.mxu2 %vm354_vm0, %v1019_v25  ;;  %6682 = vmatmul.msk.f32.gmra.mxu3 %vm354_vm0, %v981_v36 }
 0x125   : > { %6720 = vmatmul.msk.f32.gmra.mxu0 %vm354_vm0, %v1705_v58  ;;  %6756 = vmatmul.msk.f32.gmra.mxu1 %vm354_vm0, %v1667_v2  ;;  %v911_v58 = vld [vmem:[%s7296_s29 + $0x91] sm:$0xff] }
 0x126   : > { %v1597_v2 = vld [vmem:[%s7296_s29 + $0x92] sm:$0xff]  ;;  %v1021_v56 = vmax.f32 %v911_v58, 0.0 }
 0x127   : > { %v1166_v57 = vpop.f32.mrf.mxu2  ;;  %v1399_v5 = vpop.f32.mrf.mxu3  ;;  %v1707_v15 = vmax.f32 %v1597_v2, 0.0  ;;  %v1669_v14 = vmin.f32 %v1597_v2, 0.0 }
 0x128   : > { %v7634_v13 = vadd.f32 %v1399_v5, %v1166_v57  ;;  %v983_v5 = vmin.f32 %v911_v58, 0.0 }
 0x12a   : > { %v7636_v43 = vpop.f32.mrf.mxu0  ;;  %v7638_v25 = vpop.f32.mrf.mxu1 }
 0x12c   : > { %6647 = vmatmul.msk.f32.gmra.mxu2 %vm354_vm0, %v1020_v10  ;;  %6683 = vmatmul.msk.f32.gmra.mxu3 %vm354_vm0, %v982_v24 }
 0x12d   : > { %6721 = vmatmul.msk.f32.gmra.mxu0 %vm354_vm0, %v1706_v21  ;;  %6757 = vmatmul.msk.f32.gmra.mxu1 %vm354_vm0, %v1668_v44  ;;  %v912_v44 = vld [vmem:[%s7296_s29 + $0x99] sm:$0xff] }
 0x12e   : > { %v1598_v21 = vld [vmem:[%s7296_s29 + $0x9a] sm:$0xff]  ;;  %v1022_v2 = vmax.f32 %v912_v44, 0.0 }
 0x12f   : > { %v1169_v36 = vpop.f32.mrf.mxu2  ;;  %v1402_v46 = vpop.f32.mrf.mxu3  ;;  %v1708_v47 = vmax.f32 %v1598_v21, 0.0  ;;  %v1670_v30 = vmin.f32 %v1598_v21, 0.0 }
 0x130   : > { %v7646_v57 = vadd.f32 %v1402_v46, %v1169_v36  ;;  %v984_v46 = vmin.f32 %v912_v44, 0.0 }
 0x132   : > { %v7648_v55 = vpop.f32.mrf.mxu0  ;;  %v7650_v10 = vpop.f32.mrf.mxu1 }
 0x134   : > { %6648 = vmatmul.msk.f32.gmra.mxu2 %vm354_vm0, %v1021_v56  ;;  %6684 = vmatmul.msk.f32.gmra.mxu3 %vm354_vm0, %v983_v5 }
 0x135   : > { %6722 = vmatmul.msk.f32.gmra.mxu0 %vm354_vm0, %v1707_v15  ;;  %6758 = vmatmul.msk.f32.gmra.mxu1 %vm354_vm0, %v1669_v14  ;;  %v913_v14 = vld [vmem:[%s7296_s29 + $0xa1] sm:$0xff] }
 0x136   : > { %v1599_v15 = vld [vmem:[%s7296_s29 + $0xa2] sm:$0xff]  ;;  %v1023_v21 = vmax.f32 %v913_v14, 0.0 }
 0x137   : > { %v1172_v24 = vpop.f32.mrf.mxu2  ;;  %v1405_v58 = vpop.f32.mrf.mxu3  ;;  %v1709_v9 = vmax.f32 %v1599_v15, 0.0  ;;  %v1671_v8 = vmin.f32 %v1599_v15, 0.0 }
 0x138   : > { %v7658_v36 = vadd.f32 %v1405_v58, %v1172_v24  ;;  %v985_v58 = vmin.f32 %v913_v14, 0.0 }
 0x13a   : > { %v7660_v27 = vpop.f32.mrf.mxu0  ;;  %v7662_v56 = vpop.f32.mrf.mxu1 }
 0x13c   : > { %6649 = vmatmul.msk.f32.gmra.mxu2 %vm354_vm0, %v1022_v2  ;;  %6685 = vmatmul.msk.f32.gmra.mxu3 %vm354_vm0, %v984_v46 }
 0x13d   : > { %6723 = vmatmul.msk.f32.gmra.mxu0 %vm354_vm0, %v1708_v47  ;;  %6759 = vmatmul.msk.f32.gmra.mxu1 %vm354_vm0, %v1670_v30  ;;  %v914_v30 = vld [vmem:[%s7296_s29 + $0xa9] sm:$0xff] }
 0x13e   : > { %v1600_v47 = vld [vmem:[%s7296_s29 + $0xaa] sm:$0xff]  ;;  %v1024_v15 = vmax.f32 %v914_v30, 0.0 }
 0x13f   : > { %v1175_v5 = vpop.f32.mrf.mxu2  ;;  %v1408_v44 = vpop.f32.mrf.mxu3  ;;  %v1710_v50 = vmax.f32 %v1600_v47, 0.0  ;;  %v1672_v35 = vmin.f32 %v1600_v47, 0.0 }
 0x140   : > { %v7670_v24 = vadd.f32 %v1408_v44, %v1175_v5  ;;  %v986_v44 = vmin.f32 %v914_v30, 0.0 }
 0x142   : > { %v7672_v51 = vpop.f32.mrf.mxu0  ;;  %v7674_v2 = vpop.f32.mrf.mxu1 }
 0x144   : > { %6650 = vmatmul.msk.f32.gmra.mxu2 %vm354_vm0, %v1023_v21  ;;  %6686 = vmatmul.msk.f32.gmra.mxu3 %vm354_vm0, %v985_v58 }
 0x145   : > { %6724 = vmatmul.msk.f32.gmra.mxu0 %vm354_vm0, %v1709_v9  ;;  %6760 = vmatmul.msk.f32.gmra.mxu1 %vm354_vm0, %v1671_v8  ;;  %v915_v8 = vld [vmem:[%s7296_s29 + $0xb1] sm:$0xff] }
 0x146   : > { %v1601_v9 = vld [vmem:[%s7296_s29 + $0xb2] sm:$0xff]  ;;  %v1025_v47 = vmax.f32 %v915_v8, 0.0 }
 0x147   : > { %v1178_v46 = vpop.f32.mrf.mxu2  ;;  %v1411_v14 = vpop.f32.mrf.mxu3  ;;  %v1711_v20 = vmax.f32 %v1601_v9, 0.0  ;;  %v1673_v19 = vmin.f32 %v1601_v9, 0.0 }
 0x148   : > { %v7682_v5 = vadd.f32 %v1411_v14, %v1178_v46  ;;  %v987_v14 = vmin.f32 %v915_v8, 0.0 }
 0x14a   : > { %v7684_v33 = vpop.f32.mrf.mxu0  ;;  %v7686_v21 = vpop.f32.mrf.mxu1 }
 0x14c   : > { %6651 = vmatmul.msk.f32.gmra.mxu2 %vm354_vm0, %v1024_v15  ;;  %6687 = vmatmul.msk.f32.gmra.mxu3 %vm354_vm0, %v986_v44 }
 0x14d   : > { %6725 = vmatmul.msk.f32.gmra.mxu0 %vm354_vm0, %v1710_v50  ;;  %6761 = vmatmul.msk.f32.gmra.mxu1 %vm354_vm0, %v1672_v35  ;;  %v916_v35 = vld [vmem:[%s7296_s29 + $0xb9] sm:$0xff] }
 0x14e   : > { %v1602_v50 = vld [vmem:[%s7296_s29 + $0xba] sm:$0xff]  ;;  %v1026_v9 = vmax.f32 %v916_v35, 0.0 }
 0x14f   : > { %v1181_v58 = vpop.f32.mrf.mxu2  ;;  %v1414_v30 = vpop.f32.mrf.mxu3  ;;  %v1712_v3 = vmax.f32 %v1602_v50, 0.0 }
 0x150   : > { %v7694_v46 = vadd.f32 %v1414_v30, %v1181_v58  ;;  %v988_v30 = vmin.f32 %v916_v35, 0.0 }
 0x152   : > { %v7696_v4 = vpop.f32.mrf.mxu0  ;;  %v7698_v15 = vpop.f32.mrf.mxu1 }
 0x153   : > { %9524 = vst [vmem:[#allocation26_spill] sm:$0xff] %v7696_v4 }
 0x154   : > { %9525 = vst [vmem:[#allocation27_spill] sm:$0xff] %v7698_v15  ;;  %6652 = vmatmul.msk.f32.gmra.mxu2 %vm354_vm0, %v1025_v47  ;;  %6688 = vmatmul.msk.f32.gmra.mxu3 %vm354_vm0, %v987_v14  ;;  %v1674_v15 = vmin.f32 %v1602_v50, 0.0 }
 0x155   : > { %6726 = vmatmul.msk.f32.gmra.mxu0 %vm354_vm0, %v1711_v20  ;;  %6762 = vmatmul.msk.f32.gmra.mxu1 %vm354_vm0, %v1673_v19  ;;  %v917_v19 = vld [vmem:[%s7296_s29 + $0xc1] sm:$0xff] }
 0x156   : > { %v1603_v20 = vld [vmem:[%s7296_s29 + $0xc2] sm:$0xff]  ;;  %v1027_v50 = vmax.f32 %v917_v19, 0.0 }
 0x157   : > { %v1184_v44 = vpop.f32.mrf.mxu2  ;;  %v1417_v8 = vpop.f32.mrf.mxu3 }
 0x158   : > { %v7706_v58 = vadd.f32 %v1417_v8, %v1184_v44  ;;  %v989_v8 = vmin.f32 %v917_v19, 0.0 }
 0x15a   : > { %9526 = vst [vmem:[#allocation28_spill] sm:$0xff] %v7706_v58  ;;  %v7708_v4 = vpop.f32.mrf.mxu0  ;;  %v7710_v47 = vpop.f32.mrf.mxu1 }
 0x15b   : > { %9527 = vst [vmem:[#allocation29_spill] sm:$0xff] %v7708_v4  ;;  %v1713_v4 = vmax.f32 %v1603_v20, 0.0 }
 0x15c   : > { %9528 = vst [vmem:[#allocation30_spill] sm:$0xff] %v7710_v47  ;;  %6653 = vmatmul.msk.f32.gmra.mxu2 %vm354_vm0, %v1026_v9  ;;  %6689 = vmatmul.msk.f32.gmra.mxu3 %vm354_vm0, %v988_v30  ;;  %v1675_v47 = vmin.f32 %v1603_v20, 0.0 }
 0x15d   : > { %6727 = vmatmul.msk.f32.gmra.mxu0 %vm354_vm0, %v1712_v3  ;;  %6763 = vmatmul.msk.f32.gmra.mxu1 %vm354_vm0, %v1674_v15  ;;  %v918_v3 = vld [vmem:[%s7296_s29 + $0xc9] sm:$0xff] }
 0x15e   : > { %v1604_v15 = vld [vmem:[%s7296_s29 + $0xca] sm:$0xff]  ;;  %v1028_v20 = vmax.f32 %v918_v3, 0.0 }
 0x15f   : > { %v1187_v14 = vpop.f32.mrf.mxu2  ;;  %v1420_v35 = vpop.f32.mrf.mxu3 }
 0x160   : > { %v7718_v44 = vadd.f32 %v1420_v35, %v1187_v14  ;;  %v990_v35 = vmin.f32 %v918_v3, 0.0 }
 0x162   : > { %9529 = vst [vmem:[#allocation31_spill] sm:$0xff] %v7718_v44  ;;  %v7720_v58 = vpop.f32.mrf.mxu0  ;;  %v7722_v9 = vpop.f32.mrf.mxu1 }
 0x163   : > { %9530 = vst [vmem:[#allocation32_spill] sm:$0xff] %v7720_v58  ;;  %v1714_v58 = vmax.f32 %v1604_v15, 0.0 }
 0x164   : > { %9531 = vst [vmem:[#allocation33_spill] sm:$0xff] %v7722_v9  ;;  %6654 = vmatmul.msk.f32.gmra.mxu2 %vm354_vm0, %v1027_v50  ;;  %6690 = vmatmul.msk.f32.gmra.mxu3 %vm354_vm0, %v989_v8  ;;  %v1676_v9 = vmin.f32 %v1604_v15, 0.0 }
 0x165   : > { %6728 = vmatmul.msk.f32.gmra.mxu0 %vm354_vm0, %v1713_v4  ;;  %6764 = vmatmul.msk.f32.gmra.mxu1 %vm354_vm0, %v1675_v47  ;;  %v919_v4 = vld [vmem:[%s7296_s29 + $0xd1] sm:$0xff] }
 0x166   : > { %v1605_v47 = vld [vmem:[%s7296_s29 + $0xd2] sm:$0xff]  ;;  %v1029_v15 = vmax.f32 %v919_v4, 0.0 }
 0x167   : > { %v1190_v30 = vpop.f32.mrf.mxu2  ;;  %v1423_v19 = vpop.f32.mrf.mxu3 }
 0x168   : > { %v7730_v14 = vadd.f32 %v1423_v19, %v1190_v30  ;;  %v991_v19 = vmin.f32 %v919_v4, 0.0 }
 0x16a   : > { %9532 = vst [vmem:[#allocation34_spill] sm:$0xff] %v7730_v14  ;;  %v7732_v44 = vpop.f32.mrf.mxu0  ;;  %v7734_v50 = vpop.f32.mrf.mxu1 }
 0x16b   : > { %9533 = vst [vmem:[#allocation35_spill] sm:$0xff] %v7732_v44  ;;  %v1715_v44 = vmax.f32 %v1605_v47, 0.0 }
 0x16c   : > { %9534 = vst [vmem:[#allocation36_spill] sm:$0xff] %v7734_v50  ;;  %6655 = vmatmul.msk.f32.gmra.mxu2 %vm354_vm0, %v1028_v20  ;;  %6691 = vmatmul.msk.f32.gmra.mxu3 %vm354_vm0, %v990_v35  ;;  %v1677_v50 = vmin.f32 %v1605_v47, 0.0 }
 0x16d   : > { %6729 = vmatmul.msk.f32.gmra.mxu0 %vm354_vm0, %v1714_v58  ;;  %6765 = vmatmul.msk.f32.gmra.mxu1 %vm354_vm0, %v1676_v9  ;;  %v920_v58 = vld [vmem:[%s7296_s29 + $0xd9] sm:$0xff] }
 0x16e   : > { %v1606_v9 = vld [vmem:[%s7296_s29 + $0xda] sm:$0xff]  ;;  %v1030_v47 = vmax.f32 %v920_v58, 0.0 }
 0x16f   : > { %v1193_v8 = vpop.f32.mrf.mxu2  ;;  %v1426_v3 = vpop.f32.mrf.mxu3 }
 0x170   : > { %v7742_v30 = vadd.f32 %v1426_v3, %v1193_v8  ;;  %v992_v3 = vmin.f32 %v920_v58, 0.0 }
 0x172   : > { %9535 = vst [vmem:[#allocation37_spill] sm:$0xff] %v7742_v30  ;;  %v7744_v14 = vpop.f32.mrf.mxu0  ;;  %v7746_v20 = vpop.f32.mrf.mxu1 }
 0x173   : > { %9536 = vst [vmem:[#allocation38_spill] sm:$0xff] %v7744_v14  ;;  %v1716_v14 = vmax.f32 %v1606_v9, 0.0 }
 0x174   : > { %9537 = vst [vmem:[#allocation39_spill] sm:$0xff] %v7746_v20  ;;  %6656 = vmatmul.msk.f32.gmra.mxu2 %vm354_vm0, %v1029_v15  ;;  %6692 = vmatmul.msk.f32.gmra.mxu3 %vm354_vm0, %v991_v19  ;;  %v1678_v20 = vmin.f32 %v1606_v9, 0.0 }
 0x175   : > { %6730 = vmatmul.msk.f32.gmra.mxu0 %vm354_vm0, %v1715_v44  ;;  %6766 = vmatmul.msk.f32.gmra.mxu1 %vm354_vm0, %v1677_v50  ;;  %v921_v44 = vld [vmem:[%s7296_s29 + $0xe1] sm:$0xff] }
 0x176   : > { %v1607_v50 = vld [vmem:[%s7296_s29 + $0xe2] sm:$0xff]  ;;  %v1031_v9 = vmax.f32 %v921_v44, 0.0 }
 0x177   : > { %v1196_v35 = vpop.f32.mrf.mxu2  ;;  %v1429_v4 = vpop.f32.mrf.mxu3 }
 0x178   : > { %v7754_v8 = vadd.f32 %v1429_v4, %v1196_v35  ;;  %v993_v4 = vmin.f32 %v921_v44, 0.0 }
 0x17a   : > { %9538 = vst [vmem:[#allocation40_spill] sm:$0xff] %v7754_v8  ;;  %v7756_v30 = vpop.f32.mrf.mxu0  ;;  %v7758_v15 = vpop.f32.mrf.mxu1 }
 0x17b   : > { %9539 = vst [vmem:[#allocation41_spill] sm:$0xff] %v7756_v30  ;;  %v1717_v30 = vmax.f32 %v1607_v50, 0.0 }
 0x17c   : > { %9540 = vst [vmem:[#allocation42_spill] sm:$0xff] %v7758_v15  ;;  %6657 = vmatmul.msk.f32.gmra.mxu2 %vm354_vm0, %v1030_v47  ;;  %6693 = vmatmul.msk.f32.gmra.mxu3 %vm354_vm0, %v992_v3  ;;  %v1679_v15 = vmin.f32 %v1607_v50, 0.0 }
 0x17d   : > { %6731 = vmatmul.msk.f32.gmra.mxu0 %vm354_vm0, %v1716_v14  ;;  %6767 = vmatmul.msk.f32.gmra.mxu1 %vm354_vm0, %v1678_v20  ;;  %v922_v14 = vld [vmem:[%s7296_s29 + $0xe9] sm:$0xff] }
 0x17e   : > { %v1608_v20 = vld [vmem:[%s7296_s29 + $0xea] sm:$0xff]  ;;  %v1032_v50 = vmax.f32 %v922_v14, 0.0 }
 0x17f   : > { %v1199_v19 = vpop.f32.mrf.mxu2  ;;  %v1432_v58 = vpop.f32.mrf.mxu3 }
 0x180   : > { %v7766_v35 = vadd.f32 %v1432_v58, %v1199_v19  ;;  %v994_v58 = vmin.f32 %v922_v14, 0.0 }
 0x182   : > { %9541 = vst [vmem:[#allocation43_spill] sm:$0xff] %v7766_v35  ;;  %v7768_v8 = vpop.f32.mrf.mxu0  ;;  %v7770_v47 = vpop.f32.mrf.mxu1 }
 0x183   : > { %9542 = vst [vmem:[#allocation44_spill] sm:$0xff] %v7768_v8  ;;  %v1718_v8 = vmax.f32 %v1608_v20, 0.0 }
 0x184   : > { %9543 = vst [vmem:[#allocation45_spill] sm:$0xff] %v7770_v47  ;;  %6658 = vmatmul.msk.f32.gmra.mxu2 %vm354_vm0, %v1031_v9  ;;  %6694 = vmatmul.msk.f32.gmra.mxu3 %vm354_vm0, %v993_v4  ;;  %v1680_v47 = vmin.f32 %v1608_v20, 0.0 }
 0x185   : > { %6732 = vmatmul.msk.f32.gmra.mxu0 %vm354_vm0, %v1717_v30  ;;  %6768 = vmatmul.msk.f32.gmra.mxu1 %vm354_vm0, %v1679_v15  ;;  %v923_v30 = vld [vmem:[%s7296_s29 + $0xf1] sm:$0xff] }
 0x186   : > { %v1609_v15 = vld [vmem:[%s7296_s29 + $0xf2] sm:$0xff]  ;;  %v1033_v20 = vmax.f32 %v923_v30, 0.0 }
 0x187   : > { %v1202_v3 = vpop.f32.mrf.mxu2  ;;  %v1435_v44 = vpop.f32.mrf.mxu3 }
 0x188   : > { %v7778_v19 = vadd.f32 %v1435_v44, %v1202_v3  ;;  %v995_v44 = vmin.f32 %v923_v30, 0.0 }
 0x18a   : > { %9544 = vst [vmem:[#allocation46_spill] sm:$0xff] %v7778_v19  ;;  %v7780_v35 = vpop.f32.mrf.mxu0  ;;  %v7782_v9 = vpop.f32.mrf.mxu1 }
 0x18b   : > { %9545 = vst [vmem:[#allocation47_spill] sm:$0xff] %v7780_v35  ;;  %v1719_v35 = vmax.f32 %v1609_v15, 0.0 }
 0x18c   : > { %9546 = vst [vmem:[#allocation48_spill] sm:$0xff] %v7782_v9  ;;  %6659 = vmatmul.msk.f32.gmra.mxu2 %vm354_vm0, %v1032_v50  ;;  %6695 = vmatmul.msk.f32.gmra.mxu3 %vm354_vm0, %v994_v58  ;;  %v1681_v9 = vmin.f32 %v1609_v15, 0.0 }
 0x18d   : > { %6733 = vmatmul.msk.f32.gmra.mxu0 %vm354_vm0, %v1718_v8  ;;  %6769 = vmatmul.msk.f32.gmra.mxu1 %vm354_vm0, %v1680_v47  ;;  %v924_v8 = vld [vmem:[%s7296_s29 + $0xf9] sm:$0xff] }
 0x18e   : > { %v1610_v47 = vld [vmem:[%s7296_s29 + $0xfa] sm:$0xff]  ;;  %v1034_v15 = vmax.f32 %v924_v8, 0.0 }
 0x18f   : > { %v1205_v4 = vpop.f32.mrf.mxu2  ;;  %v1438_v14 = vpop.f32.mrf.mxu3 }
 0x190   : > { %v7790_v3 = vadd.f32 %v1438_v14, %v1205_v4  ;;  %v996_v14 = vmin.f32 %v924_v8, 0.0 }
 0x192   : > { %9547 = vst [vmem:[#allocation49_spill] sm:$0xff] %v7790_v3  ;;  %v7792_v19 = vpop.f32.mrf.mxu0  ;;  %v7794_v50 = vpop.f32.mrf.mxu1 }
 0x193   : > { %9548 = vst [vmem:[#allocation50_spill] sm:$0xff] %v7792_v19  ;;  %v1720_v19 = vmax.f32 %v1610_v47, 0.0 }
 0x194   : > { %9549 = vst [vmem:[#allocation51_spill] sm:$0xff] %v7794_v50  ;;  %6660 = vmatmul.msk.f32.gmra.mxu2 %vm354_vm0, %v1033_v20  ;;  %6696 = vmatmul.msk.f32.gmra.mxu3 %vm354_vm0, %v995_v44  ;;  %v1682_v50 = vmin.f32 %v1610_v47, 0.0 }
 0x195   : > { %6734 = vmatmul.msk.f32.gmra.mxu0 %vm354_vm0, %v1719_v35  ;;  %6770 = vmatmul.msk.f32.gmra.mxu1 %vm354_vm0, %v1681_v9  ;;  %v925_v35 = vld [vmem:[%s7296_s29 + $0x101] sm:$0xff] }
 0x196   : > { %v1611_v9 = vld [vmem:[%s7296_s29 + $0x102] sm:$0xff]  ;;  %v1035_v47 = vmax.f32 %v925_v35, 0.0 }
 0x197   : > { %v1208_v58 = vpop.f32.mrf.mxu2  ;;  %v1441_v30 = vpop.f32.mrf.mxu3 }
 0x198   : > { %v7802_v4 = vadd.f32 %v1441_v30, %v1208_v58  ;;  %v997_v30 = vmin.f32 %v925_v35, 0.0  ;;  %v1612_v35 = vld [vmem:[%s7296_s29 + $0x10a] sm:$0xff] }
 0x19a   : > { %9550 = vst [vmem:[#allocation52_spill] sm:$0xff] %v7802_v4  ;;  %v7804_v3 = vpop.f32.mrf.mxu0  ;;  %v7806_v20 = vpop.f32.mrf.mxu1 }
 0x19b   : > { %9551 = vst [vmem:[#allocation53_spill] sm:$0xff] %v7804_v3  ;;  %v1721_v3 = vmax.f32 %v1611_v9, 0.0 }
 0x19c   : > { %9552 = vst [vmem:[#allocation54_spill] sm:$0xff] %v7806_v20  ;;  %6661 = vmatmul.msk.f32.gmra.mxu2 %vm354_vm0, %v1034_v15  ;;  %6697 = vmatmul.msk.f32.gmra.mxu3 %vm354_vm0, %v996_v14  ;;  %v1683_v20 = vmin.f32 %v1611_v9, 0.0  ;;  %v926_v14 = vld [vmem:[%s7296_s29 + $0x109] sm:$0xff] }
 0x19d   : > { %6735 = vmatmul.msk.f32.gmra.mxu0 %vm354_vm0, %v1720_v19  ;;  %6771 = vmatmul.msk.f32.gmra.mxu1 %vm354_vm0, %v1682_v50  ;;  %v6925_v19 = vld [vmem:[%s9498_s1 + $0x70] sm:$0xff]  ;;  %v6924_v50 = vld [vmem:[%s9498_s1 + $0x28] sm:$0xff] }
 0x19e   : > { %3908 = vmatpush.msrb.mxu2 %v6925_v19  ;;  %4141 = vmatpush.msrb.mxu3 %v6924_v50  ;;  %v927_v19 = vld [vmem:[%s7296_s29 + $0x111] sm:$0xff] }
 0x19f   : > { %v1211_v44 = vpop.f32.mrf.mxu2  ;;  %v1444_v8 = vpop.f32.mrf.mxu3  ;;  %v1613_v50 = vld [vmem:[%s7296_s29 + $0x112] sm:$0xff] }
 0x1a0   : > { %v7814_v58 = vadd.f32 %v1444_v8, %v1211_v44 }
 0x1a2   : > { %9553 = vst [vmem:[#allocation55_spill] sm:$0xff] %v7814_v58  ;;  %v7816_v4 = vpop.f32.mrf.mxu0  ;;  %v7818_v15 = vpop.f32.mrf.mxu1 }
 0x1a3   : > { %9554 = vst [vmem:[#allocation56_spill] sm:$0xff] %v7816_v4  ;;  %v1684_v4 = vmin.f32 %v1612_v35, 0.0 }
 0x1a4   : > { %9555 = vst [vmem:[#allocation57_spill] sm:$0xff] %v7818_v15  ;;  %6662 = vmatmul.msk.f32.gmra.mxu2 %vm354_vm0, %v1035_v47  ;;  %6698 = vmatmul.msk.f32.gmra.mxu3 %vm354_vm0, %v997_v30  ;;  %v1036_v47 = vmax.f32 %v926_v14, 0.0  ;;  %v998_v30 = vmin.f32 %v926_v14, 0.0  ;;  %v1722_v15 = vmax.f32 %v1612_v35, 0.0 }
 0x1a5   : > { %6736 = vmatmul.msk.f32.gmra.mxu0 %vm354_vm0, %v1721_v3  ;;  %6772 = vmatmul.msk.f32.gmra.mxu1 %vm354_vm0, %v1683_v20  ;;  %v6999_v3 = vld [vmem:[%s9498_s1 + $0x78] sm:$0xff]  ;;  %v6998_v20 = vld [vmem:[%s9498_s1 + $0x30] sm:$0xff] }
 0x1a6   : > { %4594 = vmatpush.msrb.mxu0 %v6999_v3  ;;  %4827 = vmatpush.msrb.mxu1 %v6998_v20 }
 0x1a7   : > { %v1214_v9 = vpop.f32.mrf.mxu2  ;;  %v1447_v44 = vpop.f32.mrf.mxu3 }
 0x1a8   : > { %v7832_v8 = vadd.f32 %v1447_v44, %v1214_v9  ;;  %v1037_v44 = vmax.f32 %v927_v19, 0.0 }
 0x1aa   : > { %9556 = vst [vmem:[#allocation58_spill] sm:$0xff] %v7832_v8  ;;  %v7834_v58 = vpop.f32.mrf.mxu0  ;;  %v7836_v53 = vpop.f32.mrf.mxu1 }
 0x1ab   : > { %9557 = vst [vmem:[#allocation59_spill] sm:$0xff] %v7834_v58 }
 0x1ac   : > { %9558 = vst [vmem:[#allocation60_spill] sm:$0xff] %v7836_v53  ;;  %6663 = vmatmul.msk.f32.gmra.mxu2 %vm354_vm0, %v1036_v47  ;;  %6699 = vmatmul.msk.f32.gmra.mxu3 %vm354_vm0, %v998_v30  ;;  %v999_v47 = vmin.f32 %v927_v19, 0.0  ;;  %v1723_v30 = vmax.f32 %v1613_v50, 0.0  ;;  %v1685_v53 = vmin.f32 %v1613_v50, 0.0 }
 0x1ad   : > { %6737 = vmatmul.msk.f32.gmra.mxu0 %vm354_vm0, %v1722_v15  ;;  %6773 = vmatmul.msk.f32.gmra.mxu1 %vm354_vm0, %v1684_v4  ;;  %v928_v4 = vld [vmem:[%s7296_s29 + $0x119] sm:$0xff] }
 0x1ae   : > { %v1614_v15 = vld [vmem:[%s7296_s29 + $0x11a] sm:$0xff]  ;;  %v1038_v50 = vmax.f32 %v928_v4, 0.0 }
 0x1af   : > { %v1217_v14 = vpop.f32.mrf.mxu2  ;;  %v1450_v35 = vpop.f32.mrf.mxu3 }
 0x1b0   : > { %v7850_v9 = vadd.f32 %v1450_v35, %v1217_v14  ;;  %v1000_v14 = vmin.f32 %v928_v4, 0.0  ;;  %v1724_v35 = vmax.f32 %v1614_v15, 0.0 }
 0x1b2   : > { %v7852_v58 = vpop.f32.mrf.mxu0  ;;  %v7854_v8 = vpop.f32.mrf.mxu1 }
 0x1b3   : > { %9559 = vst [vmem:[#allocation61_spill] sm:$0xff] %v7852_v58  ;;  %v1686_v58 = vmin.f32 %v1614_v15, 0.0 }
 0x1b4   : > { %9560 = vst [vmem:[#allocation62_spill] sm:$0xff] %v7854_v8  ;;  %6664 = vmatmul.msk.f32.gmra.mxu2 %vm354_vm0, %v1037_v44  ;;  %6700 = vmatmul.msk.f32.gmra.mxu3 %vm354_vm0, %v999_v47 }
 0x1b5   : > { %6738 = vmatmul.msk.f32.gmra.mxu0 %vm354_vm0, %v1723_v30  ;;  %6774 = vmatmul.msk.f32.gmra.mxu1 %vm354_vm0, %v1685_v53  ;;  %v2265_v53 = vld [vmem:[%s7296_s29 + $0x12] sm:$0xff] }
 0x1b6   : > { %v2951_v30 = vld [vmem:[%s7296_s29 + $0x13] sm:$0xff] }
 0x1b7   : > { %v1220_v3 = vpop.f32.mrf.mxu2  ;;  %v1453_v20 = vpop.f32.mrf.mxu3 }
 0x1b8   : > { %v1454_v19 = vadd.f32 %v1453_v20, %v1220_v3  ;;  %v2375_v3 = vmax.f32 %v2265_v53, 0.0  ;;  %v2337_v20 = vmin.f32 %v2265_v53, 0.0 }
 0x1ba   : > { %v7863_v8 = vadd.f32 %v1454_v19, %v7418_v54  ;;  %v7865_v44 = vpop.f32.mrf.mxu0  ;;  %v7867_v47 = vpop.f32.mrf.mxu1  ;;  %v3061_v19 = vmax.f32 %v2951_v30, 0.0 }
 0x1bb   : > { %9561 = vst [vmem:[#allocation63_spill] sm:$0xff] %v7865_v44  ;;  %v3023_v44 = vmin.f32 %v2951_v30, 0.0 }
 0x1bc   : > { %9562 = vst [vmem:[#allocation64_spill] sm:$0xff] %v7867_v47  ;;  %6665 = vmatmul.msk.f32.gmra.mxu2 %vm354_vm0, %v1038_v50  ;;  %6701 = vmatmul.msk.f32.gmra.mxu3 %vm354_vm0, %v1000_v14 }
 0x1bd   : > { %6739 = vmatmul.msk.f32.gmra.mxu0 %vm354_vm0, %v1724_v35  ;;  %6775 = vmatmul.msk.f32.gmra.mxu1 %vm354_vm0, %v1686_v58  ;;  %v2266_v58 = vld [vmem:[%s7296_s29 + $0x1a] sm:$0xff] }
 0x1be   : > { %v2952_v35 = vld [vmem:[%s7296_s29 + $0x1b] sm:$0xff] }
 0x1bf   : > { %v1223_v4 = vpop.f32.mrf.mxu2  ;;  %v1456_v15 = vpop.f32.mrf.mxu3 }
 0x1c0   : > { %v1457_v54 = vadd.f32 %v1456_v15, %v1223_v4  ;;  %v2376_v4 = vmax.f32 %v2266_v58, 0.0  ;;  %v2338_v15 = vmin.f32 %v2266_v58, 0.0 }
 0x1c2   : > { %v7876_v47 = vadd.f32 %v1457_v54, %v7430_v1  ;;  %v7878_v50 = vpop.f32.mrf.mxu0  ;;  %v7880_v14 = vpop.f32.mrf.mxu1  ;;  %v3062_v54 = vmax.f32 %v2952_v35, 0.0 }
 0x1c3   : > { %9563 = vst [vmem:[#allocation65_spill] sm:$0xff] %v7878_v50  ;;  %v3024_v50 = vmin.f32 %v2952_v35, 0.0 }
 0x1c4   : > { %9564 = vst [vmem:[#allocation66_spill] sm:$0xff] %v7880_v14  ;;  %6778 = vmatmul.msk.f32.vlgmr.msra.gmra.mxu2 %vm354_vm0, %v2375_v3  ;;  %6814 = vmatmul.msk.f32.vlgmr.msra.gmra.mxu3 %vm354_vm0, %v2337_v20 }
 0x1c5   : > { %6852 = vmatmul.msk.f32.vlgmr.msra.gmra.mxu0 %vm354_vm0, %v3061_v19  ;;  %6888 = vmatmul.msk.f32.vlgmr.msra.gmra.mxu1 %vm354_vm0, %v3023_v44  ;;  %v2267_v44 = vld [vmem:[%s7296_s29 + $0x22] sm:$0xff] }
 0x1c6   : > { %v2953_v19 = vld [vmem:[%s7296_s29 + $0x23] sm:$0xff] }
 0x1c7   : > { %v1226_v53 = vpop.f32.mrf.mxu2  ;;  %v1459_v30 = vpop.f32.mrf.mxu3 }
 0x1c8   : > { %v1460_v1 = vadd.f32 %v1459_v30, %v1226_v53  ;;  %v2377_v53 = vmax.f32 %v2267_v44, 0.0  ;;  %v2339_v30 = vmin.f32 %v2267_v44, 0.0 }
 0x1ca   : > { %v7889_v14 = vadd.f32 %v1460_v1, %v7442_v12  ;;  %v7891_v3 = vpop.f32.mrf.mxu0  ;;  %v7893_v20 = vpop.f32.mrf.mxu1  ;;  %v3063_v1 = vmax.f32 %v2953_v19, 0.0 }
 0x1cb   : > { %9565 = vst [vmem:[#allocation67_spill] sm:$0xff] %v7891_v3  ;;  %v3025_v3 = vmin.f32 %v2953_v19, 0.0 }
 0x1cc   : > { %9566 = vst [vmem:[#allocation68_spill] sm:$0xff] %v7893_v20  ;;  %6779 = vmatmul.msk.f32.gmra.mxu2 %vm354_vm0, %v2376_v4  ;;  %6815 = vmatmul.msk.f32.gmra.mxu3 %vm354_vm0, %v2338_v15 }
 0x1cd   : > { %6853 = vmatmul.msk.f32.gmra.mxu0 %vm354_vm0, %v3062_v54  ;;  %6889 = vmatmul.msk.f32.gmra.mxu1 %vm354_vm0, %v3024_v50  ;;  %v2268_v50 = vld [vmem:[%s7296_s29 + $0x2a] sm:$0xff] }
 0x1ce   : > { %v2954_v54 = vld [vmem:[%s7296_s29 + $0x2b] sm:$0xff] }
 0x1cf   : > { %v1229_v58 = vpop.f32.mrf.mxu2  ;;  %v1462_v35 = vpop.f32.mrf.mxu3 }
 0x1d0   : > { %v1463_v12 = vadd.f32 %v1462_v35, %v1229_v58  ;;  %v2378_v58 = vmax.f32 %v2268_v50, 0.0  ;;  %v2340_v35 = vmin.f32 %v2268_v50, 0.0 }
 0x1d2   : > { %v7902_v20 = vadd.f32 %v1463_v12, %v7454_v23  ;;  %v7904_v4 = vpop.f32.mrf.mxu0  ;;  %v7906_v15 = vpop.f32.mrf.mxu1  ;;  %v3064_v12 = vmax.f32 %v2954_v54, 0.0 }
 0x1d3   : > { %9567 = vst [vmem:[#allocation69_spill] sm:$0xff] %v7904_v4  ;;  %v3026_v4 = vmin.f32 %v2954_v54, 0.0 }
 0x1d4   : > { %9568 = vst [vmem:[#allocation70_spill] sm:$0xff] %v7906_v15  ;;  %6780 = vmatmul.msk.f32.gmra.mxu2 %vm354_vm0, %v2377_v53  ;;  %6816 = vmatmul.msk.f32.gmra.mxu3 %vm354_vm0, %v2339_v30 }
 0x1d5   : > { %6854 = vmatmul.msk.f32.gmra.mxu0 %vm354_vm0, %v3063_v1  ;;  %6890 = vmatmul.msk.f32.gmra.mxu1 %vm354_vm0, %v3025_v3  ;;  %v2269_v3 = vld [vmem:[%s7296_s29 + $0x32] sm:$0xff] }
 0x1d6   : > { %v2955_v1 = vld [vmem:[%s7296_s29 + $0x33] sm:$0xff] }
 0x1d7   : > { %v1232_v44 = vpop.f32.mrf.mxu2  ;;  %v1465_v19 = vpop.f32.mrf.mxu3 }
 0x1d8   : > { %v1466_v23 = vadd.f32 %v1465_v19, %v1232_v44  ;;  %v2379_v44 = vmax.f32 %v2269_v3, 0.0  ;;  %v2341_v19 = vmin.f32 %v2269_v3, 0.0 }
 0x1da   : > { %v7915_v15 = vadd.f32 %v1466_v23, %v7466_v34  ;;  %v7917_v53 = vpop.f32.mrf.mxu0  ;;  %v7919_v30 = vpop.f32.mrf.mxu1  ;;  %v3065_v23 = vmax.f32 %v2955_v1, 0.0 }
 0x1db   : > { %9569 = vst [vmem:[#allocation71_spill] sm:$0xff] %v7917_v53  ;;  %v3027_v53 = vmin.f32 %v2955_v1, 0.0 }
 0x1dc   : > { %9570 = vst [vmem:[#allocation72_spill] sm:$0xff] %v7919_v30  ;;  %6781 = vmatmul.msk.f32.gmra.mxu2 %vm354_vm0, %v2378_v58  ;;  %6817 = vmatmul.msk.f32.gmra.mxu3 %vm354_vm0, %v2340_v35 }
 0x1dd   : > { %6855 = vmatmul.msk.f32.gmra.mxu0 %vm354_vm0, %v3064_v12  ;;  %6891 = vmatmul.msk.f32.gmra.mxu1 %vm354_vm0, %v3026_v4  ;;  %v2270_v4 = vld [vmem:[%s7296_s29 + $0x3a] sm:$0xff] }
 0x1de   : > { %v2956_v12 = vld [vmem:[%s7296_s29 + $0x3b] sm:$0xff] }
 0x1df   : > { %v1235_v50 = vpop.f32.mrf.mxu2  ;;  %v1468_v54 = vpop.f32.mrf.mxu3 }
 0x1e0   : > { %v1469_v34 = vadd.f32 %v1468_v54, %v1235_v50  ;;  %v2380_v50 = vmax.f32 %v2270_v4, 0.0  ;;  %v2342_v54 = vmin.f32 %v2270_v4, 0.0 }
 0x1e2   : > { %v7928_v30 = vadd.f32 %v1469_v34, %v7478_v45  ;;  %v7930_v58 = vpop.f32.mrf.mxu0  ;;  %v7932_v35 = vpop.f32.mrf.mxu1  ;;  %v3066_v34 = vmax.f32 %v2956_v12, 0.0 }
 0x1e3   : > { %9571 = vst [vmem:[#allocation73_spill] sm:$0xff] %v7930_v58  ;;  %v3028_v58 = vmin.f32 %v2956_v12, 0.0 }
 0x1e4   : > { %9572 = vst [vmem:[#allocation74_spill] sm:$0xff] %v7932_v35  ;;  %6782 = vmatmul.msk.f32.gmra.mxu2 %vm354_vm0, %v2379_v44  ;;  %6818 = vmatmul.msk.f32.gmra.mxu3 %vm354_vm0, %v2341_v19 }
 0x1e5   : > { %6856 = vmatmul.msk.f32.gmra.mxu0 %vm354_vm0, %v3065_v23  ;;  %6892 = vmatmul.msk.f32.gmra.mxu1 %vm354_vm0, %v3027_v53  ;;  %v2271_v53 = vld [vmem:[%s7296_s29 + $0x42] sm:$0xff] }
 0x1e6   : > { %v2957_v23 = vld [vmem:[%s7296_s29 + $0x43] sm:$0xff] }
 0x1e7   : > { %v1238_v3 = vpop.f32.mrf.mxu2  ;;  %v1471_v1 = vpop.f32.mrf.mxu3 }
 0x1e8   : > { %v1472_v45 = vadd.f32 %v1471_v1, %v1238_v3  ;;  %v2381_v3 = vmax.f32 %v2271_v53, 0.0  ;;  %v2343_v1 = vmin.f32 %v2271_v53, 0.0 }
 0x1ea   : > { %v7941_v35 = vadd.f32 %v1472_v45, %v7490_v61  ;;  %v7943_v44 = vpop.f32.mrf.mxu0  ;;  %v7945_v19 = vpop.f32.mrf.mxu1  ;;  %v3067_v45 = vmax.f32 %v2957_v23, 0.0 }
 0x1eb   : > { %9573 = vst [vmem:[#allocation75_spill] sm:$0xff] %v7943_v44  ;;  %v3029_v44 = vmin.f32 %v2957_v23, 0.0 }
 0x1ec   : > { %9574 = vst [vmem:[#allocation76_spill] sm:$0xff] %v7945_v19  ;;  %6783 = vmatmul.msk.f32.gmra.mxu2 %vm354_vm0, %v2380_v50  ;;  %6819 = vmatmul.msk.f32.gmra.mxu3 %vm354_vm0, %v2342_v54 }
 0x1ed   : > { %6857 = vmatmul.msk.f32.gmra.mxu0 %vm354_vm0, %v3066_v34  ;;  %6893 = vmatmul.msk.f32.gmra.mxu1 %vm354_vm0, %v3028_v58  ;;  %v2272_v58 = vld [vmem:[%s7296_s29 + $0x4a] sm:$0xff] }
 0x1ee   : > { %v2958_v34 = vld [vmem:[%s7296_s29 + $0x4b] sm:$0xff] }
 0x1ef   : > { %v1241_v4 = vpop.f32.mrf.mxu2  ;;  %v1474_v12 = vpop.f32.mrf.mxu3 }
 0x1f0   : > { %v1475_v61 = vadd.f32 %v1474_v12, %v1241_v4  ;;  %v2382_v4 = vmax.f32 %v2272_v58, 0.0  ;;  %v2344_v12 = vmin.f32 %v2272_v58, 0.0 }
 0x1f2   : > { %v7954_v19 = vadd.f32 %v1475_v61, %v7502_v11  ;;  %v7956_v50 = vpop.f32.mrf.mxu0  ;;  %v7958_v54 = vpop.f32.mrf.mxu1  ;;  %v3068_v61 = vmax.f32 %v2958_v34, 0.0 }
 0x1f3   : > { %9575 = vst [vmem:[#allocation77_spill] sm:$0xff] %v7956_v50  ;;  %v3030_v50 = vmin.f32 %v2958_v34, 0.0 }
 0x1f4   : > { %9576 = vst [vmem:[#allocation78_spill] sm:$0xff] %v7958_v54  ;;  %6784 = vmatmul.msk.f32.gmra.mxu2 %vm354_vm0, %v2381_v3  ;;  %6820 = vmatmul.msk.f32.gmra.mxu3 %vm354_vm0, %v2343_v1 }
 0x1f5   : > { %6858 = vmatmul.msk.f32.gmra.mxu0 %vm354_vm0, %v3067_v45  ;;  %6894 = vmatmul.msk.f32.gmra.mxu1 %vm354_vm0, %v3029_v44  ;;  %v2273_v44 = vld [vmem:[%s7296_s29 + $0x52] sm:$0xff] }
 0x1f6   : > { %v2959_v45 = vld [vmem:[%s7296_s29 + $0x53] sm:$0xff] }
 0x1f7   : > { %v1244_v53 = vpop.f32.mrf.mxu2  ;;  %v1477_v23 = vpop.f32.mrf.mxu3 }
 0x1f8   : > { %v1478_v11 = vadd.f32 %v1477_v23, %v1244_v53  ;;  %v2383_v53 = vmax.f32 %v2273_v44, 0.0  ;;  %v2345_v23 = vmin.f32 %v2273_v44, 0.0 }
 0x1fa   : > { %v7967_v54 = vadd.f32 %v1478_v11, %v7514_v26  ;;  %v7969_v3 = vpop.f32.mrf.mxu0  ;;  %v7971_v1 = vpop.f32.mrf.mxu1  ;;  %v3069_v11 = vmax.f32 %v2959_v45, 0.0 }
 0x1fb   : > { %9577 = vst [vmem:[#allocation79_spill] sm:$0xff] %v7969_v3  ;;  %v3031_v3 = vmin.f32 %v2959_v45, 0.0 }
 0x1fc   : > { %9578 = vst [vmem:[#allocation80_spill] sm:$0xff] %v7971_v1  ;;  %6785 = vmatmul.msk.f32.gmra.mxu2 %vm354_vm0, %v2382_v4  ;;  %6821 = vmatmul.msk.f32.gmra.mxu3 %vm354_vm0, %v2344_v12 }
 0x1fd   : > { %6859 = vmatmul.msk.f32.gmra.mxu0 %vm354_vm0, %v3068_v61  ;;  %6895 = vmatmul.msk.f32.gmra.mxu1 %vm354_vm0, %v3030_v50  ;;  %v2274_v50 = vld [vmem:[%s7296_s29 + $0x5a] sm:$0xff] }
 0x1fe   : > { %v2960_v61 = vld [vmem:[%s7296_s29 + $0x5b] sm:$0xff] }
 0x1ff   : > { %v1247_v58 = vpop.f32.mrf.mxu2  ;;  %v1480_v34 = vpop.f32.mrf.mxu3 }
 0x200   : > { %v1481_v26 = vadd.f32 %v1480_v34, %v1247_v58  ;;  %v2384_v58 = vmax.f32 %v2274_v50, 0.0  ;;  %v2346_v34 = vmin.f32 %v2274_v50, 0.0 }
 0x202   : > { %v7980_v1 = vadd.f32 %v1481_v26, %v7526_v42  ;;  %v7982_v4 = vpop.f32.mrf.mxu0  ;;  %v7984_v12 = vpop.f32.mrf.mxu1  ;;  %v3070_v26 = vmax.f32 %v2960_v61, 0.0 }
 0x203   : > { %9579 = vst [vmem:[#allocation81_spill] sm:$0xff] %v7982_v4  ;;  %v3032_v4 = vmin.f32 %v2960_v61, 0.0 }
 0x204   : > { %9580 = vst [vmem:[#allocation82_spill] sm:$0xff] %v7984_v12  ;;  %6786 = vmatmul.msk.f32.gmra.mxu2 %vm354_vm0, %v2383_v53  ;;  %6822 = vmatmul.msk.f32.gmra.mxu3 %vm354_vm0, %v2345_v23 }
 0x205   : > { %6860 = vmatmul.msk.f32.gmra.mxu0 %vm354_vm0, %v3069_v11  ;;  %6896 = vmatmul.msk.f32.gmra.mxu1 %vm354_vm0, %v3031_v3  ;;  %v2275_v3 = vld [vmem:[%s7296_s29 + $0x62] sm:$0xff] }
 0x206   : > { %v2961_v11 = vld [vmem:[%s7296_s29 + $0x63] sm:$0xff] }
 0x207   : > { %v1250_v44 = vpop.f32.mrf.mxu2  ;;  %v1483_v45 = vpop.f32.mrf.mxu3 }
 0x208   : > { %v1484_v42 = vadd.f32 %v1483_v45, %v1250_v44  ;;  %v2385_v44 = vmax.f32 %v2275_v3, 0.0  ;;  %v2347_v45 = vmin.f32 %v2275_v3, 0.0 }
 0x20a   : > { %v7993_v12 = vadd.f32 %v1484_v42, %v7538_v62  ;;  %v7995_v53 = vpop.f32.mrf.mxu0  ;;  %v7997_v23 = vpop.f32.mrf.mxu1  ;;  %v3071_v42 = vmax.f32 %v2961_v11, 0.0 }
 0x20b   : > { %9581 = vst [vmem:[#allocation83_spill] sm:$0xff] %v7995_v53  ;;  %v3033_v53 = vmin.f32 %v2961_v11, 0.0 }
 0x20c   : > { %9582 = vst [vmem:[#allocation84_spill] sm:$0xff] %v7997_v23  ;;  %6787 = vmatmul.msk.f32.gmra.mxu2 %vm354_vm0, %v2384_v58  ;;  %6823 = vmatmul.msk.f32.gmra.mxu3 %vm354_vm0, %v2346_v34 }
 0x20d   : > { %6861 = vmatmul.msk.f32.gmra.mxu0 %vm354_vm0, %v3070_v26  ;;  %6897 = vmatmul.msk.f32.gmra.mxu1 %vm354_vm0, %v3032_v4  ;;  %v2276_v4 = vld [vmem:[%s7296_s29 + $0x6a] sm:$0xff] }
 0x20e   : > { %v2962_v26 = vld [vmem:[%s7296_s29 + $0x6b] sm:$0xff] }
 0x20f   : > { %v1253_v50 = vpop.f32.mrf.mxu2  ;;  %v1486_v61 = vpop.f32.mrf.mxu3 }
 0x210   : > { %v1487_v62 = vadd.f32 %v1486_v61, %v1253_v50  ;;  %v2386_v50 = vmax.f32 %v2276_v4, 0.0  ;;  %v2348_v61 = vmin.f32 %v2276_v4, 0.0 }
 0x212   : > { %v8006_v23 = vadd.f32 %v1487_v62, %v7550_v16  ;;  %v8008_v58 = vpop.f32.mrf.mxu0  ;;  %v8010_v34 = vpop.f32.mrf.mxu1  ;;  %v3072_v62 = vmax.f32 %v2962_v26, 0.0 }
 0x213   : > { %9583 = vst [vmem:[#allocation85_spill] sm:$0xff] %v8008_v58  ;;  %v3034_v58 = vmin.f32 %v2962_v26, 0.0 }
 0x214   : > { %9584 = vst [vmem:[#allocation86_spill] sm:$0xff] %v8010_v34  ;;  %6788 = vmatmul.msk.f32.gmra.mxu2 %vm354_vm0, %v2385_v44  ;;  %6824 = vmatmul.msk.f32.gmra.mxu3 %vm354_vm0, %v2347_v45 }
 0x215   : > { %6862 = vmatmul.msk.f32.gmra.mxu0 %vm354_vm0, %v3071_v42  ;;  %6898 = vmatmul.msk.f32.gmra.mxu1 %vm354_vm0, %v3033_v53  ;;  %v2277_v53 = vld [vmem:[%s7296_s29 + $0x72] sm:$0xff] }
 0x216   : > { %v2963_v42 = vld [vmem:[%s7296_s29 + $0x73] sm:$0xff] }
 0x217   : > { %v1256_v3 = vpop.f32.mrf.mxu2  ;;  %v1489_v11 = vpop.f32.mrf.mxu3 }
 0x218   : > { %v1490_v16 = vadd.f32 %v1489_v11, %v1256_v3  ;;  %v2387_v3 = vmax.f32 %v2277_v53, 0.0  ;;  %v2349_v11 = vmin.f32 %v2277_v53, 0.0 }
 0x21a   : > { %v8019_v34 = vadd.f32 %v1490_v16, %v7562_v38  ;;  %v8021_v44 = vpop.f32.mrf.mxu0  ;;  %v8023_v45 = vpop.f32.mrf.mxu1  ;;  %v3073_v16 = vmax.f32 %v2963_v42, 0.0 }
 0x21b   : > { %9585 = vst [vmem:[#allocation87_spill] sm:$0xff] %v8021_v44  ;;  %v3035_v44 = vmin.f32 %v2963_v42, 0.0 }
 0x21c   : > { %9586 = vst [vmem:[#allocation88_spill] sm:$0xff] %v8023_v45  ;;  %6789 = vmatmul.msk.f32.gmra.mxu2 %vm354_vm0, %v2386_v50  ;;  %6825 = vmatmul.msk.f32.gmra.mxu3 %vm354_vm0, %v2348_v61 }
 0x21d   : > { %6863 = vmatmul.msk.f32.gmra.mxu0 %vm354_vm0, %v3072_v62  ;;  %6899 = vmatmul.msk.f32.gmra.mxu1 %vm354_vm0, %v3034_v58  ;;  %v2278_v58 = vld [vmem:[%s7296_s29 + $0x7a] sm:$0xff] }
 0x21e   : > { %v2964_v62 = vld [vmem:[%s7296_s29 + $0x7b] sm:$0xff] }
 0x21f   : > { %v1259_v4 = vpop.f32.mrf.mxu2  ;;  %v1492_v26 = vpop.f32.mrf.mxu3 }
 0x220   : > { %v1493_v38 = vadd.f32 %v1492_v26, %v1259_v4  ;;  %v2388_v4 = vmax.f32 %v2278_v58, 0.0  ;;  %v2350_v26 = vmin.f32 %v2278_v58, 0.0 }
 0x222   : > { %v8032_v45 = vadd.f32 %v1493_v38, %v7574_v0  ;;  %v8034_v50 = vpop.f32.mrf.mxu0  ;;  %v8036_v61 = vpop.f32.mrf.mxu1  ;;  %v3074_v38 = vmax.f32 %v2964_v62, 0.0 }
 0x223   : > { %9587 = vst [vmem:[#allocation89_spill] sm:$0xff] %v8034_v50  ;;  %v3036_v50 = vmin.f32 %v2964_v62, 0.0 }
 0x224   : > { %9588 = vst [vmem:[#allocation90_spill] sm:$0xff] %v8036_v61  ;;  %6790 = vmatmul.msk.f32.gmra.mxu2 %vm354_vm0, %v2387_v3  ;;  %6826 = vmatmul.msk.f32.gmra.mxu3 %vm354_vm0, %v2349_v11 }
 0x225   : > { %6864 = vmatmul.msk.f32.gmra.mxu0 %vm354_vm0, %v3073_v16  ;;  %6900 = vmatmul.msk.f32.gmra.mxu1 %vm354_vm0, %v3035_v44  ;;  %v2279_v44 = vld [vmem:[%s7296_s29 + $0x82] sm:$0xff] }
 0x226   : > { %v2965_v16 = vld [vmem:[%s7296_s29 + $0x83] sm:$0xff] }
 0x227   : > { %v1262_v53 = vpop.f32.mrf.mxu2  ;;  %v1495_v42 = vpop.f32.mrf.mxu3 }
 0x228   : > { %v1496_v0 = vadd.f32 %v1495_v42, %v1262_v53  ;;  %v2389_v53 = vmax.f32 %v2279_v44, 0.0  ;;  %v2351_v42 = vmin.f32 %v2279_v44, 0.0 }
 0x22a   : > { %v8045_v61 = vadd.f32 %v1496_v0, %v7586_v31  ;;  %v8047_v3 = vpop.f32.mrf.mxu0  ;;  %v8049_v11 = vpop.f32.mrf.mxu1  ;;  %v3075_v0 = vmax.f32 %v2965_v16, 0.0 }
 0x22b   : > { %9589 = vst [vmem:[#allocation91_spill] sm:$0xff] %v8047_v3  ;;  %v3037_v3 = vmin.f32 %v2965_v16, 0.0 }
 0x22c   : > { %9590 = vst [vmem:[#allocation92_spill] sm:$0xff] %v8049_v11  ;;  %6791 = vmatmul.msk.f32.gmra.mxu2 %vm354_vm0, %v2388_v4  ;;  %6827 = vmatmul.msk.f32.gmra.mxu3 %vm354_vm0, %v2350_v26 }
 0x22d   : > { %6865 = vmatmul.msk.f32.gmra.mxu0 %vm354_vm0, %v3074_v38  ;;  %6901 = vmatmul.msk.f32.gmra.mxu1 %vm354_vm0, %v3036_v50  ;;  %v2280_v50 = vld [vmem:[%s7296_s29 + $0x8a] sm:$0xff] }
 0x22e   : > { %v2966_v38 = vld [vmem:[%s7296_s29 + $0x8b] sm:$0xff] }
 0x22f   : > { %v1265_v58 = vpop.f32.mrf.mxu2  ;;  %v1498_v62 = vpop.f32.mrf.mxu3 }
 0x230   : > { %v1499_v31 = vadd.f32 %v1498_v62, %v1265_v58  ;;  %v2390_v58 = vmax.f32 %v2280_v50, 0.0  ;;  %v2352_v62 = vmin.f32 %v2280_v50, 0.0 }
 0x232   : > { %v8058_v11 = vadd.f32 %v1499_v31, %v7598_v63  ;;  %v8060_v4 = vpop.f32.mrf.mxu0  ;;  %v8062_v26 = vpop.f32.mrf.mxu1  ;;  %v3076_v31 = vmax.f32 %v2966_v38, 0.0 }
 0x233   : > { %9591 = vst [vmem:[#allocation93_spill] sm:$0xff] %v8060_v4  ;;  %v3038_v4 = vmin.f32 %v2966_v38, 0.0 }
 0x234   : > { %9592 = vst [vmem:[#allocation94_spill] sm:$0xff] %v8062_v26  ;;  %6792 = vmatmul.msk.f32.gmra.mxu2 %vm354_vm0, %v2389_v53  ;;  %6828 = vmatmul.msk.f32.gmra.mxu3 %vm354_vm0, %v2351_v42 }
 0x235   : > { %6866 = vmatmul.msk.f32.gmra.mxu0 %vm354_vm0, %v3075_v0  ;;  %6902 = vmatmul.msk.f32.gmra.mxu1 %vm354_vm0, %v3037_v3  ;;  %v2281_v3 = vld [vmem:[%s7296_s29 + $0x92] sm:$0xff] }
 0x236   : > { %v2967_v0 = vld [vmem:[%s7296_s29 + $0x93] sm:$0xff] }
 0x237   : > { %v1268_v44 = vpop.f32.mrf.mxu2  ;;  %v1501_v16 = vpop.f32.mrf.mxu3 }
 0x238   : > { %v1502_v63 = vadd.f32 %v1501_v16, %v1268_v44  ;;  %v2353_v16 = vmin.f32 %v2281_v3, 0.0 }
 0x23a   : > { %v8071_v26 = vadd.f32 %v1502_v63, %v7610_v37  ;;  %v8073_v53 = vpop.f32.mrf.mxu0  ;;  %v8075_v42 = vpop.f32.mrf.mxu1  ;;  %v2391_v37 = vmax.f32 %v2281_v3, 0.0  ;;  %v3077_v63 = vmax.f32 %v2967_v0, 0.0  ;;  %v2282_v3 = vld [vmem:[%s7296_s29 + $0x9a] sm:$0xff] }
 0x23b   : > { %9593 = vst [vmem:[#allocation95_spill] sm:$0xff] %v8073_v53  ;;  %v3039_v53 = vmin.f32 %v2967_v0, 0.0 }
 0x23c   : > { %9594 = vst [vmem:[#allocation96_spill] sm:$0xff] %v8075_v42  ;;  %6793 = vmatmul.msk.f32.gmra.mxu2 %vm354_vm0, %v2390_v58  ;;  %6829 = vmatmul.msk.f32.gmra.mxu3 %vm354_vm0, %v2352_v62  ;;  %v714_v58 = vadd.f32 %v7410_v49, %v7408_v48  ;;  %v2968_v48 = vld [vmem:[%s7296_s29 + $0x9b] sm:$0xff] }
 0x23d   : > { %6867 = vmatmul.msk.f32.gmra.mxu0 %vm354_vm0, %v3076_v31  ;;  %6903 = vmatmul.msk.f32.gmra.mxu1 %vm354_vm0, %v3038_v4 }
 0x23e   : > { %v1507_v4 = vadd.f32 %v7634_v13, %v714_v58  ;;  %v2392_v13 = vmax.f32 %v2282_v3, 0.0  ;;  %v3078_v58 = vmax.f32 %v2968_v48, 0.0 }
 0x23f   : > { %v1271_v50 = vpop.f32.mrf.mxu2  ;;  %v1504_v38 = vpop.f32.mrf.mxu3 }
 0x240   : > { %v1505_v44 = vadd.f32 %v1504_v38, %v1271_v50  ;;  %v2086_v50 = vadd.f32 %v7626_v41, %v7624_v22  ;;  %v3040_v22 = vmin.f32 %v2968_v48, 0.0  ;;  %v717_v41 = vadd.f32 %v7422_v60, %v7420_v59  ;;  %v2969_v59 = vld [vmem:[%s7296_s29 + $0xa3] sm:$0xff] }
 0x242   : > { %v8086_v62 = vadd.f32 %v1505_v44, %v7622_v32  ;;  %v8088_v42 = vpop.f32.mrf.mxu0  ;;  %v8090_v31 = vpop.f32.mrf.mxu1  ;;  %v2193_v0 = vadd.f32 %v2086_v50, %v1507_v4  ;;  %v2354_v44 = vmin.f32 %v2282_v3, 0.0  ;;  %v2089_v4 = vadd.f32 %v7638_v25, %v7636_v43  ;;  %v2283_v50 = vld [vmem:[%s7296_s29 + $0xa2] sm:$0xff] }
 0x243   : > { %v3041_v43 = vmin.f32 %v2969_v59, 0.0  ;;  %v720_v25 = vadd.f32 %v7434_v7, %v7432_v6  ;;  %v2970_v6 = vld [vmem:[%s7296_s29 + $0xab] sm:$0xff] }
 0x244   : > { %6794 = vmatmul.msk.f32.gmra.mxu2 %vm354_vm0, %v2391_v37  ;;  %6830 = vmatmul.msk.f32.gmra.mxu3 %vm354_vm0, %v2353_v16 }
 0x245   : > { %6868 = vmatmul.msk.f32.gmra.mxu0 %vm354_vm0, %v3077_v63  ;;  %6904 = vmatmul.msk.f32.gmra.mxu1 %vm354_vm0, %v3039_v53  ;;  %v1508_v53 = vadd.f32 %v7646_v57, %v717_v41  ;;  %v2393_v57 = vmax.f32 %v2283_v50, 0.0  ;;  %v2284_v41 = vld [vmem:[%s7296_s29 + $0xaa] sm:$0xff] }
 0x247   : > { %v2538_v49 = vpop.f32.mrf.mxu2  ;;  %v2771_v32 = vpop.f32.mrf.mxu3  ;;  %v2194_v48 = vadd.f32 %v2089_v4, %v1508_v53 }
 0x248   : > { %v2772_v38 = vadd.f32 %v2771_v32, %v2538_v49  ;;  %v2355_v32 = vmin.f32 %v2283_v50, 0.0 }
 0x24a   : > { %v8103_v37 = vadd.f32 %v2772_v38, %v2193_v0  ;;  %v8105_v16 = vpop.f32.mrf.mxu0  ;;  %v8107_v63 = vpop.f32.mrf.mxu1  ;;  %v3079_v0 = vmax.f32 %v2969_v59, 0.0  ;;  %v2356_v59 = vmin.f32 %v2284_v41, 0.0 }
 0x24c   : > { %6795 = vmatmul.msk.f32.gmra.mxu2 %vm354_vm0, %v2392_v13  ;;  %6831 = vmatmul.msk.f32.gmra.mxu3 %vm354_vm0, %v2354_v44 }
 0x24d   : > { %6869 = vmatmul.msk.f32.gmra.mxu0 %vm354_vm0, %v3078_v58  ;;  %6905 = vmatmul.msk.f32.gmra.mxu1 %vm354_vm0, %v3040_v22  ;;  %v1509_v58 = vadd.f32 %v7658_v36, %v720_v25  ;;  %v2092_v22 = vadd.f32 %v7650_v10, %v7648_v55  ;;  %v2394_v36 = vmax.f32 %v2284_v41, 0.0  ;;  %v3042_v55 = vmin.f32 %v2970_v6, 0.0 }
 0x24e   : > { %v723_v10 = vadd.f32 %v7446_v18, %v7444_v17  ;;  %v2971_v17 = vld [vmem:[%s7296_s29 + $0xb3] sm:$0xff] }
 0x24f   : > { %v2541_v60 = vpop.f32.mrf.mxu2  ;;  %v2774_v3 = vpop.f32.mrf.mxu3  ;;  %v2195_v4 = vadd.f32 %v2092_v22, %v1509_v58  ;;  %v3081_v41 = vmax.f32 %v2971_v17, 0.0 }
 0x250   : > { %v2775_v49 = vadd.f32 %v2774_v3, %v2541_v60  ;;  %v3080_v60 = vmax.f32 %v2970_v6, 0.0 }
 0x252   : > { %v8120_v38 = vadd.f32 %v2775_v49, %v2194_v48  ;;  %v8122_v13 = vpop.f32.mrf.mxu0  ;;  %v8124_v44 = vpop.f32.mrf.mxu1 }
 0x254   : > { %6796 = vmatmul.msk.f32.gmra.mxu2 %vm354_vm0, %v2393_v57  ;;  %6832 = vmatmul.msk.f32.gmra.mxu3 %vm354_vm0, %v2355_v32  ;;  %v1510_v57 = vadd.f32 %v7670_v24, %v723_v10  ;;  %v2095_v32 = vadd.f32 %v7662_v56, %v7660_v27  ;;  %v3043_v27 = vmin.f32 %v2971_v17, 0.0  ;;  %v726_v56 = vadd.f32 %v7458_v29, %v7456_v28  ;;  %v2972_v28 = vld [vmem:[%s7296_s29 + $0xbb] sm:$0xff] }
 0x255   : > { %6870 = vmatmul.msk.f32.gmra.mxu0 %vm354_vm0, %v3079_v0  ;;  %6906 = vmatmul.msk.f32.gmra.mxu1 %vm354_vm0, %v3041_v43  ;;  %v2285_v0 = vld [vmem:[%s7296_s29 + $0xb2] sm:$0xff] }
 0x256   : > { %v2196_v25 = vadd.f32 %v2095_v32, %v1510_v57  ;;  %v2395_v24 = vmax.f32 %v2285_v0, 0.0  ;;  %v2357_v22 = vmin.f32 %v2285_v0, 0.0  ;;  %v3082_v57 = vmax.f32 %v2972_v28, 0.0 }
 0x257   : > { %v2544_v7 = vpop.f32.mrf.mxu2  ;;  %v2777_v53 = vpop.f32.mrf.mxu3 }
 0x258   : > { %v2778_v50 = vadd.f32 %v2777_v53, %v2544_v7 }
 0x25a   : > { %v8137_v3 = vadd.f32 %v2778_v50, %v2195_v4  ;;  %v8139_v48 = vpop.f32.mrf.mxu0  ;;  %v8141_v49 = vpop.f32.mrf.mxu1  ;;  %v1511_v4 = vadd.f32 %v7682_v5, %v726_v56  ;;  %v2098_v50 = vadd.f32 %v7674_v2, %v7672_v51  ;;  %v3044_v51 = vmin.f32 %v2972_v28, 0.0  ;;  %v9596_v28 = vld [vmem:[#allocation28_spill] sm:$0xff] }
 0x25b   : > { %v729_v2 = vadd.f32 %v7470_v40, %v7468_v39  ;;  %v2973_v39 = vld [vmem:[%s7296_s29 + $0xc3] sm:$0xff] }
 0x25c   : > { %6797 = vmatmul.msk.f32.gmra.mxu2 %vm354_vm0, %v2394_v36  ;;  %6833 = vmatmul.msk.f32.gmra.mxu3 %vm354_vm0, %v2356_v59  ;;  %v2286_v36 = vld [vmem:[%s7296_s29 + $0xba] sm:$0xff] }
 0x25d   : > { %6871 = vmatmul.msk.f32.gmra.mxu0 %vm354_vm0, %v3080_v60  ;;  %6907 = vmatmul.msk.f32.gmra.mxu1 %vm354_vm0, %v3042_v55  ;;  %v2197_v60 = vadd.f32 %v2098_v50, %v1511_v4  ;;  %v2396_v5 = vmax.f32 %v2286_v36, 0.0  ;;  %v2358_v10 = vmin.f32 %v2286_v36, 0.0 }
 0x25f   : > { %v2547_v18 = vpop.f32.mrf.mxu2  ;;  %v2780_v43 = vpop.f32.mrf.mxu3 }
 0x260   : > { %v2781_v58 = vadd.f32 %v2780_v43, %v2547_v18  ;;  %v1512_v18 = vadd.f32 %v7694_v46, %v729_v2  ;;  %v2101_v43 = vadd.f32 %v7686_v21, %v7684_v33  ;;  %v3045_v33 = vmin.f32 %v2973_v39, 0.0  ;;  %v9595_v21 = vld [vmem:[#allocation3_spill] sm:$0xff] }
 0x261   : > { %v732_v56 = vadd.f32 %v9595_v21, %v7480_v52  ;;  %v2974_v52 = vld [vmem:[%s7296_s29 + $0xcb] sm:$0xff] }
 0x262   : > { %v8154_v6 = vadd.f32 %v2781_v58, %v2196_v25  ;;  %v8156_v7 = vpop.f32.mrf.mxu0  ;;  %v8158_v53 = vpop.f32.mrf.mxu1  ;;  %v2287_v25 = vld [vmem:[%s7296_s29 + $0xc2] sm:$0xff]  ;;  %v9602_v21 = vld [vmem:[#allocation29_spill] sm:$0xff] }
 0x263   : > { %v2397_v46 = vmax.f32 %v2287_v25, 0.0 }
 0x264   : > { %6798 = vmatmul.msk.f32.gmra.mxu2 %vm354_vm0, %v2395_v24  ;;  %6834 = vmatmul.msk.f32.gmra.mxu3 %vm354_vm0, %v2357_v22  ;;  %v2198_v24 = vadd.f32 %v2101_v43, %v1512_v18 }
 0x265   : > { %6872 = vmatmul.msk.f32.gmra.mxu0 %vm354_vm0, %v3081_v41  ;;  %6908 = vmatmul.msk.f32.gmra.mxu1 %vm354_vm0, %v3043_v27  ;;  %v2359_v41 = vmin.f32 %v2287_v25, 0.0  ;;  %v3083_v27 = vmax.f32 %v2973_v39, 0.0  ;;  %v3084_v25 = vmax.f32 %v2974_v52, 0.0  ;;  %v3046_v39 = vmin.f32 %v2974_v52, 0.0 }
 0x267   : > { %v2550_v29 = vpop.f32.mrf.mxu2  ;;  %v2783_v59 = vpop.f32.mrf.mxu3 }
 0x268   : > { %v2784_v55 = vadd.f32 %v2783_v59, %v2550_v29  ;;  %v1513_v29 = vadd.f32 %v9596_v28, %v732_v56  ;;  %v9597_v59 = vld [vmem:[#allocation26_spill] sm:$0xff] }
 0x269   : > { %v9603_v56 = vld [vmem:[#allocation30_spill] sm:$0xff] }
 0x26a   : > { %v8171_v32 = vadd.f32 %v2784_v55, %v2197_v60  ;;  %v8173_v0 = vpop.f32.mrf.mxu0  ;;  %v8175_v17 = vpop.f32.mrf.mxu1  ;;  %v9598_v60 = vld [vmem:[#allocation27_spill] sm:$0xff]  ;;  %v2107_v28 = vadd.f32 %v9603_v56, %v9602_v21  ;;  %v9610_v21 = vld [vmem:[#allocation32_spill] sm:$0xff]  ;;  %v9611_v56 = vld [vmem:[#allocation33_spill] sm:$0xff] }
 0x26b   : > { %v2104_v55 = vadd.f32 %v9598_v60, %v9597_v59  ;;  %v2975_v59 = vld [vmem:[%s7296_s29 + $0xd3] sm:$0xff] }
 0x26c   : > { %6799 = vmatmul.msk.f32.gmra.mxu2 %vm354_vm0, %v2396_v5  ;;  %6835 = vmatmul.msk.f32.gmra.mxu3 %vm354_vm0, %v2358_v10  ;;  %v2288_v5 = vld [vmem:[%s7296_s29 + $0xca] sm:$0xff] }
 0x26d   : > { %6873 = vmatmul.msk.f32.gmra.mxu0 %vm354_vm0, %v3082_v57  ;;  %6909 = vmatmul.msk.f32.gmra.mxu1 %vm354_vm0, %v3044_v51  ;;  %v2199_v51 = vadd.f32 %v2104_v55, %v1513_v29  ;;  %v2398_v18 = vmax.f32 %v2288_v5, 0.0  ;;  %v2360_v43 = vmin.f32 %v2288_v5, 0.0  ;;  %v2289_v29 = vld [vmem:[%s7296_s29 + $0xd2] sm:$0xff] }
 0x26f   : > { %v2553_v40 = vpop.f32.mrf.mxu2  ;;  %v2786_v58 = vpop.f32.mrf.mxu3 }
 0x270   : > { %v2787_v22 = vadd.f32 %v2786_v58, %v2553_v40  ;;  %v9599_v40 = vld [vmem:[#allocation4_spill] sm:$0xff]  ;;  %v9600_v58 = vld [vmem:[#allocation5_spill] sm:$0xff] }
 0x272   : > { %v8188_v4 = vadd.f32 %v2787_v22, %v2198_v24  ;;  %v8190_v50 = vpop.f32.mrf.mxu0  ;;  %v8192_v36 = vpop.f32.mrf.mxu1  ;;  %v735_v24 = vadd.f32 %v9600_v58, %v9599_v40  ;;  %v9604_v40 = vld [vmem:[#allocation6_spill] sm:$0xff] }
 0x274   : > { %6800 = vmatmul.msk.f32.gmra.mxu2 %vm354_vm0, %v2397_v46  ;;  %6836 = vmatmul.msk.f32.gmra.mxu3 %vm354_vm0, %v2359_v41 }
 0x275   : > { %6874 = vmatmul.msk.f32.gmra.mxu0 %vm354_vm0, %v3083_v27  ;;  %6910 = vmatmul.msk.f32.gmra.mxu1 %vm354_vm0, %v3045_v33  ;;  %v9601_v27 = vld [vmem:[#allocation31_spill] sm:$0xff] }
 0x276   : > { %v1514_v33 = vadd.f32 %v9601_v27, %v735_v24 }
 0x277   : > { %v2556_v10 = vpop.f32.mrf.mxu2  ;;  %v2789_v57 = vpop.f32.mrf.mxu3 }
 0x278   : > { %v2790_v2 = vadd.f32 %v2789_v57, %v2556_v10  ;;  %v2200_v5 = vadd.f32 %v2107_v28, %v1514_v33  ;;  %v2399_v10 = vmax.f32 %v2289_v29, 0.0  ;;  %v2361_v57 = vmin.f32 %v2289_v29, 0.0  ;;  %v2290_v28 = vld [vmem:[%s7296_s29 + $0xda] sm:$0xff] }
 0x279   : > { %v2110_v33 = vadd.f32 %v9611_v56, %v9610_v21  ;;  %v2976_v29 = vld [vmem:[%s7296_s29 + $0xdb] sm:$0xff] }
 0x27a   : > { %v8205_v22 = vadd.f32 %v2790_v2, %v2199_v51  ;;  %v8207_v46 = vpop.f32.mrf.mxu0  ;;  %v8209_v41 = vpop.f32.mrf.mxu1  ;;  %v3085_v51 = vmax.f32 %v2975_v59, 0.0  ;;  %v3047_v2 = vmin.f32 %v2975_v59, 0.0 }
 0x27c   : > { %6801 = vmatmul.msk.f32.gmra.mxu2 %vm354_vm0, %v2398_v18  ;;  %6837 = vmatmul.msk.f32.gmra.mxu3 %vm354_vm0, %v2360_v43  ;;  %v9605_v18 = vld [vmem:[#allocation7_spill] sm:$0xff] }
 0x27d   : > { %6875 = vmatmul.msk.f32.gmra.mxu0 %vm354_vm0, %v3084_v25  ;;  %6911 = vmatmul.msk.f32.gmra.mxu1 %vm354_vm0, %v3046_v39  ;;  %v738_v58 = vadd.f32 %v9605_v18, %v9604_v40  ;;  %v9609_v39 = vld [vmem:[#allocation34_spill] sm:$0xff]  ;;  %v2362_v40 = vmin.f32 %v2290_v28, 0.0  ;;  %v3086_v18 = vmax.f32 %v2976_v29, 0.0 }
 0x27f   : > { %v2559_v60 = vpop.f32.mrf.mxu2  ;;  %v2792_v55 = vpop.f32.mrf.mxu3  ;;  %v1515_v27 = vadd.f32 %v9609_v39, %v738_v58  ;;  %v3048_v58 = vmin.f32 %v2976_v29, 0.0  ;;  %v9612_v39 = vld [vmem:[#allocation8_spill] sm:$0xff] }
 0x280   : > { %v2793_v52 = vadd.f32 %v2792_v55, %v2559_v60 }
 0x281   : > { %v2201_v55 = vadd.f32 %v2110_v33, %v1515_v27  ;;  %v2291_v33 = vld [vmem:[%s7296_s29 + $0xe2] sm:$0xff] }
 0x282   : > { %v8222_v43 = vadd.f32 %v2793_v52, %v2200_v5  ;;  %v8224_v24 = vpop.f32.mrf.mxu0  ;;  %v8226_v25 = vpop.f32.mrf.mxu1  ;;  %v2400_v52 = vmax.f32 %v2290_v28, 0.0  ;;  %v2977_v28 = vld [vmem:[%s7296_s29 + $0xe3] sm:$0xff] }
 0x283   : > { %9607 = vst [vmem:[#allocation28_spill] sm:$0xff] %v8224_v24  ;;  %v9618_v24 = vld [vmem:[#allocation35_spill] sm:$0xff] }
 0x284   : > { %9606 = vst [vmem:[#allocation3_spill] sm:$0xff] %v8222_v43  ;;  %6802 = vmatmul.msk.f32.gmra.mxu2 %vm354_vm0, %v2399_v10  ;;  %6838 = vmatmul.msk.f32.gmra.mxu3 %vm354_vm0, %v2361_v57  ;;  %v9613_v10 = vld [vmem:[#allocation9_spill] sm:$0xff]  ;;  %v9619_v43 = vld [vmem:[#allocation36_spill] sm:$0xff] }
 0x285   : > { %9608 = vst [vmem:[#allocation26_spill] sm:$0xff] %v8226_v25  ;;  %6876 = vmatmul.msk.f32.gmra.mxu0 %vm354_vm0, %v3085_v51  ;;  %6912 = vmatmul.msk.f32.gmra.mxu1 %vm354_vm0, %v3047_v2  ;;  %v741_v21 = vadd.f32 %v9613_v10, %v9612_v39  ;;  %v9617_v2 = vld [vmem:[#allocation37_spill] sm:$0xff]  ;;  %v2113_v27 = vadd.f32 %v9619_v43, %v9618_v24  ;;  %v2363_v39 = vmin.f32 %v2291_v33, 0.0  ;;  %v3087_v10 = vmax.f32 %v2977_v28, 0.0  ;;  %v9620_v24 = vld [vmem:[#allocation10_spill] sm:$0xff] }
 0x286   : > { %v3049_v43 = vmin.f32 %v2977_v28, 0.0 }
 0x287   : > { %v2562_v59 = vpop.f32.mrf.mxu2  ;;  %v2795_v60 = vpop.f32.mrf.mxu3  ;;  %v1516_v25 = vadd.f32 %v9617_v2, %v741_v21 }
 0x288   : > { %v2796_v5 = vadd.f32 %v2795_v60, %v2562_v59 }
 0x289   : > { %v2202_v60 = vadd.f32 %v2113_v27, %v1516_v25  ;;  %v2292_v27 = vld [vmem:[%s7296_s29 + $0xea] sm:$0xff] }
 0x28a   : > { %v8239_v57 = vadd.f32 %v2796_v5, %v2201_v55  ;;  %v8241_v56 = vpop.f32.mrf.mxu0  ;;  %v8243_v51 = vpop.f32.mrf.mxu1  ;;  %v2401_v5 = vmax.f32 %v2291_v33, 0.0  ;;  %v2978_v33 = vld [vmem:[%s7296_s29 + $0xeb] sm:$0xff] }
 0x28b   : > { %9615 = vst [vmem:[#allocation4_spill] sm:$0xff] %v8241_v56  ;;  %v9626_v56 = vld [vmem:[#allocation38_spill] sm:$0xff] }
 0x28c   : > { %9614 = vst [vmem:[#allocation27_spill] sm:$0xff] %v8239_v57  ;;  %6803 = vmatmul.msk.f32.gmra.mxu2 %vm354_vm0, %v2400_v52  ;;  %6839 = vmatmul.msk.f32.gmra.mxu3 %vm354_vm0, %v2362_v40  ;;  %v9621_v52 = vld [vmem:[#allocation11_spill] sm:$0xff] }
 0x28d   : > { %9616 = vst [vmem:[#allocation5_spill] sm:$0xff] %v8243_v51  ;;  %6877 = vmatmul.msk.f32.gmra.mxu0 %vm354_vm0, %v3086_v18  ;;  %6913 = vmatmul.msk.f32.gmra.mxu1 %vm354_vm0, %v3048_v58  ;;  %v744_v21 = vadd.f32 %v9621_v52, %v9620_v24  ;;  %v9625_v58 = vld [vmem:[#allocation40_spill] sm:$0xff]  ;;  %v9627_v57 = vld [vmem:[#allocation39_spill] sm:$0xff]  ;;  %v2364_v24 = vmin.f32 %v2292_v27, 0.0  ;;  %v3088_v52 = vmax.f32 %v2978_v33, 0.0 }
 0x28e   : > { %v2116_v25 = vadd.f32 %v9627_v57, %v9626_v56  ;;  %v3050_v57 = vmin.f32 %v2978_v33, 0.0  ;;  %v9628_v56 = vld [vmem:[#allocation12_spill] sm:$0xff] }
 0x28f   : > { %v2565_v29 = vpop.f32.mrf.mxu2  ;;  %v2798_v59 = vpop.f32.mrf.mxu3  ;;  %v1517_v51 = vadd.f32 %v9625_v58, %v744_v21 }
 0x290   : > { %v2799_v55 = vadd.f32 %v2798_v59, %v2565_v29 }
 0x291   : > { %v2203_v59 = vadd.f32 %v2116_v25, %v1517_v51  ;;  %v2293_v25 = vld [vmem:[%s7296_s29 + $0xf2] sm:$0xff] }
 0x292   : > { %v8256_v40 = vadd.f32 %v2799_v55, %v2202_v60  ;;  %v8258_v2 = vpop.f32.mrf.mxu0  ;;  %v8260_v18 = vpop.f32.mrf.mxu1  ;;  %v2402_v55 = vmax.f32 %v2292_v27, 0.0  ;;  %v2979_v27 = vld [vmem:[%s7296_s29 + $0xf3] sm:$0xff] }
 0x293   : > { %9623 = vst [vmem:[#allocation29_spill] sm:$0xff] %v8258_v2  ;;  %v9634_v2 = vld [vmem:[#allocation41_spill] sm:$0xff] }
 0x294   : > { %9622 = vst [vmem:[#allocation31_spill] sm:$0xff] %v8256_v40  ;;  %6804 = vmatmul.msk.f32.gmra.mxu2 %vm354_vm0, %v2401_v5  ;;  %6840 = vmatmul.msk.f32.gmra.mxu3 %vm354_vm0, %v2363_v39  ;;  %v9629_v5 = vld [vmem:[#allocation13_spill] sm:$0xff]  ;;  %v9635_v40 = vld [vmem:[#allocation42_spill] sm:$0xff] }
 0x295   : > { %9624 = vst [vmem:[#allocation30_spill] sm:$0xff] %v8260_v18  ;;  %6878 = vmatmul.msk.f32.gmra.mxu0 %vm354_vm0, %v3087_v10  ;;  %6914 = vmatmul.msk.f32.gmra.mxu1 %vm354_vm0, %v3049_v43  ;;  %v747_v21 = vadd.f32 %v9629_v5, %v9628_v56  ;;  %v9633_v43 = vld [vmem:[#allocation43_spill] sm:$0xff]  ;;  %v2119_v51 = vadd.f32 %v9635_v40, %v9634_v2  ;;  %v2365_v56 = vmin.f32 %v2293_v25, 0.0  ;;  %v3089_v5 = vmax.f32 %v2979_v27, 0.0  ;;  %v9636_v2 = vld [vmem:[#allocation14_spill] sm:$0xff] }
 0x296   : > { %v3051_v40 = vmin.f32 %v2979_v27, 0.0 }
 0x297   : > { %v2568_v28 = vpop.f32.mrf.mxu2  ;;  %v2801_v29 = vpop.f32.mrf.mxu3  ;;  %v1518_v18 = vadd.f32 %v9633_v43, %v747_v21 }
 0x298   : > { %v2802_v60 = vadd.f32 %v2801_v29, %v2568_v28 }
 0x299   : > { %v2204_v29 = vadd.f32 %v2119_v51, %v1518_v18  ;;  %v2294_v51 = vld [vmem:[%s7296_s29 + $0xfa] sm:$0xff] }
 0x29a   : > { %v8273_v39 = vadd.f32 %v2802_v60, %v2203_v59  ;;  %v8275_v58 = vpop.f32.mrf.mxu0  ;;  %v8277_v10 = vpop.f32.mrf.mxu1  ;;  %v2403_v60 = vmax.f32 %v2293_v25, 0.0  ;;  %v2980_v25 = vld [vmem:[%s7296_s29 + $0xfb] sm:$0xff] }
 0x29b   : > { %9631 = vst [vmem:[#allocation7_spill] sm:$0xff] %v8275_v58  ;;  %v9642_v58 = vld [vmem:[#allocation44_spill] sm:$0xff] }
 0x29c   : > { %9630 = vst [vmem:[#allocation6_spill] sm:$0xff] %v8273_v39  ;;  %6805 = vmatmul.msk.f32.gmra.mxu2 %vm354_vm0, %v2402_v55  ;;  %6841 = vmatmul.msk.f32.gmra.mxu3 %vm354_vm0, %v2364_v24  ;;  %v9637_v55 = vld [vmem:[#allocation15_spill] sm:$0xff]  ;;  %v9643_v39 = vld [vmem:[#allocation45_spill] sm:$0xff] }
 0x29d   : > { %9632 = vst [vmem:[#allocation34_spill] sm:$0xff] %v8277_v10  ;;  %6879 = vmatmul.msk.f32.gmra.mxu0 %vm354_vm0, %v3088_v52  ;;  %6915 = vmatmul.msk.f32.gmra.mxu1 %vm354_vm0, %v3050_v57  ;;  %v750_v21 = vadd.f32 %v9637_v55, %v9636_v2  ;;  %v9641_v57 = vld [vmem:[#allocation46_spill] sm:$0xff]  ;;  %v2122_v18 = vadd.f32 %v9643_v39, %v9642_v58  ;;  %v2366_v2 = vmin.f32 %v2294_v51, 0.0  ;;  %v3090_v55 = vmax.f32 %v2980_v25, 0.0  ;;  %v9644_v58 = vld [vmem:[#allocation16_spill] sm:$0xff] }
 0x29e   : > { %v3052_v39 = vmin.f32 %v2980_v25, 0.0 }
 0x29f   : > { %v2571_v33 = vpop.f32.mrf.mxu2  ;;  %v2804_v28 = vpop.f32.mrf.mxu3  ;;  %v1519_v10 = vadd.f32 %v9641_v57, %v750_v21 }
 0x2a0   : > { %v2805_v59 = vadd.f32 %v2804_v28, %v2571_v33 }
 0x2a1   : > { %v2205_v28 = vadd.f32 %v2122_v18, %v1519_v10  ;;  %v2295_v18 = vld [vmem:[%s7296_s29 + $0x102] sm:$0xff] }
 0x2a2   : > { %v8290_v24 = vadd.f32 %v2805_v59, %v2204_v29  ;;  %v8292_v43 = vpop.f32.mrf.mxu0  ;;  %v8294_v52 = vpop.f32.mrf.mxu1  ;;  %v2404_v59 = vmax.f32 %v2294_v51, 0.0  ;;  %v2981_v51 = vld [vmem:[%s7296_s29 + $0x103] sm:$0xff] }
 0x2a3   : > { %9639 = vst [vmem:[#allocation33_spill] sm:$0xff] %v8292_v43  ;;  %v9650_v43 = vld [vmem:[#allocation47_spill] sm:$0xff] }
 0x2a4   : > { %9638 = vst [vmem:[#allocation32_spill] sm:$0xff] %v8290_v24  ;;  %6806 = vmatmul.msk.f32.gmra.mxu2 %vm354_vm0, %v2403_v60  ;;  %6842 = vmatmul.msk.f32.gmra.mxu3 %vm354_vm0, %v2365_v56  ;;  %v9645_v60 = vld [vmem:[#allocation17_spill] sm:$0xff]  ;;  %v9651_v24 = vld [vmem:[#allocation48_spill] sm:$0xff] }
 0x2a5   : > { %9640 = vst [vmem:[#allocation8_spill] sm:$0xff] %v8294_v52  ;;  %6880 = vmatmul.msk.f32.gmra.mxu0 %vm354_vm0, %v3089_v5  ;;  %6916 = vmatmul.msk.f32.gmra.mxu1 %vm354_vm0, %v3051_v40  ;;  %v753_v21 = vadd.f32 %v9645_v60, %v9644_v58  ;;  %v9649_v40 = vld [vmem:[#allocation49_spill] sm:$0xff]  ;;  %v2125_v10 = vadd.f32 %v9651_v24, %v9650_v43  ;;  %v2367_v58 = vmin.f32 %v2295_v18, 0.0  ;;  %v3091_v60 = vmax.f32 %v2981_v51, 0.0  ;;  %v9652_v43 = vld [vmem:[#allocation18_spill] sm:$0xff] }
 0x2a6   : > { %v3053_v24 = vmin.f32 %v2981_v51, 0.0 }
 0x2a7   : > { %v2574_v27 = vpop.f32.mrf.mxu2  ;;  %v2807_v33 = vpop.f32.mrf.mxu3  ;;  %v1520_v52 = vadd.f32 %v9649_v40, %v753_v21 }
 0x2a8   : > { %v2808_v29 = vadd.f32 %v2807_v33, %v2574_v27 }
 0x2a9   : > { %v2206_v33 = vadd.f32 %v2125_v10, %v1520_v52  ;;  %v2296_v10 = vld [vmem:[%s7296_s29 + $0x10a] sm:$0xff] }
 0x2aa   : > { %v8307_v56 = vadd.f32 %v2808_v29, %v2205_v28  ;;  %v8309_v57 = vpop.f32.mrf.mxu0  ;;  %v8311_v5 = vpop.f32.mrf.mxu1  ;;  %v2405_v29 = vmax.f32 %v2295_v18, 0.0  ;;  %v2982_v18 = vld [vmem:[%s7296_s29 + $0x10b] sm:$0xff] }
 0x2ab   : > { %9647 = vst [vmem:[#allocation37_spill] sm:$0xff] %v8309_v57  ;;  %v9658_v57 = vld [vmem:[#allocation50_spill] sm:$0xff] }
 0x2ac   : > { %9646 = vst [vmem:[#allocation9_spill] sm:$0xff] %v8307_v56  ;;  %6807 = vmatmul.msk.f32.gmra.mxu2 %vm354_vm0, %v2404_v59  ;;  %6843 = vmatmul.msk.f32.gmra.mxu3 %vm354_vm0, %v2366_v2  ;;  %v9653_v59 = vld [vmem:[#allocation19_spill] sm:$0xff] }
 0x2ad   : > { %9648 = vst [vmem:[#allocation35_spill] sm:$0xff] %v8311_v5  ;;  %6881 = vmatmul.msk.f32.gmra.mxu0 %vm354_vm0, %v3090_v55  ;;  %6917 = vmatmul.msk.f32.gmra.mxu1 %vm354_vm0, %v3052_v39  ;;  %v756_v21 = vadd.f32 %v9653_v59, %v9652_v43  ;;  %v9657_v39 = vld [vmem:[#allocation52_spill] sm:$0xff]  ;;  %v9659_v56 = vld [vmem:[#allocation51_spill] sm:$0xff]  ;;  %v2368_v43 = vmin.f32 %v2296_v10, 0.0  ;;  %v3092_v59 = vmax.f32 %v2982_v18, 0.0 }
 0x2ae   : > { %v2128_v52 = vadd.f32 %v9659_v56, %v9658_v57  ;;  %v3054_v56 = vmin.f32 %v2982_v18, 0.0  ;;  %v9660_v57 = vld [vmem:[#allocation20_spill] sm:$0xff] }
 0x2af   : > { %v2577_v25 = vpop.f32.mrf.mxu2  ;;  %v2810_v27 = vpop.f32.mrf.mxu3  ;;  %v1521_v5 = vadd.f32 %v9657_v39, %v756_v21 }
 0x2b0   : > { %v2811_v28 = vadd.f32 %v2810_v27, %v2577_v25 }
 0x2b1   : > { %v2207_v27 = vadd.f32 %v2128_v52, %v1521_v5  ;;  %v2297_v52 = vld [vmem:[%s7296_s29 + $0x112] sm:$0xff] }
 0x2b2   : > { %v8324_v2 = vadd.f32 %v2811_v28, %v2206_v33  ;;  %v8326_v40 = vpop.f32.mrf.mxu0  ;;  %v8328_v55 = vpop.f32.mrf.mxu1  ;;  %v2406_v28 = vmax.f32 %v2296_v10, 0.0  ;;  %v2983_v10 = vld [vmem:[%s7296_s29 + $0x113] sm:$0xff] }
 0x2b3   : > { %9655 = vst [vmem:[#allocation10_spill] sm:$0xff] %v8326_v40  ;;  %v9665_v40 = vld [vmem:[#allocation53_spill] sm:$0xff] }
 0x2b4   : > { %9654 = vst [vmem:[#allocation36_spill] sm:$0xff] %v8324_v2  ;;  %6808 = vmatmul.msk.f32.gmra.mxu2 %vm354_vm0, %v2405_v29  ;;  %6844 = vmatmul.msk.f32.gmra.mxu3 %vm354_vm0, %v2367_v58  ;;  %v9661_v29 = vld [vmem:[#allocation21_spill] sm:$0xff]  ;;  %v9666_v2 = vld [vmem:[#allocation54_spill] sm:$0xff] }
 0x2b5   : > { %9656 = vst [vmem:[#allocation11_spill] sm:$0xff] %v8328_v55  ;;  %6882 = vmatmul.msk.f32.gmra.mxu0 %vm354_vm0, %v3091_v60  ;;  %6918 = vmatmul.msk.f32.gmra.mxu1 %vm354_vm0, %v3053_v24  ;;  %v759_v21 = vadd.f32 %v9661_v29, %v9660_v57  ;;  %v9664_v24 = vld [vmem:[#allocation55_spill] sm:$0xff]  ;;  %v2131_v5 = vadd.f32 %v9666_v2, %v9665_v40  ;;  %v2369_v57 = vmin.f32 %v2297_v52, 0.0  ;;  %v3093_v29 = vmax.f32 %v2983_v10, 0.0  ;;  %v9667_v40 = vld [vmem:[#allocation22_spill] sm:$0xff] }
 0x2b6   : > { %v3055_v2 = vmin.f32 %v2983_v10, 0.0  ;;  %v7072_v10 = vld [vmem:[%s9498_s1 + $0x38] sm:$0xff] }
 0x2b7   : > { %v2580_v51 = vpop.f32.mrf.mxu2  ;;  %v2813_v25 = vpop.f32.mrf.mxu3  ;;  %v1522_v55 = vadd.f32 %v9664_v24, %v759_v21  ;;  %5513 = vmatpush.msra.mxu3 %v7072_v10  ;;  %v9677_v10 = vld [vmem:[#allocation59_spill] sm:$0xff] }
 0x2b8   : > { %v2814_v33 = vadd.f32 %v2813_v25, %v2580_v51 }
 0x2b9   : > { %v2208_v25 = vadd.f32 %v2131_v5, %v1522_v55  ;;  %v9673_v55 = vld [vmem:[#allocation57_spill] sm:$0xff] }
 0x2ba   : > { %v8341_v58 = vadd.f32 %v2814_v33, %v2207_v27  ;;  %v8343_v39 = vpop.f32.mrf.mxu0  ;;  %v8345_v60 = vpop.f32.mrf.mxu1  ;;  %v2407_v33 = vmax.f32 %v2297_v52, 0.0  ;;  %v7073_v52 = vld [vmem:[%s9498_s1 + $0x80] sm:$0xff] }
 0x2bb   : > { %9662 = vst [vmem:[#allocation40_spill] sm:$0xff] %v8343_v39  ;;  %v9672_v39 = vld [vmem:[#allocation56_spill] sm:$0xff]  ;;  %5280 = vmatpush.msra.mxu2 %v7073_v52 }
 0x2bc   : > { %9663 = vst [vmem:[#allocation38_spill] sm:$0xff] %v8345_v60  ;;  %6809 = vmatmul.msk.f32.gmra.mxu2 %vm354_vm0, %v2406_v28  ;;  %6845 = vmatmul.msk.f32.gmra.mxu3 %vm354_vm0, %v2368_v43  ;;  %v9668_v28 = vld [vmem:[#allocation23_spill] sm:$0xff]  ;;  %v2134_v5 = vadd.f32 %v9673_v55, %v9672_v39  ;;  %v9675_v55 = vld [vmem:[#allocation25_spill] sm:$0xff] }
 0x2bd   : > { %6883 = vmatmul.msk.f32.gmra.mxu0 %vm354_vm0, %v3092_v59  ;;  %6919 = vmatmul.msk.f32.gmra.mxu1 %vm354_vm0, %v3054_v56  ;;  %v762_v21 = vadd.f32 %v9668_v28, %v9667_v40  ;;  %v9671_v56 = vld [vmem:[#allocation58_spill] sm:$0xff] }
 0x2bf   : > { %v2583_v18 = vpop.f32.mrf.mxu2  ;;  %v2816_v51 = vpop.f32.mrf.mxu3  ;;  %v1523_v60 = vadd.f32 %v9671_v56, %v762_v21  ;;  %v9674_v56 = vld [vmem:[#allocation24_spill] sm:$0xff] }
 0x2c0   : > { %v2817_v27 = vadd.f32 %v2816_v51, %v2583_v18  ;;  %v2298_v18 = vld [vmem:[%s7296_s29 + $0x11a] sm:$0xff] }
 0x2c1   : > { %v2984_v51 = vld [vmem:[%s7296_s29 + $0x11b] sm:$0xff]  ;;  %v2370_v40 = vmin.f32 %v2298_v18, 0.0 }
 0x2c2   : > { %v8358_v43 = vadd.f32 %v2817_v27, %v2208_v25  ;;  %v8360_v24 = vpop.f32.mrf.mxu0  ;;  %v8362_v59 = vpop.f32.mrf.mxu1  ;;  %v2209_v27 = vadd.f32 %v2134_v5, %v1523_v60  ;;  %v3094_v28 = vmax.f32 %v2984_v51, 0.0  ;;  %v3056_v21 = vmin.f32 %v2984_v51, 0.0  ;;  %v9678_v60 = vld [vmem:[#allocation60_spill] sm:$0xff]  ;;  %v7146_v51 = vld [vmem:[%s9498_s1 + $0x40] sm:$0xff] }
 0x2c3   : > { %9669 = vst [vmem:[#allocation39_spill] sm:$0xff] %v8360_v24  ;;  %v2137_v5 = vadd.f32 %v9678_v60, %v9677_v10  ;;  %6199 = vmatpush.msra.mxu1 %v7146_v51  ;;  %v2300_v51 = vld [vmem:[%s7296_s29 + $0x12a] sm:$0xff] }
 0x2c4   : > { %9670 = vst [vmem:[#allocation12_spill] sm:$0xff] %v8362_v59  ;;  %6810 = vmatmul.msk.f32.gmra.mxu2 %vm354_vm0, %v2407_v33  ;;  %6846 = vmatmul.msk.f32.gmra.mxu3 %vm354_vm0, %v2369_v57  ;;  %v2408_v57 = vmax.f32 %v2298_v18, 0.0  ;;  %v765_v59 = vadd.f32 %v9675_v55, %v9674_v56  ;;  %v7147_v18 = vld [vmem:[%s9498_s1 + $0x88] sm:$0xff] }
 0x2c5   : > { %6884 = vmatmul.msk.f32.gmra.mxu0 %vm354_vm0, %v3093_v29  ;;  %6920 = vmatmul.msk.f32.gmra.mxu1 %vm354_vm0, %v3055_v2 }
 0x2c6   : > { %v1524_v52 = vadd.f32 %v7850_v9, %v765_v59  ;;  %v2985_v9 = vld [vmem:[%s7296_s29 + $0x123] sm:$0xff]  ;;  %5966 = vmatpush.msra.mxu0 %v7147_v18 }
 0x2c7   : > { %v2586_v39 = vpop.f32.mrf.mxu2  ;;  %v2819_v25 = vpop.f32.mrf.mxu3  ;;  %v3095_v56 = vmax.f32 %v2985_v9, 0.0  ;;  %v3057_v55 = vmin.f32 %v2985_v9, 0.0 }
 0x2c8   : > { %v2820_v33 = vadd.f32 %v2819_v25, %v2586_v39  ;;  %v2299_v39 = vld [vmem:[%s7296_s29 + $0x122] sm:$0xff] }
 0x2ca   : > { %v8381_v24 = vadd.f32 %v2820_v33, %v2209_v27  ;;  %v8383_v29 = vpop.f32.mrf.mxu0  ;;  %v8385_v2 = vpop.f32.mrf.mxu1  ;;  %v2210_v27 = vadd.f32 %v2137_v5, %v1524_v52  ;;  %v2986_v52 = vld [vmem:[%s7296_s29 + $0x12b] sm:$0xff] }
 0x2cb   : > { %9676 = vst [vmem:[#allocation13_spill] sm:$0xff] %v8385_v2  ;;  %v9681_v2 = vld [vmem:[#allocation62_spill] sm:$0xff] }
 0x2cc   : > { %6811 = vmatmul.msk.f32.gmra.mxu2 %vm354_vm0, %v2408_v57  ;;  %6847 = vmatmul.msk.f32.gmra.mxu3 %vm354_vm0, %v2370_v40  ;;  %v2409_v57 = vmax.f32 %v2299_v39, 0.0  ;;  %v2371_v40 = vmin.f32 %v2299_v39, 0.0 }
 0x2cd   : > { %6885 = vmatmul.msk.f32.gmra.mxu0 %vm354_vm0, %v3094_v28  ;;  %6921 = vmatmul.msk.f32.gmra.mxu1 %vm354_vm0, %v3056_v21  ;;  %v9680_v21 = vld [vmem:[#allocation61_spill] sm:$0xff] }
 0x2ce   : > { %v2140_v18 = vadd.f32 %v9681_v2, %v9680_v21  ;;  %v3096_v2 = vmax.f32 %v2986_v52, 0.0 }
 0x2cf   : > { %v2589_v59 = vpop.f32.mrf.mxu2  ;;  %v2822_v25 = vpop.f32.mrf.mxu3 }
 0x2d0   : > { %v2823_v33 = vadd.f32 %v2822_v25, %v2589_v59  ;;  %v2211_v9 = vadd.f32 %v2140_v18, %v7863_v8  ;;  %v2410_v25 = vmax.f32 %v2300_v51, 0.0  ;;  %v3637_v8 = vld [vmem:[%s7296_s29 + $0x14] sm:$0xff]  ;;  %v4323_v18 = vld [vmem:[%s7296_s29 + $0x24] sm:$0xff] }
 0x2d2   : > { %v8402_v10 = vadd.f32 %v2823_v33, %v2210_v27  ;;  %v8404_v60 = vpop.f32.mrf.mxu0  ;;  %v8406_v28 = vpop.f32.mrf.mxu1  ;;  %v2372_v27 = vmin.f32 %v2300_v51, 0.0  ;;  %v3058_v33 = vmin.f32 %v2986_v52, 0.0 }
 0x2d3   : > { %9679 = vst [vmem:[#allocation43_spill] sm:$0xff] %v8406_v28 }
 0x2d4   : > { %6812 = vmatmul.msk.f32.gmra.mxu2 %vm354_vm0, %v2409_v57  ;;  %6848 = vmatmul.msk.f32.gmra.mxu3 %vm354_vm0, %v2371_v40 }
 0x2d5   : > { %6886 = vmatmul.msk.f32.gmra.mxu0 %vm354_vm0, %v3095_v56  ;;  %6922 = vmatmul.msk.f32.gmra.mxu1 %vm354_vm0, %v3057_v55  ;;  %v9685_v56 = vld [vmem:[#allocation63_spill] sm:$0xff]  ;;  %v9686_v55 = vld [vmem:[#allocation64_spill] sm:$0xff] }
 0x2d6   : > { %v2143_v28 = vadd.f32 %v9686_v55, %v9685_v56  ;;  %v4433_v56 = vmax.f32 %v4323_v18, 0.0  ;;  %v4395_v55 = vmin.f32 %v4323_v18, 0.0 }
 0x2d7   : > { %v2592_v5 = vpop.f32.mrf.mxu2  ;;  %v2825_v39 = vpop.f32.mrf.mxu3 }
 0x2d8   : > { %v2826_v59 = vadd.f32 %v2825_v39, %v2592_v5  ;;  %v2212_v5 = vadd.f32 %v2143_v28, %v7876_v47  ;;  %v4324_v47 = vld [vmem:[%s7296_s29 + $0x2c] sm:$0xff] }
 0x2da   : > { %v8417_v57 = vadd.f32 %v2826_v59, %v2211_v9  ;;  %v8419_v40 = vpop.f32.mrf.mxu0  ;;  %v8421_v21 = vpop.f32.mrf.mxu1  ;;  %v3747_v9 = vmax.f32 %v3637_v8, 0.0  ;;  %v3709_v59 = vmin.f32 %v3637_v8, 0.0 }
 0x2db   : > { %9683 = vst [vmem:[#allocation42_spill] sm:$0xff] %v8419_v40 }
 0x2dc   : > { %9682 = vst [vmem:[#allocation41_spill] sm:$0xff] %v8417_v57  ;;  %6813 = vmatmul.msk.f32.gmra.mxu2 %vm354_vm0, %v2410_v25  ;;  %6849 = vmatmul.msk.f32.gmra.mxu3 %vm354_vm0, %v2372_v27  ;;  %v3638_v57 = vld [vmem:[%s7296_s29 + $0x1c] sm:$0xff] }
 0x2dd   : > { %9684 = vst [vmem:[#allocation14_spill] sm:$0xff] %v8421_v21  ;;  %6887 = vmatmul.msk.f32.gmra.mxu0 %vm354_vm0, %v3096_v2  ;;  %6923 = vmatmul.msk.f32.gmra.mxu1 %vm354_vm0, %v3058_v33  ;;  %v9690_v33 = vld [vmem:[#allocation65_spill] sm:$0xff]  ;;  %v9691_v21 = vld [vmem:[#allocation66_spill] sm:$0xff] }
 0x2de   : > { %v2146_v40 = vadd.f32 %v9691_v21, %v9690_v33  ;;  %v4396_v21 = vmin.f32 %v4324_v47, 0.0 }
 0x2df   : > { %v2595_v51 = vpop.f32.mrf.mxu2  ;;  %v2828_v52 = vpop.f32.mrf.mxu3 }
 0x2e0   : > { %v2829_v39 = vadd.f32 %v2828_v52, %v2595_v51  ;;  %v2213_v18 = vadd.f32 %v2146_v40, %v7889_v14  ;;  %v3748_v52 = vmax.f32 %v3638_v57, 0.0  ;;  %v4325_v14 = vld [vmem:[%s7296_s29 + $0x34] sm:$0xff] }
 0x2e2   : > { %v8432_v25 = vadd.f32 %v2829_v39, %v2212_v5  ;;  %v8434_v27 = vpop.f32.mrf.mxu0  ;;  %v8436_v2 = vpop.f32.mrf.mxu1  ;;  %v3710_v5 = vmin.f32 %v3638_v57, 0.0  ;;  %v4434_v39 = vmax.f32 %v4324_v47, 0.0 }
 0x2e3   : > { %9688 = vst [vmem:[#allocation46_spill] sm:$0xff] %v8434_v27  ;;  %v9694_v27 = vld [vmem:[#allocation68_spill] sm:$0xff] }
 0x2e4   : > { %9687 = vst [vmem:[#allocation15_spill] sm:$0xff] %v8432_v25  ;;  %6926 = vmatmul.msk.f32.vlgmr.msrb.gmra.mxu2 %vm354_vm0, %v3747_v9  ;;  %6962 = vmatmul.msk.f32.vlgmr.msrb.gmra.mxu3 %vm354_vm0, %v3709_v59 }
 0x2e5   : > { %9689 = vst [vmem:[#allocation44_spill] sm:$0xff] %v8436_v2  ;;  %7000 = vmatmul.msk.f32.vlgmr.msrb.gmra.mxu0 %vm354_vm0, %v4433_v56  ;;  %7036 = vmatmul.msk.f32.vlgmr.msrb.gmra.mxu1 %vm354_vm0, %v4395_v55  ;;  %v9693_v2 = vld [vmem:[#allocation67_spill] sm:$0xff] }
 0x2e6   : > { %v2149_v25 = vadd.f32 %v9694_v27, %v9693_v2 }
 0x2e7   : > { %v2598_v28 = vpop.f32.mrf.mxu2  ;;  %v2831_v8 = vpop.f32.mrf.mxu3 }
 0x2e8   : > { %v2832_v51 = vadd.f32 %v2831_v8, %v2598_v28  ;;  %v2214_v47 = vadd.f32 %v2149_v25, %v7902_v20  ;;  %v4435_v8 = vmax.f32 %v4325_v14, 0.0  ;;  %v4326_v20 = vld [vmem:[%s7296_s29 + $0x3c] sm:$0xff] }
 0x2ea   : > { %v8447_v33 = vadd.f32 %v2832_v51, %v2213_v18  ;;  %v8449_v9 = vpop.f32.mrf.mxu0  ;;  %v8451_v59 = vpop.f32.mrf.mxu1  ;;  %v4397_v18 = vmin.f32 %v4325_v14, 0.0 }
 0x2eb   : > { %9692 = vst [vmem:[#allocation45_spill] sm:$0xff] %v8451_v59 }
 0x2ec   : > { %6927 = vmatmul.msk.f32.gmra.mxu2 %vm354_vm0, %v3748_v52  ;;  %6963 = vmatmul.msk.f32.gmra.mxu3 %vm354_vm0, %v3710_v5  ;;  %v9697_v52 = vld [vmem:[#allocation69_spill] sm:$0xff]  ;;  %v9698_v5 = vld [vmem:[#allocation70_spill] sm:$0xff] }
 0x2ed   : > { %7001 = vmatmul.msk.f32.gmra.mxu0 %vm354_vm0, %v4434_v39  ;;  %7037 = vmatmul.msk.f32.gmra.mxu1 %vm354_vm0, %v4396_v21  ;;  %v2152_v59 = vadd.f32 %v9698_v5, %v9697_v52  ;;  %v9702_v5 = vld [vmem:[#allocation72_spill] sm:$0xff] }
 0x2ef   : > { %v2601_v57 = vpop.f32.mrf.mxu2  ;;  %v2834_v40 = vpop.f32.mrf.mxu3 }
 0x2f0   : > { %v2835_v28 = vadd.f32 %v2834_v40, %v2601_v57  ;;  %v2215_v57 = vadd.f32 %v2152_v59, %v7915_v15  ;;  %v4327_v15 = vld [vmem:[%s7296_s29 + $0x44] sm:$0xff] }
 0x2f2   : > { %v8461_v51 = vadd.f32 %v2835_v28, %v2214_v47  ;;  %v8463_v27 = vpop.f32.mrf.mxu0  ;;  %v8465_v2 = vpop.f32.mrf.mxu1  ;;  %v4436_v47 = vmax.f32 %v4326_v20, 0.0  ;;  %v4398_v28 = vmin.f32 %v4326_v20, 0.0 }
 0x2f3   : > { %9695 = vst [vmem:[#allocation16_spill] sm:$0xff] %v8463_v27 }
 0x2f4   : > { %9696 = vst [vmem:[#allocation17_spill] sm:$0xff] %v8465_v2  ;;  %6928 = vmatmul.msk.f32.gmra.mxu2 %vm354_vm0, %v4433_v56  ;;  %6964 = vmatmul.msk.f32.gmra.mxu3 %vm354_vm0, %v4395_v55  ;;  %v9701_v55 = vld [vmem:[#allocation71_spill] sm:$0xff] }
 0x2f5   : > { %7002 = vmatmul.msk.f32.gmra.mxu0 %vm354_vm0, %v4435_v8  ;;  %7038 = vmatmul.msk.f32.gmra.mxu1 %vm354_vm0, %v4397_v18  ;;  %v2155_v27 = vadd.f32 %v9702_v5, %v9701_v55  ;;  %v9706_v5 = vld [vmem:[#allocation74_spill] sm:$0xff] }
 0x2f7   : > { %v2604_v25 = vpop.f32.mrf.mxu2  ;;  %v2837_v14 = vpop.f32.mrf.mxu3 }
 0x2f8   : > { %v2838_v40 = vadd.f32 %v2837_v14, %v2604_v25  ;;  %v2216_v25 = vadd.f32 %v2155_v27, %v7928_v30  ;;  %v4328_v30 = vld [vmem:[%s7296_s29 + $0x4c] sm:$0xff] }
 0x2fa   : > { %v8475_v2 = vadd.f32 %v2838_v40, %v2215_v57  ;;  %v8477_v52 = vpop.f32.mrf.mxu0  ;;  %v8479_v56 = vpop.f32.mrf.mxu1  ;;  %v4437_v57 = vmax.f32 %v4327_v15, 0.0  ;;  %v4399_v40 = vmin.f32 %v4327_v15, 0.0 }
 0x2fb   : > { %9699 = vst [vmem:[#allocation49_spill] sm:$0xff] %v8477_v52 }
 0x2fc   : > { %9700 = vst [vmem:[#allocation47_spill] sm:$0xff] %v8479_v56  ;;  %6929 = vmatmul.msk.f32.gmra.mxu2 %vm354_vm0, %v4434_v39  ;;  %6965 = vmatmul.msk.f32.gmra.mxu3 %vm354_vm0, %v4396_v21  ;;  %v9705_v21 = vld [vmem:[#allocation73_spill] sm:$0xff] }
 0x2fd   : > { %7003 = vmatmul.msk.f32.gmra.mxu0 %vm354_vm0, %v4436_v47  ;;  %7039 = vmatmul.msk.f32.gmra.mxu1 %vm354_vm0, %v4398_v28  ;;  %v2158_v52 = vadd.f32 %v9706_v5, %v9705_v21  ;;  %v9710_v5 = vld [vmem:[#allocation76_spill] sm:$0xff] }
 0x2ff   : > { %v2607_v59 = vpop.f32.mrf.mxu2  ;;  %v2840_v20 = vpop.f32.mrf.mxu3 }
 0x300   : > { %v2841_v14 = vadd.f32 %v2840_v20, %v2607_v59  ;;  %v2217_v59 = vadd.f32 %v2158_v52, %v7941_v35  ;;  %v4329_v35 = vld [vmem:[%s7296_s29 + $0x54] sm:$0xff] }
 0x302   : > { %v8489_v56 = vadd.f32 %v2841_v14, %v2216_v25  ;;  %v8491_v55 = vpop.f32.mrf.mxu0  ;;  %v8493_v39 = vpop.f32.mrf.mxu1  ;;  %v4438_v25 = vmax.f32 %v4328_v30, 0.0  ;;  %v4400_v14 = vmin.f32 %v4328_v30, 0.0 }
 0x303   : > { %9703 = vst [vmem:[#allocation48_spill] sm:$0xff] %v8491_v55 }
 0x304   : > { %9704 = vst [vmem:[#allocation18_spill] sm:$0xff] %v8493_v39  ;;  %6930 = vmatmul.msk.f32.gmra.mxu2 %vm354_vm0, %v4435_v8  ;;  %6966 = vmatmul.msk.f32.gmra.mxu3 %vm354_vm0, %v4397_v18  ;;  %v9709_v18 = vld [vmem:[#allocation75_spill] sm:$0xff] }
 0x305   : > { %7004 = vmatmul.msk.f32.gmra.mxu0 %vm354_vm0, %v4437_v57  ;;  %7040 = vmatmul.msk.f32.gmra.mxu1 %vm354_vm0, %v4399_v40  ;;  %v2161_v55 = vadd.f32 %v9710_v5, %v9709_v18  ;;  %v9714_v5 = vld [vmem:[#allocation78_spill] sm:$0xff] }
 0x307   : > { %v2610_v27 = vpop.f32.mrf.mxu2  ;;  %v2843_v15 = vpop.f32.mrf.mxu3 }
 0x308   : > { %v2844_v20 = vadd.f32 %v2843_v15, %v2610_v27  ;;  %v2218_v27 = vadd.f32 %v2161_v55, %v7954_v19  ;;  %v4330_v19 = vld [vmem:[%s7296_s29 + $0x5c] sm:$0xff] }
 0x30a   : > { %v8503_v39 = vadd.f32 %v2844_v20, %v2217_v59  ;;  %v8505_v21 = vpop.f32.mrf.mxu0  ;;  %v8507_v8 = vpop.f32.mrf.mxu1  ;;  %v4439_v59 = vmax.f32 %v4329_v35, 0.0  ;;  %v4401_v20 = vmin.f32 %v4329_v35, 0.0 }
 0x30b   : > { %9707 = vst [vmem:[#allocation19_spill] sm:$0xff] %v8505_v21 }
 0x30c   : > { %9708 = vst [vmem:[#allocation52_spill] sm:$0xff] %v8507_v8  ;;  %6931 = vmatmul.msk.f32.gmra.mxu2 %vm354_vm0, %v4436_v47  ;;  %6967 = vmatmul.msk.f32.gmra.mxu3 %vm354_vm0, %v4398_v28  ;;  %v9713_v28 = vld [vmem:[#allocation77_spill] sm:$0xff] }
 0x30d   : > { %7005 = vmatmul.msk.f32.gmra.mxu0 %vm354_vm0, %v4438_v25  ;;  %7041 = vmatmul.msk.f32.gmra.mxu1 %vm354_vm0, %v4400_v14  ;;  %v2164_v21 = vadd.f32 %v9714_v5, %v9713_v28  ;;  %v9718_v5 = vld [vmem:[#allocation80_spill] sm:$0xff] }
 0x30f   : > { %v2613_v52 = vpop.f32.mrf.mxu2  ;;  %v2846_v30 = vpop.f32.mrf.mxu3 }
 0x310   : > { %v2847_v15 = vadd.f32 %v2846_v30, %v2613_v52  ;;  %v2219_v52 = vadd.f32 %v2164_v21, %v7967_v54  ;;  %v4331_v54 = vld [vmem:[%s7296_s29 + $0x64] sm:$0xff] }
 0x312   : > { %v8517_v8 = vadd.f32 %v2847_v15, %v2218_v27  ;;  %v8519_v18 = vpop.f32.mrf.mxu0  ;;  %v8521_v47 = vpop.f32.mrf.mxu1  ;;  %v4440_v27 = vmax.f32 %v4330_v19, 0.0  ;;  %v4402_v15 = vmin.f32 %v4330_v19, 0.0 }
 0x313   : > { %9711 = vst [vmem:[#allocation50_spill] sm:$0xff] %v8519_v18 }
 0x314   : > { %9712 = vst [vmem:[#allocation51_spill] sm:$0xff] %v8521_v47  ;;  %6932 = vmatmul.msk.f32.gmra.mxu2 %vm354_vm0, %v4437_v57  ;;  %6968 = vmatmul.msk.f32.gmra.mxu3 %vm354_vm0, %v4399_v40  ;;  %v9717_v40 = vld [vmem:[#allocation79_spill] sm:$0xff] }
 0x315   : > { %7006 = vmatmul.msk.f32.gmra.mxu0 %vm354_vm0, %v4439_v59  ;;  %7042 = vmatmul.msk.f32.gmra.mxu1 %vm354_vm0, %v4401_v20  ;;  %v2167_v18 = vadd.f32 %v9718_v5, %v9717_v40  ;;  %v9722_v5 = vld [vmem:[#allocation82_spill] sm:$0xff] }
 0x317   : > { %v2616_v55 = vpop.f32.mrf.mxu2  ;;  %v2849_v35 = vpop.f32.mrf.mxu3 }
 0x318   : > { %v2850_v30 = vadd.f32 %v2849_v35, %v2616_v55  ;;  %v2220_v55 = vadd.f32 %v2167_v18, %v7980_v1  ;;  %v4332_v1 = vld [vmem:[%s7296_s29 + $0x6c] sm:$0xff] }
 0x31a   : > { %v8531_v47 = vadd.f32 %v2850_v30, %v2219_v52  ;;  %v8533_v28 = vpop.f32.mrf.mxu0  ;;  %v8535_v57 = vpop.f32.mrf.mxu1  ;;  %v4441_v52 = vmax.f32 %v4331_v54, 0.0  ;;  %v4403_v30 = vmin.f32 %v4331_v54, 0.0 }
 0x31b   : > { %9715 = vst [vmem:[#allocation20_spill] sm:$0xff] %v8533_v28 }
 0x31c   : > { %9716 = vst [vmem:[#allocation21_spill] sm:$0xff] %v8535_v57  ;;  %6933 = vmatmul.msk.f32.gmra.mxu2 %vm354_vm0, %v4438_v25  ;;  %6969 = vmatmul.msk.f32.gmra.mxu3 %vm354_vm0, %v4400_v14  ;;  %v9721_v14 = vld [vmem:[#allocation81_spill] sm:$0xff] }
 0x31d   : > { %7007 = vmatmul.msk.f32.gmra.mxu0 %vm354_vm0, %v4440_v27  ;;  %7043 = vmatmul.msk.f32.gmra.mxu1 %vm354_vm0, %v4402_v15  ;;  %v2170_v28 = vadd.f32 %v9722_v5, %v9721_v14  ;;  %v9726_v5 = vld [vmem:[#allocation84_spill] sm:$0xff] }
 0x31f   : > { %v2619_v21 = vpop.f32.mrf.mxu2  ;;  %v2852_v19 = vpop.f32.mrf.mxu3 }
 0x320   : > { %v2853_v35 = vadd.f32 %v2852_v19, %v2619_v21  ;;  %v2221_v21 = vadd.f32 %v2170_v28, %v7993_v12  ;;  %v4333_v12 = vld [vmem:[%s7296_s29 + $0x74] sm:$0xff] }
 0x322   : > { %v8545_v57 = vadd.f32 %v2853_v35, %v2220_v55  ;;  %v8547_v40 = vpop.f32.mrf.mxu0  ;;  %v8549_v25 = vpop.f32.mrf.mxu1  ;;  %v4442_v55 = vmax.f32 %v4332_v1, 0.0  ;;  %v4404_v35 = vmin.f32 %v4332_v1, 0.0 }
 0x323   : > { %9719 = vst [vmem:[#allocation55_spill] sm:$0xff] %v8547_v40 }
 0x324   : > { %9720 = vst [vmem:[#allocation53_spill] sm:$0xff] %v8549_v25  ;;  %6934 = vmatmul.msk.f32.gmra.mxu2 %vm354_vm0, %v4439_v59  ;;  %6970 = vmatmul.msk.f32.gmra.mxu3 %vm354_vm0, %v4401_v20  ;;  %v9725_v20 = vld [vmem:[#allocation83_spill] sm:$0xff] }
 0x325   : > { %7008 = vmatmul.msk.f32.gmra.mxu0 %vm354_vm0, %v4441_v52  ;;  %7044 = vmatmul.msk.f32.gmra.mxu1 %vm354_vm0, %v4403_v30  ;;  %v2173_v40 = vadd.f32 %v9726_v5, %v9725_v20  ;;  %v9730_v5 = vld [vmem:[#allocation86_spill] sm:$0xff] }
 0x327   : > { %v2622_v18 = vpop.f32.mrf.mxu2  ;;  %v2855_v54 = vpop.f32.mrf.mxu3 }
 0x328   : > { %v2856_v19 = vadd.f32 %v2855_v54, %v2622_v18  ;;  %v2222_v18 = vadd.f32 %v2173_v40, %v8006_v23  ;;  %v4334_v23 = vld [vmem:[%s7296_s29 + $0x7c] sm:$0xff] }
 0x32a   : > { %v8559_v25 = vadd.f32 %v2856_v19, %v2221_v21  ;;  %v8561_v14 = vpop.f32.mrf.mxu0  ;;  %v8563_v59 = vpop.f32.mrf.mxu1  ;;  %v4443_v21 = vmax.f32 %v4333_v12, 0.0  ;;  %v4405_v19 = vmin.f32 %v4333_v12, 0.0 }
 0x32b   : > { %9723 = vst [vmem:[#allocation54_spill] sm:$0xff] %v8561_v14 }
 0x32c   : > { %9724 = vst [vmem:[#allocation22_spill] sm:$0xff] %v8563_v59  ;;  %6935 = vmatmul.msk.f32.gmra.mxu2 %vm354_vm0, %v4440_v27  ;;  %6971 = vmatmul.msk.f32.gmra.mxu3 %vm354_vm0, %v4402_v15  ;;  %v9729_v15 = vld [vmem:[#allocation85_spill] sm:$0xff] }
 0x32d   : > { %7009 = vmatmul.msk.f32.gmra.mxu0 %vm354_vm0, %v4442_v55  ;;  %7045 = vmatmul.msk.f32.gmra.mxu1 %vm354_vm0, %v4404_v35  ;;  %v2176_v14 = vadd.f32 %v9730_v5, %v9729_v15  ;;  %v9734_v5 = vld [vmem:[#allocation88_spill] sm:$0xff] }
 0x32f   : > { %v2625_v28 = vpop.f32.mrf.mxu2  ;;  %v2858_v1 = vpop.f32.mrf.mxu3 }
 0x330   : > { %v2859_v54 = vadd.f32 %v2858_v1, %v2625_v28  ;;  %v2223_v28 = vadd.f32 %v2176_v14, %v8019_v34  ;;  %v4335_v34 = vld [vmem:[%s7296_s29 + $0x84] sm:$0xff] }
 0x332   : > { %v8573_v59 = vadd.f32 %v2859_v54, %v2222_v18  ;;  %v8575_v20 = vpop.f32.mrf.mxu0  ;;  %v8577_v27 = vpop.f32.mrf.mxu1  ;;  %v4444_v18 = vmax.f32 %v4334_v23, 0.0  ;;  %v4406_v54 = vmin.f32 %v4334_v23, 0.0 }
 0x333   : > { %9727 = vst [vmem:[#allocation23_spill] sm:$0xff] %v8575_v20 }
 0x334   : > { %9728 = vst [vmem:[#allocation58_spill] sm:$0xff] %v8577_v27  ;;  %6936 = vmatmul.msk.f32.gmra.mxu2 %vm354_vm0, %v4441_v52  ;;  %6972 = vmatmul.msk.f32.gmra.mxu3 %vm354_vm0, %v4403_v30  ;;  %v9733_v30 = vld [vmem:[#allocation87_spill] sm:$0xff] }
 0x335   : > { %7010 = vmatmul.msk.f32.gmra.mxu0 %vm354_vm0, %v4443_v21  ;;  %7046 = vmatmul.msk.f32.gmra.mxu1 %vm354_vm0, %v4405_v19  ;;  %v2179_v20 = vadd.f32 %v9734_v5, %v9733_v30  ;;  %v9738_v5 = vld [vmem:[#allocation90_spill] sm:$0xff] }
 0x337   : > { %v2628_v40 = vpop.f32.mrf.mxu2  ;;  %v2861_v12 = vpop.f32.mrf.mxu3 }
 0x338   : > { %v2862_v1 = vadd.f32 %v2861_v12, %v2628_v40  ;;  %v2224_v40 = vadd.f32 %v2179_v20, %v8032_v45  ;;  %v4336_v45 = vld [vmem:[%s7296_s29 + $0x8c] sm:$0xff] }
 0x33a   : > { %v8587_v27 = vadd.f32 %v2862_v1, %v2223_v28  ;;  %v8589_v15 = vpop.f32.mrf.mxu0  ;;  %v8591_v52 = vpop.f32.mrf.mxu1  ;;  %v4445_v28 = vmax.f32 %v4335_v34, 0.0  ;;  %v4407_v1 = vmin.f32 %v4335_v34, 0.0 }
 0x33b   : > { %9731 = vst [vmem:[#allocation56_spill] sm:$0xff] %v8589_v15 }
 0x33c   : > { %9732 = vst [vmem:[#allocation57_spill] sm:$0xff] %v8591_v52  ;;  %6937 = vmatmul.msk.f32.gmra.mxu2 %vm354_vm0, %v4442_v55  ;;  %6973 = vmatmul.msk.f32.gmra.mxu3 %vm354_vm0, %v4404_v35  ;;  %v9737_v35 = vld [vmem:[#allocation89_spill] sm:$0xff] }
 0x33d   : > { %7011 = vmatmul.msk.f32.gmra.mxu0 %vm354_vm0, %v4444_v18  ;;  %7047 = vmatmul.msk.f32.gmra.mxu1 %vm354_vm0, %v4406_v54  ;;  %v2182_v15 = vadd.f32 %v9738_v5, %v9737_v35  ;;  %v9742_v5 = vld [vmem:[#allocation92_spill] sm:$0xff] }
 0x33f   : > { %v2631_v14 = vpop.f32.mrf.mxu2  ;;  %v2864_v23 = vpop.f32.mrf.mxu3 }
 0x340   : > { %v2865_v12 = vadd.f32 %v2864_v23, %v2631_v14  ;;  %v2225_v14 = vadd.f32 %v2182_v15, %v8045_v61  ;;  %v4337_v61 = vld [vmem:[%s7296_s29 + $0x94] sm:$0xff] }
 0x342   : > { %v8601_v52 = vadd.f32 %v2865_v12, %v2224_v40  ;;  %v8603_v30 = vpop.f32.mrf.mxu0  ;;  %v8605_v55 = vpop.f32.mrf.mxu1  ;;  %v4446_v40 = vmax.f32 %v4336_v45, 0.0  ;;  %v4408_v12 = vmin.f32 %v4336_v45, 0.0 }
 0x343   : > { %9735 = vst [vmem:[#allocation24_spill] sm:$0xff] %v8603_v30 }
 0x344   : > { %9736 = vst [vmem:[#allocation25_spill] sm:$0xff] %v8605_v55  ;;  %6938 = vmatmul.msk.f32.gmra.mxu2 %vm354_vm0, %v4443_v21  ;;  %6974 = vmatmul.msk.f32.gmra.mxu3 %vm354_vm0, %v4405_v19  ;;  %v9741_v19 = vld [vmem:[#allocation91_spill] sm:$0xff] }
 0x345   : > { %7012 = vmatmul.msk.f32.gmra.mxu0 %vm354_vm0, %v4445_v28  ;;  %7048 = vmatmul.msk.f32.gmra.mxu1 %vm354_vm0, %v4407_v1  ;;  %v2185_v30 = vadd.f32 %v9742_v5, %v9741_v19  ;;  %v9746_v5 = vld [vmem:[#allocation94_spill] sm:$0xff] }
 0x347   : > { %v2634_v20 = vpop.f32.mrf.mxu2  ;;  %v2867_v34 = vpop.f32.mrf.mxu3 }
 0x348   : > { %v2868_v23 = vadd.f32 %v2867_v34, %v2634_v20  ;;  %v2226_v20 = vadd.f32 %v2185_v30, %v8058_v11  ;;  %v4338_v11 = vld [vmem:[%s7296_s29 + $0x9c] sm:$0xff] }
 0x34a   : > { %v8615_v55 = vadd.f32 %v2868_v23, %v2225_v14  ;;  %v8617_v35 = vpop.f32.mrf.mxu0  ;;  %v8619_v21 = vpop.f32.mrf.mxu1  ;;  %v4447_v14 = vmax.f32 %v4337_v61, 0.0  ;;  %v4409_v23 = vmin.f32 %v4337_v61, 0.0 }
 0x34b   : > { %9739 = vst [vmem:[#allocation59_spill] sm:$0xff] %v8617_v35 }
 0x34c   : > { %9740 = vst [vmem:[#allocation60_spill] sm:$0xff] %v8619_v21  ;;  %6939 = vmatmul.msk.f32.gmra.mxu2 %vm354_vm0, %v4444_v18  ;;  %6975 = vmatmul.msk.f32.gmra.mxu3 %vm354_vm0, %v4406_v54  ;;  %v9745_v54 = vld [vmem:[#allocation93_spill] sm:$0xff] }
 0x34d   : > { %7013 = vmatmul.msk.f32.gmra.mxu0 %vm354_vm0, %v4446_v40  ;;  %7049 = vmatmul.msk.f32.gmra.mxu1 %vm354_vm0, %v4408_v12  ;;  %v2188_v35 = vadd.f32 %v9746_v5, %v9745_v54  ;;  %v9749_v5 = vld [vmem:[#allocation96_spill] sm:$0xff] }
 0x34f   : > { %v2637_v15 = vpop.f32.mrf.mxu2  ;;  %v2870_v45 = vpop.f32.mrf.mxu3 }
 0x350   : > { %v2871_v34 = vadd.f32 %v2870_v45, %v2637_v15  ;;  %v2227_v15 = vadd.f32 %v2188_v35, %v8071_v26  ;;  %v4339_v26 = vld [vmem:[%s7296_s29 + $0xa4] sm:$0xff] }
 0x352   : > { %v8629_v21 = vadd.f32 %v2871_v34, %v2226_v20  ;;  %v8631_v19 = vpop.f32.mrf.mxu0  ;;  %v8633_v18 = vpop.f32.mrf.mxu1  ;;  %v4448_v20 = vmax.f32 %v4338_v11, 0.0  ;;  %v4410_v34 = vmin.f32 %v4338_v11, 0.0 }
 0x353   : > { %9743 = vst [vmem:[#allocation61_spill] sm:$0xff] %v8631_v19 }
 0x354   : > { %9744 = vst [vmem:[#allocation62_spill] sm:$0xff] %v8633_v18  ;;  %6940 = vmatmul.msk.f32.gmra.mxu2 %vm354_vm0, %v4445_v28  ;;  %6976 = vmatmul.msk.f32.gmra.mxu3 %vm354_vm0, %v4407_v1  ;;  %v9748_v1 = vld [vmem:[#allocation95_spill] sm:$0xff] }
 0x355   : > { %7014 = vmatmul.msk.f32.gmra.mxu0 %vm354_vm0, %v4447_v14  ;;  %7050 = vmatmul.msk.f32.gmra.mxu1 %vm354_vm0, %v4409_v23  ;;  %v2191_v19 = vadd.f32 %v9749_v5, %v9748_v1 }
 0x357   : > { %v2640_v30 = vpop.f32.mrf.mxu2  ;;  %v2873_v61 = vpop.f32.mrf.mxu3 }
 0x358   : > { %v2874_v45 = vadd.f32 %v2873_v61, %v2640_v30  ;;  %v2228_v30 = vadd.f32 %v2191_v19, %v8086_v62  ;;  %v4340_v62 = vld [vmem:[%s7296_s29 + $0xac] sm:$0xff] }
 0x35a   : > { %v8643_v18 = vadd.f32 %v2874_v45, %v2227_v15  ;;  %v8645_v54 = vpop.f32.mrf.mxu0  ;;  %v8647_v28 = vpop.f32.mrf.mxu1  ;;  %v4449_v15 = vmax.f32 %v4339_v26, 0.0  ;;  %v4411_v45 = vmin.f32 %v4339_v26, 0.0 }
 0x35b   : > { %9747 = vst [vmem:[#allocation63_spill] sm:$0xff] %v8647_v28 }
 0x35c   : > { %6941 = vmatmul.msk.f32.gmra.mxu2 %vm354_vm0, %v4446_v40  ;;  %6977 = vmatmul.msk.f32.gmra.mxu3 %vm354_vm0, %v4408_v12  ;;  %v3458_v12 = vadd.f32 %v8090_v31, %v8088_v42 }
 0x35d   : > { %7015 = vmatmul.msk.f32.gmra.mxu0 %vm354_vm0, %v4448_v20  ;;  %7051 = vmatmul.msk.f32.gmra.mxu1 %vm354_vm0, %v4410_v34 }
 0x35e   : > { %v3565_v26 = vadd.f32 %v3458_v12, %v8103_v37  ;;  %v4341_v37 = vld [vmem:[%s7296_s29 + $0xb4] sm:$0xff] }
 0x35f   : > { %v2643_v35 = vpop.f32.mrf.mxu2  ;;  %v2876_v11 = vpop.f32.mrf.mxu3 }
 0x360   : > { %v2877_v61 = vadd.f32 %v2876_v11, %v2643_v35  ;;  %v4450_v11 = vmax.f32 %v4340_v62, 0.0 }
 0x362   : > { %v8657_v28 = vadd.f32 %v2877_v61, %v2228_v30  ;;  %v8659_v1 = vpop.f32.mrf.mxu0  ;;  %v8661_v40 = vpop.f32.mrf.mxu1  ;;  %v4412_v30 = vmin.f32 %v4340_v62, 0.0 }
 0x364   : > { %6942 = vmatmul.msk.f32.gmra.mxu2 %vm354_vm0, %v4447_v14  ;;  %6978 = vmatmul.msk.f32.gmra.mxu3 %vm354_vm0, %v4409_v23  ;;  %v3461_v14 = vadd.f32 %v8107_v63, %v8105_v16 }
 0x365   : > { %7016 = vmatmul.msk.f32.gmra.mxu0 %vm354_vm0, %v4449_v15  ;;  %7052 = vmatmul.msk.f32.gmra.mxu1 %vm354_vm0, %v4411_v45 }
 0x366   : > { %v3566_v62 = vadd.f32 %v3461_v14, %v8120_v38  ;;  %v4342_v38 = vld [vmem:[%s7296_s29 + $0xbc] sm:$0xff] }
 0x367   : > { %v3910_v19 = vpop.f32.mrf.mxu2  ;;  %v4143_v5 = vpop.f32.mrf.mxu3 }
 0x368   : > { %v4144_v35 = vadd.f32 %v4143_v5, %v3910_v19  ;;  %v4451_v5 = vmax.f32 %v4341_v37, 0.0 }
 0x36a   : > { %v8671_v61 = vadd.f32 %v4144_v35, %v3565_v26  ;;  %v8673_v42 = vpop.f32.mrf.mxu0  ;;  %v8675_v31 = vpop.f32.mrf.mxu1  ;;  %v4413_v26 = vmin.f32 %v4341_v37, 0.0 }
 0x36c   : > { %6943 = vmatmul.msk.f32.gmra.mxu2 %vm354_vm0, %v4448_v20  ;;  %6979 = vmatmul.msk.f32.gmra.mxu3 %vm354_vm0, %v4410_v34  ;;  %v3464_v20 = vadd.f32 %v8124_v44, %v8122_v13 }
 0x36d   : > { %7017 = vmatmul.msk.f32.gmra.mxu0 %vm354_vm0, %v4450_v11  ;;  %7053 = vmatmul.msk.f32.gmra.mxu1 %vm354_vm0, %v4412_v30 }
 0x36e   : > { %v3567_v37 = vadd.f32 %v3464_v20, %v8137_v3  ;;  %v4343_v3 = vld [vmem:[%s7296_s29 + $0xc4] sm:$0xff] }
 0x36f   : > { %v3913_v23 = vpop.f32.mrf.mxu2  ;;  %v4146_v12 = vpop.f32.mrf.mxu3 }
 0x370   : > { %v4147_v19 = vadd.f32 %v4146_v12, %v3913_v23  ;;  %v4452_v12 = vmax.f32 %v4342_v38, 0.0 }
 0x372   : > { %v8685_v35 = vadd.f32 %v4147_v19, %v3566_v62  ;;  %v8687_v16 = vpop.f32.mrf.mxu0  ;;  %v8689_v63 = vpop.f32.mrf.mxu1  ;;  %v4414_v62 = vmin.f32 %v4342_v38, 0.0 }
 0x374   : > { %6944 = vmatmul.msk.f32.gmra.mxu2 %vm354_vm0, %v4449_v15  ;;  %6980 = vmatmul.msk.f32.gmra.mxu3 %vm354_vm0, %v4411_v45  ;;  %v3467_v15 = vadd.f32 %v8141_v49, %v8139_v48 }
 0x375   : > { %7018 = vmatmul.msk.f32.gmra.mxu0 %vm354_vm0, %v4451_v5  ;;  %7054 = vmatmul.msk.f32.gmra.mxu1 %vm354_vm0, %v4413_v26 }
 0x376   : > { %v3568_v38 = vadd.f32 %v3467_v15, %v8154_v6  ;;  %v4344_v6 = vld [vmem:[%s7296_s29 + $0xcc] sm:$0xff] }
 0x377   : > { %v3916_v34 = vpop.f32.mrf.mxu2  ;;  %v4149_v14 = vpop.f32.mrf.mxu3 }
 0x378   : > { %v4150_v23 = vadd.f32 %v4149_v14, %v3916_v34  ;;  %v4453_v14 = vmax.f32 %v4343_v3, 0.0 }
 0x37a   : > { %v8699_v19 = vadd.f32 %v4150_v23, %v3567_v37  ;;  %v8701_v13 = vpop.f32.mrf.mxu0  ;;  %v8703_v44 = vpop.f32.mrf.mxu1  ;;  %v4415_v37 = vmin.f32 %v4343_v3, 0.0 }
 0x37c   : > { %6945 = vmatmul.msk.f32.gmra.mxu2 %vm354_vm0, %v4450_v11  ;;  %6981 = vmatmul.msk.f32.gmra.mxu3 %vm354_vm0, %v4412_v30  ;;  %v3470_v11 = vadd.f32 %v8158_v53, %v8156_v7 }
 0x37d   : > { %7019 = vmatmul.msk.f32.gmra.mxu0 %vm354_vm0, %v4452_v12  ;;  %7055 = vmatmul.msk.f32.gmra.mxu1 %vm354_vm0, %v4414_v62 }
 0x37e   : > { %v3569_v3 = vadd.f32 %v3470_v11, %v8171_v32  ;;  %v4345_v32 = vld [vmem:[%s7296_s29 + $0xd4] sm:$0xff] }
 0x37f   : > { %v3919_v45 = vpop.f32.mrf.mxu2  ;;  %v4152_v20 = vpop.f32.mrf.mxu3 }
 0x380   : > { %v4153_v34 = vadd.f32 %v4152_v20, %v3919_v45  ;;  %v4454_v20 = vmax.f32 %v4344_v6, 0.0 }
 0x382   : > { %v8713_v23 = vadd.f32 %v4153_v34, %v3568_v38  ;;  %v8715_v48 = vpop.f32.mrf.mxu0  ;;  %v8717_v49 = vpop.f32.mrf.mxu1  ;;  %v4416_v38 = vmin.f32 %v4344_v6, 0.0 }
 0x384   : > { %6946 = vmatmul.msk.f32.gmra.mxu2 %vm354_vm0, %v4451_v5  ;;  %6982 = vmatmul.msk.f32.gmra.mxu3 %vm354_vm0, %v4413_v26  ;;  %v3473_v5 = vadd.f32 %v8175_v17, %v8173_v0 }
 0x385   : > { %7020 = vmatmul.msk.f32.gmra.mxu0 %vm354_vm0, %v4453_v14  ;;  %7056 = vmatmul.msk.f32.gmra.mxu1 %vm354_vm0, %v4415_v37 }
 0x386   : > { %v3570_v6 = vadd.f32 %v3473_v5, %v8188_v4  ;;  %v4346_v4 = vld [vmem:[%s7296_s29 + $0xdc] sm:$0xff] }
 0x387   : > { %v3922_v30 = vpop.f32.mrf.mxu2  ;;  %v4155_v15 = vpop.f32.mrf.mxu3 }
 0x388   : > { %v4156_v45 = vadd.f32 %v4155_v15, %v3922_v30  ;;  %v4455_v15 = vmax.f32 %v4345_v32, 0.0 }
 0x38a   : > { %v8727_v34 = vadd.f32 %v4156_v45, %v3569_v3  ;;  %v8729_v7 = vpop.f32.mrf.mxu0  ;;  %v8731_v53 = vpop.f32.mrf.mxu1  ;;  %v4417_v3 = vmin.f32 %v4345_v32, 0.0 }
 0x38c   : > { %6947 = vmatmul.msk.f32.gmra.mxu2 %vm354_vm0, %v4452_v12  ;;  %6983 = vmatmul.msk.f32.gmra.mxu3 %vm354_vm0, %v4414_v62  ;;  %v3476_v12 = vadd.f32 %v8192_v36, %v8190_v50 }
 0x38d   : > { %7021 = vmatmul.msk.f32.gmra.mxu0 %vm354_vm0, %v4454_v20  ;;  %7057 = vmatmul.msk.f32.gmra.mxu1 %vm354_vm0, %v4416_v38 }
 0x38e   : > { %v3571_v32 = vadd.f32 %v3476_v12, %v8205_v22  ;;  %v4347_v22 = vld [vmem:[%s7296_s29 + $0xe4] sm:$0xff] }
 0x38f   : > { %v3925_v26 = vpop.f32.mrf.mxu2  ;;  %v4158_v11 = vpop.f32.mrf.mxu3 }
 0x390   : > { %v4159_v30 = vadd.f32 %v4158_v11, %v3925_v26  ;;  %v4456_v11 = vmax.f32 %v4346_v4, 0.0 }
 0x392   : > { %v8741_v45 = vadd.f32 %v4159_v30, %v3570_v6  ;;  %v8743_v0 = vpop.f32.mrf.mxu0  ;;  %v8745_v17 = vpop.f32.mrf.mxu1  ;;  %v4418_v6 = vmin.f32 %v4346_v4, 0.0  ;;  %v9752_v4 = vld [vmem:[#allocation3_spill] sm:$0xff] }
 0x394   : > { %6948 = vmatmul.msk.f32.gmra.mxu2 %vm354_vm0, %v4453_v14  ;;  %6984 = vmatmul.msk.f32.gmra.mxu3 %vm354_vm0, %v4415_v37  ;;  %v3479_v14 = vadd.f32 %v8209_v41, %v8207_v46 }
 0x395   : > { %7022 = vmatmul.msk.f32.gmra.mxu0 %vm354_vm0, %v4455_v15  ;;  %7058 = vmatmul.msk.f32.gmra.mxu1 %vm354_vm0, %v4417_v3 }
 0x397   : > { %v3928_v62 = vpop.f32.mrf.mxu2  ;;  %v4161_v5 = vpop.f32.mrf.mxu3 }
 0x398   : > { %v4162_v26 = vadd.f32 %v4161_v5, %v3928_v62  ;;  %v3572_v62 = vadd.f32 %v3479_v14, %v9752_v4  ;;  %v4348_v14 = vld [vmem:[%s7296_s29 + $0xec] sm:$0xff] }
 0x39a   : > { %v8755_v30 = vadd.f32 %v4162_v26, %v3571_v32  ;;  %v8757_v50 = vpop.f32.mrf.mxu0  ;;  %v8759_v36 = vpop.f32.mrf.mxu1  ;;  %v4457_v32 = vmax.f32 %v4347_v22, 0.0  ;;  %v4419_v26 = vmin.f32 %v4347_v22, 0.0 }
 0x39b   : > { %9750 = vst [vmem:[#allocation64_spill] sm:$0xff] %v8757_v50 }
 0x39c   : > { %9751 = vst [vmem:[#allocation65_spill] sm:$0xff] %v8759_v36  ;;  %6949 = vmatmul.msk.f32.gmra.mxu2 %vm354_vm0, %v4454_v20  ;;  %6985 = vmatmul.msk.f32.gmra.mxu3 %vm354_vm0, %v4416_v38  ;;  %v9756_v20 = vld [vmem:[#allocation28_spill] sm:$0xff]  ;;  %v9757_v38 = vld [vmem:[#allocation26_spill] sm:$0xff] }
 0x39d   : > { %7023 = vmatmul.msk.f32.gmra.mxu0 %vm354_vm0, %v4456_v11  ;;  %7059 = vmatmul.msk.f32.gmra.mxu1 %vm354_vm0, %v4418_v6  ;;  %v3482_v50 = vadd.f32 %v9757_v38, %v9756_v20  ;;  %v9763_v38 = vld [vmem:[#allocation5_spill] sm:$0xff] }
 0x39f   : > { %v3931_v37 = vpop.f32.mrf.mxu2  ;;  %v4164_v12 = vpop.f32.mrf.mxu3 }
 0x3a0   : > { %v4165_v5 = vadd.f32 %v4164_v12, %v3931_v37  ;;  %v9758_v12 = vld [vmem:[#allocation27_spill] sm:$0xff] }
 0x3a1   : > { %v3573_v4 = vadd.f32 %v3482_v50, %v9758_v12  ;;  %v4349_v50 = vld [vmem:[%s7296_s29 + $0xf4] sm:$0xff] }
 0x3a2   : > { %v8769_v36 = vadd.f32 %v4165_v5, %v3572_v62  ;;  %v8771_v46 = vpop.f32.mrf.mxu0  ;;  %v8773_v41 = vpop.f32.mrf.mxu1  ;;  %v4458_v5 = vmax.f32 %v4348_v14, 0.0 }
 0x3a3   : > { %9754 = vst [vmem:[#allocation67_spill] sm:$0xff] %v8771_v46 }
 0x3a4   : > { %9753 = vst [vmem:[#allocation66_spill] sm:$0xff] %v8769_v36  ;;  %6950 = vmatmul.msk.f32.gmra.mxu2 %vm354_vm0, %v4455_v15  ;;  %6986 = vmatmul.msk.f32.gmra.mxu3 %vm354_vm0, %v4417_v3  ;;  %v9762_v3 = vld [vmem:[#allocation4_spill] sm:$0xff] }
 0x3a5   : > { %9755 = vst [vmem:[#allocation68_spill] sm:$0xff] %v8773_v41  ;;  %7024 = vmatmul.msk.f32.gmra.mxu0 %vm354_vm0, %v4457_v32  ;;  %7060 = vmatmul.msk.f32.gmra.mxu1 %vm354_vm0, %v4419_v26  ;;  %v4420_v41 = vmin.f32 %v4348_v14, 0.0  ;;  %v3485_v36 = vadd.f32 %v9763_v38, %v9762_v3  ;;  %v9769_v38 = vld [vmem:[#allocation30_spill] sm:$0xff] }
 0x3a7   : > { %v3934_v22 = vpop.f32.mrf.mxu2  ;;  %v4167_v37 = vpop.f32.mrf.mxu3 }
 0x3a8   : > { %v4168_v62 = vadd.f32 %v4167_v37, %v3934_v22  ;;  %v9764_v37 = vld [vmem:[#allocation31_spill] sm:$0xff] }
 0x3a9   : > { %v3574_v12 = vadd.f32 %v3485_v36, %v9764_v37  ;;  %v4350_v36 = vld [vmem:[%s7296_s29 + $0xfc] sm:$0xff] }
 0x3aa   : > { %v8783_v46 = vadd.f32 %v4168_v62, %v3573_v4  ;;  %v8785_v20 = vpop.f32.mrf.mxu0  ;;  %v8787_v15 = vpop.f32.mrf.mxu1  ;;  %v4459_v62 = vmax.f32 %v4349_v50, 0.0 }
 0x3ab   : > { %9760 = vst [vmem:[#allocation70_spill] sm:$0xff] %v8785_v20 }
 0x3ac   : > { %9759 = vst [vmem:[#allocation69_spill] sm:$0xff] %v8783_v46  ;;  %6951 = vmatmul.msk.f32.gmra.mxu2 %vm354_vm0, %v4456_v11  ;;  %6987 = vmatmul.msk.f32.gmra.mxu3 %vm354_vm0, %v4418_v6  ;;  %v9768_v6 = vld [vmem:[#allocation29_spill] sm:$0xff] }
 0x3ad   : > { %9761 = vst [vmem:[#allocation71_spill] sm:$0xff] %v8787_v15  ;;  %7025 = vmatmul.msk.f32.gmra.mxu0 %vm354_vm0, %v4458_v5  ;;  %7061 = vmatmul.msk.f32.gmra.mxu1 %vm354_vm0, %v4420_v41  ;;  %v4421_v15 = vmin.f32 %v4349_v50, 0.0  ;;  %v3488_v46 = vadd.f32 %v9769_v38, %v9768_v6  ;;  %v9775_v38 = vld [vmem:[#allocation34_spill] sm:$0xff] }
 0x3af   : > { %v3937_v14 = vpop.f32.mrf.mxu2  ;;  %v4170_v22 = vpop.f32.mrf.mxu3 }
 0x3b0   : > { %v4171_v4 = vadd.f32 %v4170_v22, %v3937_v14  ;;  %v9770_v22 = vld [vmem:[#allocation6_spill] sm:$0xff] }
 0x3b1   : > { %v3575_v37 = vadd.f32 %v3488_v46, %v9770_v22  ;;  %v4351_v46 = vld [vmem:[%s7296_s29 + $0x104] sm:$0xff] }
 0x3b2   : > { %v8797_v20 = vadd.f32 %v4171_v4, %v3574_v12  ;;  %v8799_v3 = vpop.f32.mrf.mxu0  ;;  %v8801_v11 = vpop.f32.mrf.mxu1  ;;  %v4460_v4 = vmax.f32 %v4350_v36, 0.0 }
 0x3b3   : > { %9766 = vst [vmem:[#allocation73_spill] sm:$0xff] %v8799_v3 }
 0x3b4   : > { %9765 = vst [vmem:[#allocation72_spill] sm:$0xff] %v8797_v20  ;;  %6952 = vmatmul.msk.f32.gmra.mxu2 %vm354_vm0, %v4457_v32  ;;  %6988 = vmatmul.msk.f32.gmra.mxu3 %vm354_vm0, %v4419_v26  ;;  %v9774_v26 = vld [vmem:[#allocation7_spill] sm:$0xff] }
 0x3b5   : > { %9767 = vst [vmem:[#allocation74_spill] sm:$0xff] %v8801_v11  ;;  %7026 = vmatmul.msk.f32.gmra.mxu0 %vm354_vm0, %v4459_v62  ;;  %7062 = vmatmul.msk.f32.gmra.mxu1 %vm354_vm0, %v4421_v15  ;;  %v4422_v11 = vmin.f32 %v4350_v36, 0.0  ;;  %v3491_v20 = vadd.f32 %v9775_v38, %v9774_v26  ;;  %v9781_v38 = vld [vmem:[#allocation8_spill] sm:$0xff] }
 0x3b7   : > { %v3940_v50 = vpop.f32.mrf.mxu2  ;;  %v4173_v14 = vpop.f32.mrf.mxu3 }
 0x3b8   : > { %v4174_v12 = vadd.f32 %v4173_v14, %v3940_v50  ;;  %v9776_v14 = vld [vmem:[#allocation32_spill] sm:$0xff] }
 0x3b9   : > { %v3576_v22 = vadd.f32 %v3491_v20, %v9776_v14  ;;  %v4352_v20 = vld [vmem:[%s7296_s29 + $0x10c] sm:$0xff] }
 0x3ba   : > { %v8811_v3 = vadd.f32 %v4174_v12, %v3575_v37  ;;  %v8813_v6 = vpop.f32.mrf.mxu0  ;;  %v8815_v32 = vpop.f32.mrf.mxu1  ;;  %v4461_v12 = vmax.f32 %v4351_v46, 0.0 }
 0x3bb   : > { %9772 = vst [vmem:[#allocation76_spill] sm:$0xff] %v8813_v6 }
 0x3bc   : > { %9771 = vst [vmem:[#allocation75_spill] sm:$0xff] %v8811_v3  ;;  %6953 = vmatmul.msk.f32.gmra.mxu2 %vm354_vm0, %v4458_v5  ;;  %6989 = vmatmul.msk.f32.gmra.mxu3 %vm354_vm0, %v4420_v41  ;;  %v9780_v41 = vld [vmem:[#allocation33_spill] sm:$0xff] }
 0x3bd   : > { %9773 = vst [vmem:[#allocation77_spill] sm:$0xff] %v8815_v32  ;;  %7027 = vmatmul.msk.f32.gmra.mxu0 %vm354_vm0, %v4460_v4  ;;  %7063 = vmatmul.msk.f32.gmra.mxu1 %vm354_vm0, %v4422_v11  ;;  %v4423_v32 = vmin.f32 %v4351_v46, 0.0  ;;  %v3494_v3 = vadd.f32 %v9781_v38, %v9780_v41  ;;  %v9787_v38 = vld [vmem:[#allocation35_spill] sm:$0xff] }
 0x3bf   : > { %v3943_v36 = vpop.f32.mrf.mxu2  ;;  %v4176_v50 = vpop.f32.mrf.mxu3 }
 0x3c0   : > { %v4177_v37 = vadd.f32 %v4176_v50, %v3943_v36  ;;  %v9782_v50 = vld [vmem:[#allocation9_spill] sm:$0xff] }
 0x3c1   : > { %v3577_v14 = vadd.f32 %v3494_v3, %v9782_v50  ;;  %v4353_v3 = vld [vmem:[%s7296_s29 + $0x114] sm:$0xff] }
 0x3c2   : > { %v8825_v6 = vadd.f32 %v4177_v37, %v3576_v22  ;;  %v8827_v26 = vpop.f32.mrf.mxu0  ;;  %v8829_v5 = vpop.f32.mrf.mxu1  ;;  %v4462_v37 = vmax.f32 %v4352_v20, 0.0 }
 0x3c3   : > { %9778 = vst [vmem:[#allocation79_spill] sm:$0xff] %v8827_v26 }
 0x3c4   : > { %9777 = vst [vmem:[#allocation78_spill] sm:$0xff] %v8825_v6  ;;  %6954 = vmatmul.msk.f32.gmra.mxu2 %vm354_vm0, %v4459_v62  ;;  %6990 = vmatmul.msk.f32.gmra.mxu3 %vm354_vm0, %v4421_v15  ;;  %v9786_v15 = vld [vmem:[#allocation37_spill] sm:$0xff] }
 0x3c5   : > { %9779 = vst [vmem:[#allocation80_spill] sm:$0xff] %v8829_v5  ;;  %7028 = vmatmul.msk.f32.gmra.mxu0 %vm354_vm0, %v4461_v12  ;;  %7064 = vmatmul.msk.f32.gmra.mxu1 %vm354_vm0, %v4423_v32  ;;  %v4424_v5 = vmin.f32 %v4352_v20, 0.0  ;;  %v3497_v6 = vadd.f32 %v9787_v38, %v9786_v15  ;;  %v9792_v38 = vld [vmem:[#allocation11_spill] sm:$0xff] }
 0x3c7   : > { %v3946_v46 = vpop.f32.mrf.mxu2  ;;  %v4179_v36 = vpop.f32.mrf.mxu3 }
 0x3c8   : > { %v4180_v22 = vadd.f32 %v4179_v36, %v3946_v46  ;;  %v9788_v36 = vld [vmem:[#allocation36_spill] sm:$0xff] }
 0x3c9   : > { %v3578_v50 = vadd.f32 %v3497_v6, %v9788_v36  ;;  %v4354_v6 = vld [vmem:[%s7296_s29 + $0x11c] sm:$0xff] }
 0x3ca   : > { %v8839_v26 = vadd.f32 %v4180_v22, %v3577_v14  ;;  %v8841_v41 = vpop.f32.mrf.mxu0  ;;  %v8843_v62 = vpop.f32.mrf.mxu1  ;;  %v4463_v22 = vmax.f32 %v4353_v3, 0.0 }
 0x3cb   : > { %9784 = vst [vmem:[#allocation82_spill] sm:$0xff] %v8841_v41 }
 0x3cc   : > { %9783 = vst [vmem:[#allocation81_spill] sm:$0xff] %v8839_v26  ;;  %6955 = vmatmul.msk.f32.gmra.mxu2 %vm354_vm0, %v4460_v4  ;;  %6991 = vmatmul.msk.f32.gmra.mxu3 %vm354_vm0, %v4422_v11  ;;  %v9791_v11 = vld [vmem:[#allocation10_spill] sm:$0xff] }
 0x3cd   : > { %9785 = vst [vmem:[#allocation83_spill] sm:$0xff] %v8843_v62  ;;  %7029 = vmatmul.msk.f32.gmra.mxu0 %vm354_vm0, %v4462_v37  ;;  %7065 = vmatmul.msk.f32.gmra.mxu1 %vm354_vm0, %v4424_v5  ;;  %v4425_v62 = vmin.f32 %v4353_v3, 0.0  ;;  %v3500_v26 = vadd.f32 %v9792_v38, %v9791_v11  ;;  %v9796_v38 = vld [vmem:[#allocation38_spill] sm:$0xff] }
 0x3cf   : > { %v3949_v20 = vpop.f32.mrf.mxu2  ;;  %v4182_v46 = vpop.f32.mrf.mxu3 }
 0x3d0   : > { %v4183_v14 = vadd.f32 %v4182_v46, %v3949_v20  ;;  %v3579_v46 = vadd.f32 %v3500_v26, %v8341_v58  ;;  %v4355_v58 = vld [vmem:[%s7296_s29 + $0x124] sm:$0xff] }
 0x3d2   : > { %v8853_v41 = vadd.f32 %v4183_v14, %v3578_v50  ;;  %v8855_v15 = vpop.f32.mrf.mxu0  ;;  %v8857_v4 = vpop.f32.mrf.mxu1  ;;  %v4464_v50 = vmax.f32 %v4354_v6, 0.0  ;;  %v4426_v14 = vmin.f32 %v4354_v6, 0.0 }
 0x3d3   : > { %9789 = vst [vmem:[#allocation84_spill] sm:$0xff] %v8855_v15 }
 0x3d4   : > { %9790 = vst [vmem:[#allocation85_spill] sm:$0xff] %v8857_v4  ;;  %6956 = vmatmul.msk.f32.gmra.mxu2 %vm354_vm0, %v4461_v12  ;;  %6992 = vmatmul.msk.f32.gmra.mxu3 %vm354_vm0, %v4423_v32  ;;  %v9795_v32 = vld [vmem:[#allocation40_spill] sm:$0xff] }
 0x3d5   : > { %7030 = vmatmul.msk.f32.gmra.mxu0 %vm354_vm0, %v4463_v22  ;;  %7066 = vmatmul.msk.f32.gmra.mxu1 %vm354_vm0, %v4425_v62  ;;  %v3503_v15 = vadd.f32 %v9796_v38, %v9795_v32  ;;  %v9799_v38 = vld [vmem:[#allocation12_spill] sm:$0xff] }
 0x3d7   : > { %v3952_v3 = vpop.f32.mrf.mxu2  ;;  %v4185_v20 = vpop.f32.mrf.mxu3 }
 0x3d8   : > { %v4186_v36 = vadd.f32 %v4185_v20, %v3952_v3  ;;  %v3580_v3 = vadd.f32 %v3503_v15, %v8358_v43  ;;  %v4356_v43 = vld [vmem:[%s7296_s29 + $0x12c] sm:$0xff] }
 0x3da   : > { %v8867_v4 = vadd.f32 %v4186_v36, %v3579_v46  ;;  %v8869_v11 = vpop.f32.mrf.mxu0  ;;  %v8871_v12 = vpop.f32.mrf.mxu1  ;;  %v4465_v46 = vmax.f32 %v4355_v58, 0.0  ;;  %v4427_v36 = vmin.f32 %v4355_v58, 0.0 }
 0x3db   : > { %9793 = vst [vmem:[#allocation86_spill] sm:$0xff] %v8869_v11 }
 0x3dc   : > { %9794 = vst [vmem:[#allocation87_spill] sm:$0xff] %v8871_v12  ;;  %6957 = vmatmul.msk.f32.gmra.mxu2 %vm354_vm0, %v4462_v37  ;;  %6993 = vmatmul.msk.f32.gmra.mxu3 %vm354_vm0, %v4424_v5  ;;  %v9798_v5 = vld [vmem:[#allocation39_spill] sm:$0xff] }
 0x3dd   : > { %7031 = vmatmul.msk.f32.gmra.mxu0 %vm354_vm0, %v4464_v50  ;;  %7067 = vmatmul.msk.f32.gmra.mxu1 %vm354_vm0, %v4426_v14  ;;  %v3506_v11 = vadd.f32 %v9799_v38, %v9798_v5 }
 0x3df   : > { %v3955_v26 = vpop.f32.mrf.mxu2  ;;  %v4188_v6 = vpop.f32.mrf.mxu3 }
 0x3e0   : > { %v4189_v20 = vadd.f32 %v4188_v6, %v3955_v26  ;;  %v3581_v26 = vadd.f32 %v3506_v11, %v8381_v24  ;;  %v4357_v24 = vld [vmem:[%s7296_s29 + $0x134] sm:$0xff] }
 0x3e2   : > { %v8881_v12 = vadd.f32 %v4189_v20, %v3580_v3  ;;  %v8883_v32 = vpop.f32.mrf.mxu0  ;;  %v8885_v37 = vpop.f32.mrf.mxu1  ;;  %v4466_v3 = vmax.f32 %v4356_v43, 0.0  ;;  %v4428_v20 = vmin.f32 %v4356_v43, 0.0 }
 0x3e3   : > { %9797 = vst [vmem:[#allocation88_spill] sm:$0xff] %v8885_v37 }
 0x3e4   : > { %6958 = vmatmul.msk.f32.gmra.mxu2 %vm354_vm0, %v4463_v22  ;;  %6994 = vmatmul.msk.f32.gmra.mxu3 %vm354_vm0, %v4425_v62  ;;  %v9801_v62 = vld [vmem:[#allocation13_spill] sm:$0xff] }
 0x3e5   : > { %7032 = vmatmul.msk.f32.gmra.mxu0 %vm354_vm0, %v4465_v46  ;;  %7068 = vmatmul.msk.f32.gmra.mxu1 %vm354_vm0, %v4427_v36  ;;  %v3509_v38 = vadd.f32 %v9801_v62, %v8383_v29 }
 0x3e7   : > { %v3958_v15 = vpop.f32.mrf.mxu2  ;;  %v4191_v58 = vpop.f32.mrf.mxu3 }
 0x3e8   : > { %v4192_v6 = vadd.f32 %v4191_v58, %v3958_v15  ;;  %v3582_v15 = vadd.f32 %v3509_v38, %v8402_v10  ;;  %v4358_v10 = vld [vmem:[%s7296_s29 + $0x13c] sm:$0xff] }
 0x3ea   : > { %v8895_v37 = vadd.f32 %v4192_v6, %v3581_v26  ;;  %v8897_v5 = vpop.f32.mrf.mxu0  ;;  %v8899_v22 = vpop.f32.mrf.mxu1  ;;  %v4467_v26 = vmax.f32 %v4357_v24, 0.0  ;;  %v4429_v6 = vmin.f32 %v4357_v24, 0.0 }
 0x3eb   : > { %9800 = vst [vmem:[#allocation89_spill] sm:$0xff] %v8899_v22 }
 0x3ec   : > { %6959 = vmatmul.msk.f32.gmra.mxu2 %vm354_vm0, %v4464_v50  ;;  %6995 = vmatmul.msk.f32.gmra.mxu3 %vm354_vm0, %v4426_v14  ;;  %v9805_v14 = vld [vmem:[#allocation43_spill] sm:$0xff] }
 0x3ed   : > { %7033 = vmatmul.msk.f32.gmra.mxu0 %vm354_vm0, %v4466_v3  ;;  %7069 = vmatmul.msk.f32.gmra.mxu1 %vm354_vm0, %v4428_v20  ;;  %v3512_v62 = vadd.f32 %v9805_v14, %v8404_v60 }
 0x3ef   : > { %v3961_v11 = vpop.f32.mrf.mxu2  ;;  %v4194_v43 = vpop.f32.mrf.mxu3 }
 0x3f0   : > { %v4195_v58 = vadd.f32 %v4194_v43, %v3961_v11  ;;  %v9806_v11 = vld [vmem:[#allocation41_spill] sm:$0xff] }
 0x3f1   : > { %v3583_v43 = vadd.f32 %v3512_v62, %v9806_v11  ;;  %v5695_v62 = vld [vmem:[%s7296_s29 + $0x26] sm:$0xff] }
 0x3f2   : > { %v8909_v22 = vadd.f32 %v4195_v58, %v3582_v15  ;;  %v8911_v29 = vpop.f32.mrf.mxu0  ;;  %v8913_v50 = vpop.f32.mrf.mxu1  ;;  %v4468_v58 = vmax.f32 %v4358_v10, 0.0 }
 0x3f3   : > { %9803 = vst [vmem:[#allocation91_spill] sm:$0xff] %v8911_v29 }
 0x3f4   : > { %9802 = vst [vmem:[#allocation90_spill] sm:$0xff] %v8909_v22  ;;  %6960 = vmatmul.msk.f32.gmra.mxu2 %vm354_vm0, %v4465_v46  ;;  %6996 = vmatmul.msk.f32.gmra.mxu3 %vm354_vm0, %v4427_v36  ;;  %v9810_v36 = vld [vmem:[#allocation42_spill] sm:$0xff]  ;;  %v5010_v22 = vld [vmem:[%s7296_s29 + $0x2d] sm:$0xff] }
 0x3f5   : > { %9804 = vst [vmem:[#allocation92_spill] sm:$0xff] %v8913_v50  ;;  %7034 = vmatmul.msk.f32.gmra.mxu0 %vm354_vm0, %v4467_v26  ;;  %7070 = vmatmul.msk.f32.gmra.mxu1 %vm354_vm0, %v4429_v6  ;;  %v4430_v50 = vmin.f32 %v4358_v10, 0.0  ;;  %v9811_v26 = vld [vmem:[#allocation14_spill] sm:$0xff]  ;;  %v5009_v6 = vld [vmem:[%s7296_s29 + $0x25] sm:$0xff] }
 0x3f6   : > { %v3515_v14 = vadd.f32 %v9811_v26, %v9810_v36  ;;  %v5805_v36 = vmax.f32 %v5695_v62, 0.0  ;;  %v5767_v26 = vmin.f32 %v5695_v62, 0.0 }
 0x3f7   : > { %v3964_v38 = vpop.f32.mrf.mxu2  ;;  %v4197_v24 = vpop.f32.mrf.mxu3 }
 0x3f8   : > { %v4198_v15 = vadd.f32 %v4197_v24, %v3964_v38  ;;  %v9812_v24 = vld [vmem:[#allocation15_spill] sm:$0xff] }
 0x3f9   : > { %v3584_v11 = vadd.f32 %v3515_v14, %v9812_v24  ;;  %v5696_v14 = vld [vmem:[%s7296_s29 + $0x2e] sm:$0xff]  ;;  %v5120_v24 = vmax.f32 %v5010_v22, 0.0 }
 0x3fa   : > { %v8923_v29 = vadd.f32 %v4198_v15, %v3583_v43  ;;  %v8925_v60 = vpop.f32.mrf.mxu0  ;;  %v8927_v46 = vpop.f32.mrf.mxu1  ;;  %v5119_v15 = vmax.f32 %v5009_v6, 0.0 }
 0x3fb   : > { %9808 = vst [vmem:[#allocation94_spill] sm:$0xff] %v8925_v60  ;;  %v9815_v60 = vld [vmem:[#allocation44_spill] sm:$0xff] }
 0x3fc   : > { %9807 = vst [vmem:[#allocation93_spill] sm:$0xff] %v8923_v29  ;;  %6961 = vmatmul.msk.f32.gmra.mxu2 %vm354_vm0, %v4466_v3  ;;  %6997 = vmatmul.msk.f32.gmra.mxu3 %vm354_vm0, %v4428_v20 }
 0x3fd   : > { %9809 = vst [vmem:[#allocation95_spill] sm:$0xff] %v8927_v46  ;;  %7035 = vmatmul.msk.f32.gmra.mxu0 %vm354_vm0, %v4468_v58  ;;  %7071 = vmatmul.msk.f32.gmra.mxu1 %vm354_vm0, %v4430_v50  ;;  %v5081_v46 = vmin.f32 %v5009_v6, 0.0  ;;  %v9814_v50 = vld [vmem:[#allocation46_spill] sm:$0xff] }
 0x3fe   : > { %v3518_v29 = vadd.f32 %v9815_v60, %v9814_v50  ;;  %v5806_v60 = vmax.f32 %v5696_v14, 0.0 }
 0x3ff   : > { %v3967_v10 = vpop.f32.mrf.mxu2  ;;  %v4200_v38 = vpop.f32.mrf.mxu3 }
 0x400   : > { %v4201_v43 = vadd.f32 %v4200_v38, %v3967_v10  ;;  %v3585_v10 = vadd.f32 %v3518_v29, %v8447_v33  ;;  %v5697_v33 = vld [vmem:[%s7296_s29 + $0x36] sm:$0xff] }
 0x402   : > { %v8938_v3 = vadd.f32 %v4201_v43, %v3584_v11  ;;  %v8940_v20 = vpop.f32.mrf.mxu0  ;;  %v8942_v58 = vpop.f32.mrf.mxu1  ;;  %v5082_v11 = vmin.f32 %v5010_v22, 0.0  ;;  %v5768_v43 = vmin.f32 %v5696_v14, 0.0 }
 0x403   : > { %9813 = vst [vmem:[#allocation96_spill] sm:$0xff] %v8942_v58  ;;  %v5011_v58 = vld [vmem:[%s7296_s29 + $0x35] sm:$0xff] }
 0x404   : > { %7074 = vmatmul.msk.f32.vlgmr.msra.gmra.mxu2 %vm354_vm0, %v5119_v15  ;;  %7110 = vmatmul.msk.f32.vlgmr.msra.gmra.mxu3 %vm354_vm0, %v5081_v46 }
 0x405   : > { %7148 = vmatmul.msk.f32.vlgmr.msra.gmra.mxu0 %vm354_vm0, %v5805_v36  ;;  %7184 = vmatmul.msk.f32.vlgmr.msra.gmra.mxu1 %vm354_vm0, %v5767_v26  ;;  %v9818_v36 = vld [vmem:[#allocation45_spill] sm:$0xff] }
 0x406   : > { %v3521_v26 = vadd.f32 %v9818_v36, %v8449_v9  ;;  %v5807_v9 = vmax.f32 %v5697_v33, 0.0 }
 0x407   : > { %v3970_v6 = vpop.f32.mrf.mxu2  ;;  %v4203_v62 = vpop.f32.mrf.mxu3 }
 0x408   : > { %v4204_v38 = vadd.f32 %v4203_v62, %v3970_v6  ;;  %v3586_v14 = vadd.f32 %v3521_v26, %v8461_v51  ;;  %v5121_v62 = vmax.f32 %v5011_v58, 0.0  ;;  %v5698_v51 = vld [vmem:[%s7296_s29 + $0x3e] sm:$0xff] }
 0x40a   : > { %v8953_v15 = vadd.f32 %v4204_v38, %v3585_v10  ;;  %v8955_v46 = vpop.f32.mrf.mxu0  ;;  %v8957_v50 = vpop.f32.mrf.mxu1  ;;  %v5083_v10 = vmin.f32 %v5011_v58, 0.0  ;;  %v5769_v38 = vmin.f32 %v5697_v33, 0.0 }
 0x40b   : > { %9816 = vst [vmem:[#allocation3_spill] sm:$0xff] %v8955_v46  ;;  %v5012_v46 = vld [vmem:[%s7296_s29 + $0x3d] sm:$0xff] }
 0x40c   : > { %9817 = vst [vmem:[#allocation28_spill] sm:$0xff] %v8957_v50  ;;  %7075 = vmatmul.msk.f32.gmra.mxu2 %vm354_vm0, %v5120_v24  ;;  %7111 = vmatmul.msk.f32.gmra.mxu3 %vm354_vm0, %v5082_v11 }
 0x40d   : > { %7149 = vmatmul.msk.f32.gmra.mxu0 %vm354_vm0, %v5806_v60  ;;  %7185 = vmatmul.msk.f32.gmra.mxu1 %vm354_vm0, %v5768_v43  ;;  %v9821_v60 = vld [vmem:[#allocation16_spill] sm:$0xff]  ;;  %v9822_v43 = vld [vmem:[#allocation17_spill] sm:$0xff] }
 0x40e   : > { %v3524_v50 = vadd.f32 %v9822_v43, %v9821_v60  ;;  %v5770_v60 = vmin.f32 %v5698_v51, 0.0 }
 0x40f   : > { %v3973_v22 = vpop.f32.mrf.mxu2  ;;  %v4206_v29 = vpop.f32.mrf.mxu3 }
 0x410   : > { %v4207_v6 = vadd.f32 %v4206_v29, %v3973_v22  ;;  %v3587_v33 = vadd.f32 %v3524_v50, %v8475_v2  ;;  %v5122_v29 = vmax.f32 %v5012_v46, 0.0  ;;  %v5699_v2 = vld [vmem:[%s7296_s29 + $0x46] sm:$0xff] }
 0x412   : > { %v8968_v24 = vadd.f32 %v4207_v6, %v3586_v14  ;;  %v8970_v11 = vpop.f32.mrf.mxu0  ;;  %v8972_v36 = vpop.f32.mrf.mxu1  ;;  %v5084_v14 = vmin.f32 %v5012_v46, 0.0  ;;  %v5808_v6 = vmax.f32 %v5698_v51, 0.0 }
 0x413   : > { %9819 = vst [vmem:[#allocation26_spill] sm:$0xff] %v8970_v11  ;;  %v5013_v11 = vld [vmem:[%s7296_s29 + $0x45] sm:$0xff] }
 0x414   : > { %9820 = vst [vmem:[#allocation27_spill] sm:$0xff] %v8972_v36  ;;  %7076 = vmatmul.msk.f32.gmra.mxu2 %vm354_vm0, %v5121_v62  ;;  %7112 = vmatmul.msk.f32.gmra.mxu3 %vm354_vm0, %v5083_v10 }
 0x415   : > { %7150 = vmatmul.msk.f32.gmra.mxu0 %vm354_vm0, %v5807_v9  ;;  %7186 = vmatmul.msk.f32.gmra.mxu1 %vm354_vm0, %v5769_v38  ;;  %v9825_v9 = vld [vmem:[#allocation49_spill] sm:$0xff]  ;;  %v9826_v38 = vld [vmem:[#allocation47_spill] sm:$0xff] }
 0x416   : > { %v3527_v36 = vadd.f32 %v9826_v38, %v9825_v9  ;;  %v5771_v9 = vmin.f32 %v5699_v2, 0.0 }
 0x417   : > { %v3976_v58 = vpop.f32.mrf.mxu2  ;;  %v4209_v26 = vpop.f32.mrf.mxu3 }
 0x418   : > { %v4210_v22 = vadd.f32 %v4209_v26, %v3976_v58  ;;  %v3588_v51 = vadd.f32 %v3527_v36, %v8489_v56  ;;  %v5123_v26 = vmax.f32 %v5013_v11, 0.0  ;;  %v5700_v56 = vld [vmem:[%s7296_s29 + $0x4e] sm:$0xff] }
 0x41a   : > { %v8983_v62 = vadd.f32 %v4210_v22, %v3587_v33  ;;  %v8985_v10 = vpop.f32.mrf.mxu0  ;;  %v8987_v43 = vpop.f32.mrf.mxu1  ;;  %v5085_v33 = vmin.f32 %v5013_v11, 0.0  ;;  %v5809_v22 = vmax.f32 %v5699_v2, 0.0 }
 0x41b   : > { %9823 = vst [vmem:[#allocation4_spill] sm:$0xff] %v8985_v10  ;;  %v5014_v10 = vld [vmem:[%s7296_s29 + $0x4d] sm:$0xff] }
 0x41c   : > { %9824 = vst [vmem:[#allocation5_spill] sm:$0xff] %v8987_v43  ;;  %7077 = vmatmul.msk.f32.gmra.mxu2 %vm354_vm0, %v5122_v29  ;;  %7113 = vmatmul.msk.f32.gmra.mxu3 %vm354_vm0, %v5084_v14 }
 0x41d   : > { %7151 = vmatmul.msk.f32.gmra.mxu0 %vm354_vm0, %v5808_v6  ;;  %7187 = vmatmul.msk.f32.gmra.mxu1 %vm354_vm0, %v5770_v60  ;;  %v9829_v6 = vld [vmem:[#allocation48_spill] sm:$0xff]  ;;  %v9830_v60 = vld [vmem:[#allocation18_spill] sm:$0xff] }
 0x41e   : > { %v3530_v43 = vadd.f32 %v9830_v60, %v9829_v6  ;;  %v5772_v6 = vmin.f32 %v5700_v56, 0.0 }
 0x41f   : > { %v3979_v46 = vpop.f32.mrf.mxu2  ;;  %v4212_v50 = vpop.f32.mrf.mxu3 }
 0x420   : > { %v4213_v58 = vadd.f32 %v4212_v50, %v3979_v46  ;;  %v3589_v2 = vadd.f32 %v3530_v43, %v8503_v39  ;;  %v5124_v50 = vmax.f32 %v5014_v10, 0.0  ;;  %v5701_v39 = vld [vmem:[%s7296_s29 + $0x56] sm:$0xff] }
 0x422   : > { %v8998_v29 = vadd.f32 %v4213_v58, %v3588_v51  ;;  %v9000_v14 = vpop.f32.mrf.mxu0  ;;  %v9002_v38 = vpop.f32.mrf.mxu1  ;;  %v5086_v51 = vmin.f32 %v5014_v10, 0.0  ;;  %v5810_v58 = vmax.f32 %v5700_v56, 0.0 }
 0x423   : > { %9827 = vst [vmem:[#allocation31_spill] sm:$0xff] %v9000_v14  ;;  %v5015_v14 = vld [vmem:[%s7296_s29 + $0x55] sm:$0xff] }
 0x424   : > { %9828 = vst [vmem:[#allocation29_spill] sm:$0xff] %v9002_v38  ;;  %7078 = vmatmul.msk.f32.gmra.mxu2 %vm354_vm0, %v5123_v26  ;;  %7114 = vmatmul.msk.f32.gmra.mxu3 %vm354_vm0, %v5085_v33 }
 0x425   : > { %7152 = vmatmul.msk.f32.gmra.mxu0 %vm354_vm0, %v5809_v22  ;;  %7188 = vmatmul.msk.f32.gmra.mxu1 %vm354_vm0, %v5771_v9  ;;  %v9833_v22 = vld [vmem:[#allocation19_spill] sm:$0xff]  ;;  %v9834_v9 = vld [vmem:[#allocation52_spill] sm:$0xff] }
 0x426   : > { %v3533_v38 = vadd.f32 %v9834_v9, %v9833_v22  ;;  %v5773_v22 = vmin.f32 %v5701_v39, 0.0 }
 0x427   : > { %v3982_v11 = vpop.f32.mrf.mxu2  ;;  %v4215_v36 = vpop.f32.mrf.mxu3 }
 0x428   : > { %v4216_v46 = vadd.f32 %v4215_v36, %v3982_v11  ;;  %v3590_v56 = vadd.f32 %v3533_v38, %v8517_v8  ;;  %v5125_v36 = vmax.f32 %v5015_v14, 0.0  ;;  %v5702_v8 = vld [vmem:[%s7296_s29 + $0x5e] sm:$0xff] }
 0x42a   : > { %v9013_v26 = vadd.f32 %v4216_v46, %v3589_v2  ;;  %v9015_v33 = vpop.f32.mrf.mxu0  ;;  %v9017_v60 = vpop.f32.mrf.mxu1  ;;  %v5087_v2 = vmin.f32 %v5015_v14, 0.0  ;;  %v5811_v46 = vmax.f32 %v5701_v39, 0.0 }
 0x42b   : > { %9831 = vst [vmem:[#allocation30_spill] sm:$0xff] %v9015_v33  ;;  %v5016_v33 = vld [vmem:[%s7296_s29 + $0x5d] sm:$0xff] }
 0x42c   : > { %9832 = vst [vmem:[#allocation6_spill] sm:$0xff] %v9017_v60  ;;  %7079 = vmatmul.msk.f32.gmra.mxu2 %vm354_vm0, %v5124_v50  ;;  %7115 = vmatmul.msk.f32.gmra.mxu3 %vm354_vm0, %v5086_v51 }
 0x42d   : > { %7153 = vmatmul.msk.f32.gmra.mxu0 %vm354_vm0, %v5810_v58  ;;  %7189 = vmatmul.msk.f32.gmra.mxu1 %vm354_vm0, %v5772_v6  ;;  %v9837_v58 = vld [vmem:[#allocation50_spill] sm:$0xff]  ;;  %v9838_v6 = vld [vmem:[#allocation51_spill] sm:$0xff] }
 0x42e   : > { %v3536_v60 = vadd.f32 %v9838_v6, %v9837_v58  ;;  %v5774_v58 = vmin.f32 %v5702_v8, 0.0 }
 0x42f   : > { %v3985_v10 = vpop.f32.mrf.mxu2  ;;  %v4218_v43 = vpop.f32.mrf.mxu3 }
 0x430   : > { %v4219_v11 = vadd.f32 %v4218_v43, %v3985_v10  ;;  %v3591_v39 = vadd.f32 %v3536_v60, %v8531_v47  ;;  %v5126_v43 = vmax.f32 %v5016_v33, 0.0  ;;  %v5703_v47 = vld [vmem:[%s7296_s29 + $0x66] sm:$0xff] }
 0x432   : > { %v9028_v50 = vadd.f32 %v4219_v11, %v3590_v56  ;;  %v9030_v51 = vpop.f32.mrf.mxu0  ;;  %v9032_v9 = vpop.f32.mrf.mxu1  ;;  %v5088_v56 = vmin.f32 %v5016_v33, 0.0  ;;  %v5812_v11 = vmax.f32 %v5702_v8, 0.0 }
 0x433   : > { %9835 = vst [vmem:[#allocation7_spill] sm:$0xff] %v9030_v51  ;;  %v5017_v51 = vld [vmem:[%s7296_s29 + $0x65] sm:$0xff] }
 0x434   : > { %9836 = vst [vmem:[#allocation34_spill] sm:$0xff] %v9032_v9  ;;  %7080 = vmatmul.msk.f32.gmra.mxu2 %vm354_vm0, %v5125_v36  ;;  %7116 = vmatmul.msk.f32.gmra.mxu3 %vm354_vm0, %v5087_v2 }
 0x435   : > { %7154 = vmatmul.msk.f32.gmra.mxu0 %vm354_vm0, %v5811_v46  ;;  %7190 = vmatmul.msk.f32.gmra.mxu1 %vm354_vm0, %v5773_v22  ;;  %v9841_v46 = vld [vmem:[#allocation20_spill] sm:$0xff]  ;;  %v9842_v22 = vld [vmem:[#allocation21_spill] sm:$0xff] }
 0x436   : > { %v3539_v9 = vadd.f32 %v9842_v22, %v9841_v46  ;;  %v5775_v46 = vmin.f32 %v5703_v47, 0.0 }
 0x437   : > { %v3988_v14 = vpop.f32.mrf.mxu2  ;;  %v4221_v38 = vpop.f32.mrf.mxu3 }
 0x438   : > { %v4222_v10 = vadd.f32 %v4221_v38, %v3988_v14  ;;  %v3592_v8 = vadd.f32 %v3539_v9, %v8545_v57  ;;  %v5127_v38 = vmax.f32 %v5017_v51, 0.0  ;;  %v5704_v57 = vld [vmem:[%s7296_s29 + $0x6e] sm:$0xff] }
 0x43a   : > { %v9043_v36 = vadd.f32 %v4222_v10, %v3591_v39  ;;  %v9045_v2 = vpop.f32.mrf.mxu0  ;;  %v9047_v6 = vpop.f32.mrf.mxu1  ;;  %v5089_v39 = vmin.f32 %v5017_v51, 0.0  ;;  %v5813_v10 = vmax.f32 %v5703_v47, 0.0 }
 0x43b   : > { %9839 = vst [vmem:[#allocation32_spill] sm:$0xff] %v9045_v2  ;;  %v5018_v2 = vld [vmem:[%s7296_s29 + $0x6d] sm:$0xff] }
 0x43c   : > { %9840 = vst [vmem:[#allocation33_spill] sm:$0xff] %v9047_v6  ;;  %7081 = vmatmul.msk.f32.gmra.mxu2 %vm354_vm0, %v5126_v43  ;;  %7117 = vmatmul.msk.f32.gmra.mxu3 %vm354_vm0, %v5088_v56 }
 0x43d   : > { %7155 = vmatmul.msk.f32.gmra.mxu0 %vm354_vm0, %v5812_v11  ;;  %7191 = vmatmul.msk.f32.gmra.mxu1 %vm354_vm0, %v5774_v58  ;;  %v9845_v11 = vld [vmem:[#allocation55_spill] sm:$0xff]  ;;  %v9846_v58 = vld [vmem:[#allocation53_spill] sm:$0xff] }
 0x43e   : > { %v3542_v6 = vadd.f32 %v9846_v58, %v9845_v11  ;;  %v5776_v11 = vmin.f32 %v5704_v57, 0.0 }
 0x43f   : > { %v3991_v33 = vpop.f32.mrf.mxu2  ;;  %v4224_v60 = vpop.f32.mrf.mxu3 }
 0x440   : > { %v4225_v14 = vadd.f32 %v4224_v60, %v3991_v33  ;;  %v3593_v47 = vadd.f32 %v3542_v6, %v8559_v25  ;;  %v5128_v60 = vmax.f32 %v5018_v2, 0.0  ;;  %v5705_v25 = vld [vmem:[%s7296_s29 + $0x76] sm:$0xff] }
 0x442   : > { %v9058_v43 = vadd.f32 %v4225_v14, %v3592_v8  ;;  %v9060_v56 = vpop.f32.mrf.mxu0  ;;  %v9062_v22 = vpop.f32.mrf.mxu1  ;;  %v5090_v8 = vmin.f32 %v5018_v2, 0.0  ;;  %v5814_v14 = vmax.f32 %v5704_v57, 0.0 }
 0x443   : > { %9843 = vst [vmem:[#allocation8_spill] sm:$0xff] %v9060_v56  ;;  %v5019_v56 = vld [vmem:[%s7296_s29 + $0x75] sm:$0xff] }
 0x444   : > { %9844 = vst [vmem:[#allocation9_spill] sm:$0xff] %v9062_v22  ;;  %7082 = vmatmul.msk.f32.gmra.mxu2 %vm354_vm0, %v5127_v38  ;;  %7118 = vmatmul.msk.f32.gmra.mxu3 %vm354_vm0, %v5089_v39 }
 0x445   : > { %7156 = vmatmul.msk.f32.gmra.mxu0 %vm354_vm0, %v5813_v10  ;;  %7192 = vmatmul.msk.f32.gmra.mxu1 %vm354_vm0, %v5775_v46  ;;  %v9849_v10 = vld [vmem:[#allocation54_spill] sm:$0xff] }
 0x446   : > { %v9850_v46 = vld [vmem:[#allocation22_spill] sm:$0xff] }
 0x447   : > { %v3994_v51 = vpop.f32.mrf.mxu2  ;;  %v4227_v9 = vpop.f32.mrf.mxu3  ;;  %v3545_v22 = vadd.f32 %v9850_v46, %v9849_v10  ;;  %v5777_v10 = vmin.f32 %v5705_v25, 0.0 }
 0x448   : > { %v4228_v33 = vadd.f32 %v4227_v9, %v3994_v51  ;;  %v5129_v9 = vmax.f32 %v5019_v56, 0.0 }
 0x449   : > { %v3594_v57 = vadd.f32 %v3545_v22, %v8573_v59  ;;  %v5706_v59 = vld [vmem:[%s7296_s29 + $0x7e] sm:$0xff] }
 0x44a   : > { %v9073_v38 = vadd.f32 %v4228_v33, %v3593_v47  ;;  %v9075_v39 = vpop.f32.mrf.mxu0  ;;  %v9077_v58 = vpop.f32.mrf.mxu1  ;;  %v5091_v47 = vmin.f32 %v5019_v56, 0.0  ;;  %v5815_v33 = vmax.f32 %v5705_v25, 0.0 }
 0x44b   : > { %9847 = vst [vmem:[#allocation37_spill] sm:$0xff] %v9075_v39  ;;  %v5020_v39 = vld [vmem:[%s7296_s29 + $0x7d] sm:$0xff] }
 0x44c   : > { %9848 = vst [vmem:[#allocation35_spill] sm:$0xff] %v9077_v58  ;;  %7083 = vmatmul.msk.f32.gmra.mxu2 %vm354_vm0, %v5128_v60  ;;  %7119 = vmatmul.msk.f32.gmra.mxu3 %vm354_vm0, %v5090_v8 }
 0x44d   : > { %7157 = vmatmul.msk.f32.gmra.mxu0 %vm354_vm0, %v5814_v14  ;;  %7193 = vmatmul.msk.f32.gmra.mxu1 %vm354_vm0, %v5776_v11  ;;  %v9853_v14 = vld [vmem:[#allocation23_spill] sm:$0xff]  ;;  %v9854_v11 = vld [vmem:[#allocation58_spill] sm:$0xff] }
 0x44e   : > { %v3548_v58 = vadd.f32 %v9854_v11, %v9853_v14  ;;  %v5778_v14 = vmin.f32 %v5706_v59, 0.0 }
 0x44f   : > { %v3997_v2 = vpop.f32.mrf.mxu2  ;;  %v4230_v6 = vpop.f32.mrf.mxu3 }
 0x450   : > { %v4231_v51 = vadd.f32 %v4230_v6, %v3997_v2  ;;  %v3595_v25 = vadd.f32 %v3548_v58, %v8587_v27  ;;  %v5130_v6 = vmax.f32 %v5020_v39, 0.0  ;;  %v5707_v27 = vld [vmem:[%s7296_s29 + $0x86] sm:$0xff] }
 0x452   : > { %v9088_v60 = vadd.f32 %v4231_v51, %v3594_v57  ;;  %v9090_v8 = vpop.f32.mrf.mxu0  ;;  %v9092_v46 = vpop.f32.mrf.mxu1  ;;  %v5092_v57 = vmin.f32 %v5020_v39, 0.0  ;;  %v5816_v51 = vmax.f32 %v5706_v59, 0.0 }
 0x453   : > { %9851 = vst [vmem:[#allocation36_spill] sm:$0xff] %v9090_v8  ;;  %v5021_v8 = vld [vmem:[%s7296_s29 + $0x85] sm:$0xff] }
 0x454   : > { %9852 = vst [vmem:[#allocation10_spill] sm:$0xff] %v9092_v46  ;;  %7084 = vmatmul.msk.f32.gmra.mxu2 %vm354_vm0, %v5129_v9  ;;  %7120 = vmatmul.msk.f32.gmra.mxu3 %vm354_vm0, %v5091_v47 }
 0x455   : > { %7158 = vmatmul.msk.f32.gmra.mxu0 %vm354_vm0, %v5815_v33  ;;  %7194 = vmatmul.msk.f32.gmra.mxu1 %vm354_vm0, %v5777_v10  ;;  %v9857_v33 = vld [vmem:[#allocation56_spill] sm:$0xff]  ;;  %v9858_v10 = vld [vmem:[#allocation57_spill] sm:$0xff] }
 0x456   : > { %v3551_v46 = vadd.f32 %v9858_v10, %v9857_v33  ;;  %v5779_v33 = vmin.f32 %v5707_v27, 0.0 }
 0x457   : > { %v4000_v56 = vpop.f32.mrf.mxu2  ;;  %v4233_v22 = vpop.f32.mrf.mxu3 }
 0x458   : > { %v4234_v2 = vadd.f32 %v4233_v22, %v4000_v56  ;;  %v3596_v59 = vadd.f32 %v3551_v46, %v8601_v52  ;;  %v5131_v22 = vmax.f32 %v5021_v8, 0.0  ;;  %v5708_v52 = vld [vmem:[%s7296_s29 + $0x8e] sm:$0xff] }
 0x45a   : > { %v9103_v9 = vadd.f32 %v4234_v2, %v3595_v25  ;;  %v9105_v47 = vpop.f32.mrf.mxu0  ;;  %v9107_v11 = vpop.f32.mrf.mxu1  ;;  %v5093_v25 = vmin.f32 %v5021_v8, 0.0  ;;  %v5817_v2 = vmax.f32 %v5707_v27, 0.0 }
 0x45b   : > { %9855 = vst [vmem:[#allocation11_spill] sm:$0xff] %v9105_v47  ;;  %v5022_v47 = vld [vmem:[%s7296_s29 + $0x8d] sm:$0xff] }
 0x45c   : > { %9856 = vst [vmem:[#allocation40_spill] sm:$0xff] %v9107_v11  ;;  %7085 = vmatmul.msk.f32.gmra.mxu2 %vm354_vm0, %v5130_v6  ;;  %7121 = vmatmul.msk.f32.gmra.mxu3 %vm354_vm0, %v5092_v57 }
 0x45d   : > { %7159 = vmatmul.msk.f32.gmra.mxu0 %vm354_vm0, %v5816_v51  ;;  %7195 = vmatmul.msk.f32.gmra.mxu1 %vm354_vm0, %v5778_v14  ;;  %v9861_v51 = vld [vmem:[#allocation24_spill] sm:$0xff]  ;;  %v9862_v14 = vld [vmem:[#allocation25_spill] sm:$0xff] }
 0x45e   : > { %v3554_v11 = vadd.f32 %v9862_v14, %v9861_v51  ;;  %v5780_v51 = vmin.f32 %v5708_v52, 0.0 }
 0x45f   : > { %v4003_v39 = vpop.f32.mrf.mxu2  ;;  %v4236_v58 = vpop.f32.mrf.mxu3 }
 0x460   : > { %v4237_v56 = vadd.f32 %v4236_v58, %v4003_v39  ;;  %v3597_v27 = vadd.f32 %v3554_v11, %v8615_v55  ;;  %v5132_v58 = vmax.f32 %v5022_v47, 0.0  ;;  %v5709_v55 = vld [vmem:[%s7296_s29 + $0x96] sm:$0xff] }
 0x462   : > { %v9118_v6 = vadd.f32 %v4237_v56, %v3596_v59  ;;  %v9120_v57 = vpop.f32.mrf.mxu0  ;;  %v9122_v10 = vpop.f32.mrf.mxu1  ;;  %v5094_v59 = vmin.f32 %v5022_v47, 0.0  ;;  %v5818_v56 = vmax.f32 %v5708_v52, 0.0 }
 0x463   : > { %9859 = vst [vmem:[#allocation38_spill] sm:$0xff] %v9120_v57  ;;  %v5023_v57 = vld [vmem:[%s7296_s29 + $0x95] sm:$0xff] }
 0x464   : > { %9860 = vst [vmem:[#allocation39_spill] sm:$0xff] %v9122_v10  ;;  %7086 = vmatmul.msk.f32.gmra.mxu2 %vm354_vm0, %v5131_v22  ;;  %7122 = vmatmul.msk.f32.gmra.mxu3 %vm354_vm0, %v5093_v25 }
 0x465   : > { %7160 = vmatmul.msk.f32.gmra.mxu0 %vm354_vm0, %v5817_v2  ;;  %7196 = vmatmul.msk.f32.gmra.mxu1 %vm354_vm0, %v5779_v33  ;;  %v9865_v2 = vld [vmem:[#allocation59_spill] sm:$0xff]  ;;  %v9866_v33 = vld [vmem:[#allocation60_spill] sm:$0xff] }
 0x466   : > { %v3557_v10 = vadd.f32 %v9866_v33, %v9865_v2  ;;  %v5781_v2 = vmin.f32 %v5709_v55, 0.0 }
 0x467   : > { %v4006_v8 = vpop.f32.mrf.mxu2  ;;  %v4239_v46 = vpop.f32.mrf.mxu3 }
 0x468   : > { %v4240_v39 = vadd.f32 %v4239_v46, %v4006_v8  ;;  %v3598_v52 = vadd.f32 %v3557_v10, %v8629_v21  ;;  %v5133_v46 = vmax.f32 %v5023_v57, 0.0  ;;  %v5710_v21 = vld [vmem:[%s7296_s29 + $0x9e] sm:$0xff] }
 0x46a   : > { %v9133_v22 = vadd.f32 %v4240_v39, %v3597_v27  ;;  %v9135_v25 = vpop.f32.mrf.mxu0  ;;  %v9137_v14 = vpop.f32.mrf.mxu1  ;;  %v5095_v27 = vmin.f32 %v5023_v57, 0.0  ;;  %v5819_v39 = vmax.f32 %v5709_v55, 0.0 }
 0x46b   : > { %9863 = vst [vmem:[#allocation12_spill] sm:$0xff] %v9135_v25  ;;  %v5024_v25 = vld [vmem:[%s7296_s29 + $0x9d] sm:$0xff] }
 0x46c   : > { %9864 = vst [vmem:[#allocation13_spill] sm:$0xff] %v9137_v14  ;;  %7087 = vmatmul.msk.f32.gmra.mxu2 %vm354_vm0, %v5132_v58  ;;  %7123 = vmatmul.msk.f32.gmra.mxu3 %vm354_vm0, %v5094_v59 }
 0x46d   : > { %7161 = vmatmul.msk.f32.gmra.mxu0 %vm354_vm0, %v5818_v56  ;;  %7197 = vmatmul.msk.f32.gmra.mxu1 %vm354_vm0, %v5780_v51  ;;  %v9868_v56 = vld [vmem:[#allocation61_spill] sm:$0xff]  ;;  %v9869_v51 = vld [vmem:[#allocation62_spill] sm:$0xff] }
 0x46e   : > { %v3560_v14 = vadd.f32 %v9869_v51, %v9868_v56  ;;  %v5782_v56 = vmin.f32 %v5710_v21, 0.0 }
 0x46f   : > { %v4009_v47 = vpop.f32.mrf.mxu2  ;;  %v4242_v11 = vpop.f32.mrf.mxu3 }
 0x470   : > { %v4243_v8 = vadd.f32 %v4242_v11, %v4009_v47  ;;  %v3599_v55 = vadd.f32 %v3560_v14, %v8643_v18  ;;  %v5134_v11 = vmax.f32 %v5024_v25, 0.0  ;;  %v5711_v18 = vld [vmem:[%s7296_s29 + $0xa6] sm:$0xff] }
 0x472   : > { %v9148_v58 = vadd.f32 %v4243_v8, %v3598_v52  ;;  %v9150_v59 = vpop.f32.mrf.mxu0  ;;  %v9152_v33 = vpop.f32.mrf.mxu1  ;;  %v5096_v52 = vmin.f32 %v5024_v25, 0.0  ;;  %v5820_v8 = vmax.f32 %v5710_v21, 0.0 }
 0x473   : > { %9867 = vst [vmem:[#allocation43_spill] sm:$0xff] %v9152_v33  ;;  %v5025_v33 = vld [vmem:[%s7296_s29 + $0xa5] sm:$0xff] }
 0x474   : > { %7088 = vmatmul.msk.f32.gmra.mxu2 %vm354_vm0, %v5133_v46  ;;  %7124 = vmatmul.msk.f32.gmra.mxu3 %vm354_vm0, %v5095_v27 }
 0x475   : > { %7162 = vmatmul.msk.f32.gmra.mxu0 %vm354_vm0, %v5819_v39  ;;  %7198 = vmatmul.msk.f32.gmra.mxu1 %vm354_vm0, %v5781_v2  ;;  %v9870_v39 = vld [vmem:[#allocation63_spill] sm:$0xff] }
 0x476   : > { %v3563_v2 = vadd.f32 %v9870_v39, %v8645_v54  ;;  %v5821_v54 = vmax.f32 %v5711_v18, 0.0 }
 0x477   : > { %v4012_v57 = vpop.f32.mrf.mxu2  ;;  %v4245_v10 = vpop.f32.mrf.mxu3 }
 0x478   : > { %v4246_v47 = vadd.f32 %v4245_v10, %v4012_v57  ;;  %v3600_v21 = vadd.f32 %v3563_v2, %v8657_v28  ;;  %v5135_v10 = vmax.f32 %v5025_v33, 0.0  ;;  %v5712_v28 = vld [vmem:[%s7296_s29 + $0xae] sm:$0xff] }
 0x47a   : > { %v9163_v46 = vadd.f32 %v4246_v47, %v3599_v55  ;;  %v9165_v27 = vpop.f32.mrf.mxu0  ;;  %v9167_v51 = vpop.f32.mrf.mxu1  ;;  %v5097_v55 = vmin.f32 %v5025_v33, 0.0  ;;  %v5783_v47 = vmin.f32 %v5711_v18, 0.0 }
 0x47c   : > { %7089 = vmatmul.msk.f32.gmra.mxu2 %vm354_vm0, %v5134_v11  ;;  %7125 = vmatmul.msk.f32.gmra.mxu3 %vm354_vm0, %v5096_v52 }
 0x47d   : > { %7163 = vmatmul.msk.f32.gmra.mxu0 %vm354_vm0, %v5820_v8  ;;  %7199 = vmatmul.msk.f32.gmra.mxu1 %vm354_vm0, %v5782_v56  ;;  %v4830_v8 = vadd.f32 %v8661_v40, %v8659_v1  ;;  %v5026_v56 = vld [vmem:[%s7296_s29 + $0xad] sm:$0xff]  ;;  %v5822_v1 = vmax.f32 %v5712_v28, 0.0  ;;  %v5784_v40 = vmin.f32 %v5712_v28, 0.0 }
 0x47f   : > { %v4015_v25 = vpop.f32.mrf.mxu2  ;;  %v4248_v14 = vpop.f32.mrf.mxu3  ;;  %v4937_v33 = vadd.f32 %v4830_v8, %v8671_v61  ;;  %v4833_v61 = vadd.f32 %v8675_v31, %v8673_v42 }
 0x480   : > { %v4249_v57 = vadd.f32 %v4248_v14, %v4015_v25 }
 0x481   : > { %v4938_v42 = vadd.f32 %v4833_v61, %v8685_v35  ;;  %v5028_v35 = vld [vmem:[%s7296_s29 + $0xbd] sm:$0xff] }
 0x482   : > { %v9178_v11 = vadd.f32 %v4249_v57, %v3600_v21  ;;  %v5968_v52 = vpop.f32.mrf.mxu0  ;;  %v6201_v39 = vpop.f32.mrf.mxu1  ;;  %v5136_v21 = vmax.f32 %v5026_v56, 0.0  ;;  %v5098_v57 = vmin.f32 %v5026_v56, 0.0  ;;  %v5713_v56 = vld [vmem:[%s7296_s29 + $0xb6] sm:$0xff] }
 0x483   : > { %v6202_v14 = vadd.f32 %v6201_v39, %v5968_v52  ;;  %v5027_v52 = vld [vmem:[%s7296_s29 + $0xb5] sm:$0xff] }
 0x484   : > { %7090 = vmatmul.msk.f32.gmra.mxu2 %vm354_vm0, %v5135_v10  ;;  %7126 = vmatmul.msk.f32.gmra.mxu3 %vm354_vm0, %v5097_v55  ;;  %v9193_v55 = vld [vmem:[%s9499_s2] ss:$0 sm:$0xff] }
 0x485   : > { %7164 = vmatmul.msk.f32.gmra.mxu0 %vm354_vm0, %v5821_v54  ;;  %7200 = vmatmul.msk.f32.gmra.mxu1 %vm354_vm0, %v5783_v47 }
 0x487   : > { %v5282_v2 = vpop.f32.mrf.mxu2  ;;  %v5515_v18 = vpop.f32.mrf.mxu3 }
 0x488   : > { %v5516_v25 = vadd.f32 %v5515_v18, %v5282_v2  ;;  %v5137_v18 = vmax.f32 %v5027_v52, 0.0 }
 0x48a   : > { %v5623_v10 = vadd.f32 %v5516_v25, %v4937_v33  ;;  %v5971_v54 = vpop.f32.mrf.mxu0  ;;  %v6204_v47 = vpop.f32.mrf.mxu1  ;;  %v5099_v25 = vmin.f32 %v5027_v52, 0.0 }
 0x48b   : > { %v6205_v2 = vadd.f32 %v6204_v47, %v5971_v54  ;;  %v5714_v47 = vld [vmem:[%s7296_s29 + $0xbe] sm:$0xff] }
 0x48c   : > { %v6309_v8 = vadd.f32 %v6202_v14, %v5623_v10  ;;  %7091 = vmatmul.msk.f32.gmra.mxu2 %vm354_vm0, %v5136_v21  ;;  %7127 = vmatmul.msk.f32.gmra.mxu3 %vm354_vm0, %v5098_v57  ;;  %v5823_v14 = vmax.f32 %v5713_v56, 0.0  ;;  %v5785_v21 = vmin.f32 %v5713_v56, 0.0  ;;  %v4836_v10 = vadd.f32 %v8689_v63, %v8687_v16 }
 0x48d   : > { %7165 = vmatmul.msk.f32.gmra.mxu0 %vm354_vm0, %v5822_v1  ;;  %7201 = vmatmul.msk.f32.gmra.mxu1 %vm354_vm0, %v5784_v40  ;;  %v5138_v56 = vmax.f32 %v5028_v35, 0.0 }
 0x48e   : > { %v6421_v39 = vadd.f32 %v9193_v55, %v6309_v8  ;;  %v4939_v61 = vadd.f32 %v4836_v10, %v8699_v19  ;;  %v5029_v19 = vld [vmem:[%s7296_s29 + $0xc5] sm:$0xff] }
 0x48f   : > { %v5285_v31 = vpop.f32.mrf.mxu2  ;;  %v5518_v28 = vpop.f32.mrf.mxu3 }
 0x490   : > { %6457 = vst [vmem:[%s9202_s7] sm:$0xff] %v6421_v39  ;;  %v5519_v33 = vadd.f32 %v5518_v28, %v5285_v31  ;;  %v5824_v31 = vmax.f32 %v5714_v47, 0.0  ;;  %v5786_v28 = vmin.f32 %v5714_v47, 0.0 }
 0x492   : > { %v5624_v57 = vadd.f32 %v5519_v33, %v4938_v42  ;;  %v5974_v1 = vpop.f32.mrf.mxu0  ;;  %v6207_v40 = vpop.f32.mrf.mxu1  ;;  %v5100_v42 = vmin.f32 %v5028_v35, 0.0  ;;  %v5101_v35 = vmin.f32 %v5029_v19, 0.0 }
 0x493   : > { %v6208_v63 = vadd.f32 %v6207_v40, %v5974_v1 }
 0x494   : > { %v6310_v8 = vadd.f32 %v6205_v2, %v5624_v57  ;;  %7092 = vmatmul.msk.f32.gmra.mxu2 %vm354_vm0, %v5137_v18  ;;  %7128 = vmatmul.msk.f32.gmra.mxu3 %vm354_vm0, %v5099_v25  ;;  %v4839_v25 = vadd.f32 %v8703_v44, %v8701_v13  ;;  %v5715_v57 = vld [vmem:[%s7296_s29 + $0xc6] sm:$0xff] }
 0x495   : > { %7166 = vmatmul.msk.f32.gmra.mxu0 %vm354_vm0, %v5823_v14  ;;  %7202 = vmatmul.msk.f32.gmra.mxu1 %vm354_vm0, %v5785_v21  ;;  %v5787_v47 = vmin.f32 %v5715_v57, 0.0 }
 0x496   : > { %v6422_v54 = vadd.f32 %v9193_v55, %v6310_v8  ;;  %v4940_v1 = vadd.f32 %v4839_v25, %v8713_v23  ;;  %v5139_v8 = vmax.f32 %v5029_v19, 0.0  ;;  %v5030_v23 = vld [vmem:[%s7296_s29 + $0xcd] sm:$0xff] }
 0x497   : > { %v5288_v52 = vpop.f32.mrf.mxu2  ;;  %v5521_v39 = vpop.f32.mrf.mxu3 }
 0x498   : > { %6458 = vst [vmem:[%s9202_s7 + $0x8] sm:$0xff] %v6422_v54  ;;  %v5522_v16 = vadd.f32 %v5521_v39, %v5288_v52  ;;  %v5825_v54 = vmax.f32 %v5715_v57, 0.0 }
 0x49a   : > { %v5625_v33 = vadd.f32 %v5522_v16, %v4939_v61  ;;  %v5977_v2 = vpop.f32.mrf.mxu0  ;;  %v6210_v18 = vpop.f32.mrf.mxu1  ;;  %v4842_v16 = vadd.f32 %v8717_v49, %v8715_v48 }
 0x49b   : > { %v6211_v44 = vadd.f32 %v6210_v18, %v5977_v2  ;;  %v5140_v2 = vmax.f32 %v5030_v23, 0.0  ;;  %v5102_v18 = vmin.f32 %v5030_v23, 0.0  ;;  %v4848_v23 = vadd.f32 %v8745_v17, %v8743_v0 }
 0x49c   : > { %v6311_v14 = vadd.f32 %v6208_v63, %v5625_v33  ;;  %7093 = vmatmul.msk.f32.gmra.mxu2 %vm354_vm0, %v5138_v56  ;;  %7129 = vmatmul.msk.f32.gmra.mxu3 %vm354_vm0, %v5100_v42  ;;  %v5716_v42 = vld [vmem:[%s7296_s29 + $0xce] sm:$0xff] }
 0x49d   : > { %7167 = vmatmul.msk.f32.gmra.mxu0 %vm354_vm0, %v5824_v31  ;;  %7203 = vmatmul.msk.f32.gmra.mxu1 %vm354_vm0, %v5786_v28  ;;  %v4941_v31 = vadd.f32 %v4842_v16, %v8727_v34  ;;  %v5826_v25 = vmax.f32 %v5716_v42, 0.0  ;;  %v5031_v34 = vld [vmem:[%s7296_s29 + $0xd5] sm:$0xff] }
 0x49e   : > { %v6423_v21 = vadd.f32 %v9193_v55, %v6311_v14  ;;  %v5788_v14 = vmin.f32 %v5716_v42, 0.0 }
 0x49f   : > { %v5291_v40 = vpop.f32.mrf.mxu2  ;;  %v5524_v10 = vpop.f32.mrf.mxu3 }
 0x4a0   : > { %6459 = vst [vmem:[%s9202_s7 + $0x10] sm:$0xff] %v6423_v21  ;;  %v5525_v13 = vadd.f32 %v5524_v10, %v5291_v40 }
 0x4a2   : > { %v5626_v61 = vadd.f32 %v5525_v13, %v4940_v1  ;;  %v5980_v52 = vpop.f32.mrf.mxu0  ;;  %v6213_v39 = vpop.f32.mrf.mxu1  ;;  %v4845_v1 = vadd.f32 %v8731_v53, %v8729_v7  ;;  %v5717_v13 = vld [vmem:[%s7296_s29 + $0xd6] sm:$0xff] }
 0x4a3   : > { %v6214_v49 = vadd.f32 %v6213_v39, %v5980_v52  ;;  %v5789_v52 = vmin.f32 %v5717_v13, 0.0 }
 0x4a4   : > { %v6312_v63 = vadd.f32 %v6211_v44, %v5626_v61  ;;  %7094 = vmatmul.msk.f32.gmra.mxu2 %vm354_vm0, %v5139_v8  ;;  %7130 = vmatmul.msk.f32.gmra.mxu3 %vm354_vm0, %v5101_v35  ;;  %v4942_v44 = vadd.f32 %v4845_v1, %v8741_v45  ;;  %v5827_v61 = vmax.f32 %v5717_v13, 0.0  ;;  %v5032_v45 = vld [vmem:[%s7296_s29 + $0xdd] sm:$0xff]  ;;  %v9872_v1 = vld [vmem:[#allocation65_spill] sm:$0xff]  ;;  %v5719_v13 = vld [vmem:[%s7296_s29 + $0xe6] sm:$0xff] }
 0x4a5   : > { %7168 = vmatmul.msk.f32.gmra.mxu0 %vm354_vm0, %v5825_v54  ;;  %7204 = vmatmul.msk.f32.gmra.mxu1 %vm354_vm0, %v5787_v47  ;;  %v5141_v54 = vmax.f32 %v5031_v34, 0.0  ;;  %v5103_v47 = vmin.f32 %v5031_v34, 0.0 }
 0x4a6   : > { %v6424_v56 = vadd.f32 %v9193_v55, %v6312_v63 }
 0x4a7   : > { %v5294_v28 = vpop.f32.mrf.mxu2  ;;  %v5527_v33 = vpop.f32.mrf.mxu3 }
 0x4a8   : > { %6460 = vst [vmem:[%s9202_s7 + $0x18] sm:$0xff] %v6424_v56  ;;  %v5528_v48 = vadd.f32 %v5527_v33, %v5294_v28  ;;  %v4943_v28 = vadd.f32 %v4848_v23, %v8755_v30  ;;  %v5033_v30 = vld [vmem:[%s7296_s29 + $0xe5] sm:$0xff] }
 0x4aa   : > { %v5627_v19 = vadd.f32 %v5528_v48, %v4941_v31  ;;  %v5983_v21 = vpop.f32.mrf.mxu0  ;;  %v6216_v57 = vpop.f32.mrf.mxu1  ;;  %v5718_v31 = vld [vmem:[%s7296_s29 + $0xde] sm:$0xff] }
 0x4ab   : > { %v6217_v53 = vadd.f32 %v6216_v57, %v5983_v21  ;;  %v9871_v57 = vld [vmem:[#allocation64_spill] sm:$0xff] }
 0x4ac   : > { %v6313_v40 = vadd.f32 %v6214_v49, %v5627_v19  ;;  %7095 = vmatmul.msk.f32.gmra.mxu2 %vm354_vm0, %v5140_v2  ;;  %7131 = vmatmul.msk.f32.gmra.mxu3 %vm354_vm0, %v5102_v18  ;;  %v5142_v49 = vmax.f32 %v5032_v45, 0.0  ;;  %v5104_v2 = vmin.f32 %v5032_v45, 0.0  ;;  %v5828_v18 = vmax.f32 %v5718_v31, 0.0  ;;  %v9875_v45 = vld [vmem:[#allocation68_spill] sm:$0xff] }
 0x4ad   : > { %7169 = vmatmul.msk.f32.gmra.mxu0 %vm354_vm0, %v5826_v25  ;;  %7205 = vmatmul.msk.f32.gmra.mxu1 %vm354_vm0, %v5788_v14  ;;  %v5790_v25 = vmin.f32 %v5718_v31, 0.0 }
 0x4ae   : > { %v6425_v10 = vadd.f32 %v9193_v55, %v6313_v40  ;;  %v4851_v40 = vadd.f32 %v9872_v1, %v9871_v57 }
 0x4af   : > { %v5297_v8 = vpop.f32.mrf.mxu2  ;;  %v5530_v35 = vpop.f32.mrf.mxu3 }
 0x4b0   : > { %6461 = vst [vmem:[%s9202_s7 + $0x20] sm:$0xff] %v6425_v10  ;;  %v5531_v7 = vadd.f32 %v5530_v35, %v5297_v8 }
 0x4b2   : > { %v5628_v39 = vadd.f32 %v5531_v7, %v4942_v44  ;;  %v5986_v16 = vpop.f32.mrf.mxu0  ;;  %v6219_v63 = vpop.f32.mrf.mxu1  ;;  %v9873_v44 = vld [vmem:[#allocation66_spill] sm:$0xff] }
 0x4b3   : > { %v6220_v17 = vadd.f32 %v6219_v63, %v5986_v16  ;;  %v4944_v8 = vadd.f32 %v4851_v40, %v9873_v44 }
 0x4b4   : > { %v6314_v56 = vadd.f32 %v6217_v53, %v5628_v39  ;;  %7096 = vmatmul.msk.f32.gmra.mxu2 %vm354_vm0, %v5141_v54  ;;  %7132 = vmatmul.msk.f32.gmra.mxu3 %vm354_vm0, %v5103_v47  ;;  %v5143_v47 = vmax.f32 %v5033_v30, 0.0  ;;  %v5791_v39 = vmin.f32 %v5719_v13, 0.0 }
 0x4b5   : > { %7170 = vmatmul.msk.f32.gmra.mxu0 %vm354_vm0, %v5827_v61  ;;  %7206 = vmatmul.msk.f32.gmra.mxu1 %vm354_vm0, %v5789_v52  ;;  %v5105_v61 = vmin.f32 %v5033_v30, 0.0  ;;  %v5829_v52 = vmax.f32 %v5719_v13, 0.0  ;;  %v9877_v30 = vld [vmem:[#allocation70_spill] sm:$0xff] }
 0x4b6   : > { %v6426_v42 = vadd.f32 %v9193_v55, %v6314_v56  ;;  %v9874_v56 = vld [vmem:[#allocation67_spill] sm:$0xff] }
 0x4b7   : > { %v5300_v33 = vpop.f32.mrf.mxu2  ;;  %v5533_v48 = vpop.f32.mrf.mxu3 }
 0x4b8   : > { %6462 = vst [vmem:[%s9202_s7 + $0x28] sm:$0xff] %v6426_v42  ;;  %v5534_v0 = vadd.f32 %v5533_v48, %v5300_v33  ;;  %v4854_v42 = vadd.f32 %v9875_v45, %v9874_v56  ;;  %v5720_v48 = vld [vmem:[%s7296_s29 + $0xee] sm:$0xff] }
 0x4b9   : > { %v5792_v57 = vmin.f32 %v5720_v48, 0.0 }
 0x4ba   : > { %v5629_v14 = vadd.f32 %v5534_v0, %v4943_v28  ;;  %v5989_v19 = vpop.f32.mrf.mxu0  ;;  %v6222_v21 = vpop.f32.mrf.mxu1  ;;  %v5034_v28 = vld [vmem:[%s7296_s29 + $0xed] sm:$0xff] }
 0x4bb   : > { %v6223_v54 = vadd.f32 %v6222_v21, %v5989_v19  ;;  %v9876_v0 = vld [vmem:[#allocation69_spill] sm:$0xff]  ;;  %v5106_v19 = vmin.f32 %v5034_v28, 0.0  ;;  %v5830_v21 = vmax.f32 %v5720_v48, 0.0 }
 0x4bc   : > { %v6315_v34 = vadd.f32 %v6220_v17, %v5629_v14  ;;  %7097 = vmatmul.msk.f32.gmra.mxu2 %vm354_vm0, %v5142_v49  ;;  %7133 = vmatmul.msk.f32.gmra.mxu3 %vm354_vm0, %v5104_v2  ;;  %v4945_v17 = vadd.f32 %v4854_v42, %v9876_v0  ;;  %v5144_v14 = vmax.f32 %v5034_v28, 0.0  ;;  %v9880_v28 = vld [vmem:[#allocation73_spill] sm:$0xff] }
 0x4bd   : > { %7171 = vmatmul.msk.f32.gmra.mxu0 %vm354_vm0, %v5828_v18  ;;  %7207 = vmatmul.msk.f32.gmra.mxu1 %vm354_vm0, %v5790_v25 }
 0x4be   : > { %v6427_v10 = vadd.f32 %v9193_v55, %v6315_v34 }
 0x4bf   : > { %v5303_v35 = vpop.f32.mrf.mxu2  ;;  %v5536_v7 = vpop.f32.mrf.mxu3 }
 0x4c0   : > { %6463 = vst [vmem:[%s9202_s7 + $0x30] sm:$0xff] %v6427_v10  ;;  %v5537_v53 = vadd.f32 %v5536_v7, %v5303_v35  ;;  %v9878_v10 = vld [vmem:[#allocation71_spill] sm:$0xff]  ;;  %v5721_v7 = vld [vmem:[%s7296_s29 + $0xf6] sm:$0xff] }
 0x4c1   : > { %v4857_v13 = vadd.f32 %v9878_v10, %v9877_v30  ;;  %v5793_v56 = vmin.f32 %v5721_v7, 0.0 }
 0x4c2   : > { %v5630_v16 = vadd.f32 %v5537_v53, %v4944_v8  ;;  %v5992_v63 = vpop.f32.mrf.mxu0  ;;  %v6225_v23 = vpop.f32.mrf.mxu1  ;;  %v5035_v8 = vld [vmem:[%s7296_s29 + $0xf5] sm:$0xff]  ;;  %v9879_v53 = vld [vmem:[#allocation72_spill] sm:$0xff] }
 0x4c3   : > { %v6226_v25 = vadd.f32 %v6225_v23, %v5992_v63  ;;  %v5107_v63 = vmin.f32 %v5035_v8, 0.0  ;;  %v5831_v23 = vmax.f32 %v5721_v7, 0.0 }
 0x4c4   : > { %v6316_v31 = vadd.f32 %v6223_v54, %v5630_v16  ;;  %7098 = vmatmul.msk.f32.gmra.mxu2 %vm354_vm0, %v5143_v47  ;;  %7134 = vmatmul.msk.f32.gmra.mxu3 %vm354_vm0, %v5105_v61  ;;  %v4946_v54 = vadd.f32 %v4857_v13, %v9879_v53  ;;  %v5145_v16 = vmax.f32 %v5035_v8, 0.0  ;;  %v9883_v8 = vld [vmem:[#allocation76_spill] sm:$0xff] }
 0x4c5   : > { %7172 = vmatmul.msk.f32.gmra.mxu0 %vm354_vm0, %v5829_v52  ;;  %7208 = vmatmul.msk.f32.gmra.mxu1 %vm354_vm0, %v5791_v39 }
 0x4c6   : > { %v6428_v33 = vadd.f32 %v9193_v55, %v6316_v31 }
 0x4c7   : > { %v5306_v49 = vpop.f32.mrf.mxu2  ;;  %v5539_v2 = vpop.f32.mrf.mxu3 }
 0x4c8   : > { %6464 = vst [vmem:[%s9202_s7 + $0x38] sm:$0xff] %v6428_v33  ;;  %v5540_v18 = vadd.f32 %v5539_v2, %v5306_v49  ;;  %v9881_v33 = vld [vmem:[#allocation74_spill] sm:$0xff] }
 0x4c9   : > { %v4860_v48 = vadd.f32 %v9881_v33, %v9880_v28  ;;  %v5722_v2 = vld [vmem:[%s7296_s29 + $0xfe] sm:$0xff] }
 0x4ca   : > { %v5631_v1 = vadd.f32 %v5540_v18, %v4945_v17  ;;  %v5995_v40 = vpop.f32.mrf.mxu0  ;;  %v6228_v34 = vpop.f32.mrf.mxu1  ;;  %v5036_v17 = vld [vmem:[%s7296_s29 + $0xfd] sm:$0xff]  ;;  %v5794_v30 = vmin.f32 %v5722_v2, 0.0 }
 0x4cb   : > { %v6229_v39 = vadd.f32 %v6228_v34, %v5995_v40  ;;  %v9882_v18 = vld [vmem:[#allocation75_spill] sm:$0xff]  ;;  %v5108_v40 = vmin.f32 %v5036_v17, 0.0  ;;  %v5832_v34 = vmax.f32 %v5722_v2, 0.0 }
 0x4cc   : > { %v6317_v44 = vadd.f32 %v6226_v25, %v5631_v1  ;;  %7099 = vmatmul.msk.f32.gmra.mxu2 %vm354_vm0, %v5144_v14  ;;  %7135 = vmatmul.msk.f32.gmra.mxu3 %vm354_vm0, %v5106_v19  ;;  %v4947_v25 = vadd.f32 %v4860_v48, %v9882_v18  ;;  %v5146_v1 = vmax.f32 %v5036_v17, 0.0  ;;  %v9886_v17 = vld [vmem:[#allocation79_spill] sm:$0xff] }
 0x4cd   : > { %7173 = vmatmul.msk.f32.gmra.mxu0 %vm354_vm0, %v5830_v21  ;;  %7209 = vmatmul.msk.f32.gmra.mxu1 %vm354_vm0, %v5792_v57 }
 0x4ce   : > { %v6429_v35 = vadd.f32 %v9193_v55, %v6317_v44 }
 0x4cf   : > { %v5309_v47 = vpop.f32.mrf.mxu2  ;;  %v5542_v61 = vpop.f32.mrf.mxu3 }
 0x4d0   : > { %6465 = vst [vmem:[%s9202_s7 + $0x40] sm:$0xff] %v6429_v35  ;;  %v5543_v52 = vadd.f32 %v5542_v61, %v5309_v47  ;;  %v9884_v35 = vld [vmem:[#allocation77_spill] sm:$0xff]  ;;  %v5723_v61 = vld [vmem:[%s7296_s29 + $0x106] sm:$0xff] }
 0x4d1   : > { %v4863_v7 = vadd.f32 %v9884_v35, %v9883_v8  ;;  %v5795_v28 = vmin.f32 %v5723_v61, 0.0 }
 0x4d2   : > { %v5632_v45 = vadd.f32 %v5543_v52, %v4946_v54  ;;  %v5998_v42 = vpop.f32.mrf.mxu0  ;;  %v6231_v31 = vpop.f32.mrf.mxu1  ;;  %v5037_v54 = vld [vmem:[%s7296_s29 + $0x105] sm:$0xff]  ;;  %v9885_v52 = vld [vmem:[#allocation78_spill] sm:$0xff] }
 0x4d3   : > { %v6232_v57 = vadd.f32 %v6231_v31, %v5998_v42  ;;  %v5109_v42 = vmin.f32 %v5037_v54, 0.0  ;;  %v5833_v31 = vmax.f32 %v5723_v61, 0.0 }
 0x4d4   : > { %v6318_v0 = vadd.f32 %v6229_v39, %v5632_v45  ;;  %7100 = vmatmul.msk.f32.gmra.mxu2 %vm354_vm0, %v5145_v16  ;;  %7136 = vmatmul.msk.f32.gmra.mxu3 %vm354_vm0, %v5107_v63  ;;  %v4948_v39 = vadd.f32 %v4863_v7, %v9885_v52  ;;  %v5147_v45 = vmax.f32 %v5037_v54, 0.0  ;;  %v9889_v54 = vld [vmem:[#allocation82_spill] sm:$0xff] }
 0x4d5   : > { %7174 = vmatmul.msk.f32.gmra.mxu0 %vm354_vm0, %v5831_v23  ;;  %7210 = vmatmul.msk.f32.gmra.mxu1 %vm354_vm0, %v5793_v56 }
 0x4d6   : > { %v6430_v49 = vadd.f32 %v9193_v55, %v6318_v0 }
 0x4d7   : > { %v5312_v14 = vpop.f32.mrf.mxu2  ;;  %v5545_v19 = vpop.f32.mrf.mxu3 }
 0x4d8   : > { %6466 = vst [vmem:[%s9202_s7 + $0x48] sm:$0xff] %v6430_v49  ;;  %v5546_v21 = vadd.f32 %v5545_v19, %v5312_v14  ;;  %v9887_v49 = vld [vmem:[#allocation80_spill] sm:$0xff] }
 0x4d9   : > { %v4866_v2 = vadd.f32 %v9887_v49, %v9886_v17  ;;  %v5724_v19 = vld [vmem:[%s7296_s29 + $0x10e] sm:$0xff] }
 0x4da   : > { %v5633_v10 = vadd.f32 %v5546_v21, %v4947_v25  ;;  %v6001_v13 = vpop.f32.mrf.mxu0  ;;  %v6234_v44 = vpop.f32.mrf.mxu1  ;;  %v5038_v25 = vld [vmem:[%s7296_s29 + $0x10d] sm:$0xff]  ;;  %v5796_v8 = vmin.f32 %v5724_v19, 0.0 }
 0x4db   : > { %v6235_v56 = vadd.f32 %v6234_v44, %v6001_v13  ;;  %v9888_v21 = vld [vmem:[#allocation81_spill] sm:$0xff]  ;;  %v5110_v13 = vmin.f32 %v5038_v25, 0.0  ;;  %v5834_v44 = vmax.f32 %v5724_v19, 0.0 }
 0x4dc   : > { %v6319_v53 = vadd.f32 %v6232_v57, %v5633_v10  ;;  %7101 = vmatmul.msk.f32.gmra.mxu2 %vm354_vm0, %v5146_v1  ;;  %7137 = vmatmul.msk.f32.gmra.mxu3 %vm354_vm0, %v5108_v40  ;;  %v4949_v57 = vadd.f32 %v4866_v2, %v9888_v21  ;;  %v5148_v10 = vmax.f32 %v5038_v25, 0.0  ;;  %v9892_v25 = vld [vmem:[#allocation85_spill] sm:$0xff] }
 0x4dd   : > { %7175 = vmatmul.msk.f32.gmra.mxu0 %vm354_vm0, %v5832_v34  ;;  %7211 = vmatmul.msk.f32.gmra.mxu1 %vm354_vm0, %v5794_v30 }
 0x4de   : > { %v6431_v47 = vadd.f32 %v9193_v55, %v6319_v53 }
 0x4df   : > { %v5315_v16 = vpop.f32.mrf.mxu2  ;;  %v5548_v63 = vpop.f32.mrf.mxu3 }
 0x4e0   : > { %6467 = vst [vmem:[%s9202_s7 + $0x50] sm:$0xff] %v6431_v47  ;;  %v5549_v23 = vadd.f32 %v5548_v63, %v5315_v16  ;;  %v9890_v47 = vld [vmem:[#allocation83_spill] sm:$0xff]  ;;  %v5725_v63 = vld [vmem:[%s7296_s29 + $0x116] sm:$0xff] }
 0x4e1   : > { %v4869_v61 = vadd.f32 %v9890_v47, %v9889_v54  ;;  %v9893_v47 = vld [vmem:[#allocation86_spill] sm:$0xff] }
 0x4e2   : > { %v5634_v33 = vadd.f32 %v5549_v23, %v4948_v39  ;;  %v6004_v48 = vpop.f32.mrf.mxu0  ;;  %v6237_v0 = vpop.f32.mrf.mxu1  ;;  %v5039_v39 = vld [vmem:[%s7296_s29 + $0x115] sm:$0xff] }
 0x4e3   : > { %v6238_v30 = vadd.f32 %v6237_v0, %v6004_v48  ;;  %v4950_v23 = vadd.f32 %v4869_v61, %v8853_v41  ;;  %v5835_v48 = vmax.f32 %v5725_v63, 0.0  ;;  %v5797_v0 = vmin.f32 %v5725_v63, 0.0  ;;  %v5040_v41 = vld [vmem:[%s7296_s29 + $0x11d] sm:$0xff]  ;;  %v5727_v63 = vld [vmem:[%s7296_s29 + $0x126] sm:$0xff] }
 0x4e4   : > { %v6320_v18 = vadd.f32 %v6235_v56, %v5634_v33  ;;  %7102 = vmatmul.msk.f32.gmra.mxu2 %vm354_vm0, %v5147_v45  ;;  %7138 = vmatmul.msk.f32.gmra.mxu3 %vm354_vm0, %v5109_v42  ;;  %v5111_v33 = vmin.f32 %v5039_v39, 0.0  ;;  %v9894_v61 = vld [vmem:[#allocation87_spill] sm:$0xff] }
 0x4e5   : > { %7176 = vmatmul.msk.f32.gmra.mxu0 %vm354_vm0, %v5833_v31  ;;  %7212 = vmatmul.msk.f32.gmra.mxu1 %vm354_vm0, %v5795_v28  ;;  %v5149_v28 = vmax.f32 %v5039_v39, 0.0 }
 0x4e6   : > { %v6432_v14 = vadd.f32 %v9193_v55, %v6320_v18  ;;  %v9891_v18 = vld [vmem:[#allocation84_spill] sm:$0xff] }
 0x4e7   : > { %v5318_v1 = vpop.f32.mrf.mxu2  ;;  %v5551_v40 = vpop.f32.mrf.mxu3 }
 0x4e8   : > { %6468 = vst [vmem:[%s9202_s7 + $0x58] sm:$0xff] %v6432_v14  ;;  %v5552_v34 = vadd.f32 %v5551_v40, %v5318_v1  ;;  %v4872_v14 = vadd.f32 %v9892_v25, %v9891_v18  ;;  %v9895_v18 = vld [vmem:[#allocation88_spill] sm:$0xff] }
 0x4e9   : > { %v4878_v25 = vadd.f32 %v9895_v18, %v8883_v32 }
 0x4ea   : > { %v5635_v35 = vadd.f32 %v5552_v34, %v4949_v57  ;;  %v6007_v7 = vpop.f32.mrf.mxu0  ;;  %v6240_v53 = vpop.f32.mrf.mxu1  ;;  %v5726_v57 = vld [vmem:[%s7296_s29 + $0x11e] sm:$0xff]  ;;  %v4951_v1 = vadd.f32 %v4872_v14, %v8867_v4 }
 0x4eb   : > { %v6241_v31 = vadd.f32 %v6240_v53, %v6007_v7  ;;  %v5041_v4 = vld [vmem:[%s7296_s29 + $0x125] sm:$0xff] }
 0x4ec   : > { %v6321_v52 = vadd.f32 %v6238_v30, %v5635_v35  ;;  %7103 = vmatmul.msk.f32.gmra.mxu2 %vm354_vm0, %v5148_v10  ;;  %7139 = vmatmul.msk.f32.gmra.mxu3 %vm354_vm0, %v5110_v13  ;;  %v5150_v13 = vmax.f32 %v5040_v41, 0.0  ;;  %v5798_v35 = vmin.f32 %v5726_v57, 0.0 }
 0x4ed   : > { %7177 = vmatmul.msk.f32.gmra.mxu0 %vm354_vm0, %v5834_v44  ;;  %7213 = vmatmul.msk.f32.gmra.mxu1 %vm354_vm0, %v5796_v8  ;;  %v5112_v44 = vmin.f32 %v5040_v41, 0.0  ;;  %v5836_v8 = vmax.f32 %v5726_v57, 0.0  ;;  %v5728_v41 = vld [vmem:[%s7296_s29 + $0x12e] sm:$0xff] }
 0x4ee   : > { %v6433_v16 = vadd.f32 %v9193_v55, %v6321_v52  ;;  %v4875_v52 = vadd.f32 %v9894_v61, %v9893_v47  ;;  %v5729_v61 = vld [vmem:[%s7296_s29 + $0x136] sm:$0xff] }
 0x4ef   : > { %v5321_v56 = vpop.f32.mrf.mxu2  ;;  %v5554_v45 = vpop.f32.mrf.mxu3 }
 0x4f0   : > { %6469 = vst [vmem:[%s9202_s7 + $0x60] sm:$0xff] %v6433_v16  ;;  %v5555_v42 = vadd.f32 %v5554_v45, %v5321_v56 }
 0x4f2   : > { %v5636_v17 = vadd.f32 %v5555_v42, %v4950_v23  ;;  %v6010_v49 = vpop.f32.mrf.mxu0  ;;  %v6243_v2 = vpop.f32.mrf.mxu1  ;;  %v4952_v23 = vadd.f32 %v4875_v52, %v8881_v12  ;;  %v5042_v12 = vld [vmem:[%s7296_s29 + $0x12d] sm:$0xff]  ;;  %v9897_v52 = vld [vmem:[#allocation90_spill] sm:$0xff] }
 0x4f3   : > { %v6244_v10 = vadd.f32 %v6243_v2, %v6010_v49 }
 0x4f4   : > { %v6322_v19 = vadd.f32 %v6241_v31, %v5636_v17  ;;  %7104 = vmatmul.msk.f32.gmra.mxu2 %vm354_vm0, %v5149_v28  ;;  %7140 = vmatmul.msk.f32.gmra.mxu3 %vm354_vm0, %v5111_v33  ;;  %v5151_v28 = vmax.f32 %v5041_v4, 0.0  ;;  %v5113_v33 = vmin.f32 %v5041_v4, 0.0 }
 0x4f5   : > { %7178 = vmatmul.msk.f32.gmra.mxu0 %vm354_vm0, %v5835_v48  ;;  %7214 = vmatmul.msk.f32.gmra.mxu1 %vm354_vm0, %v5797_v0  ;;  %v5837_v48 = vmax.f32 %v5727_v63, 0.0  ;;  %v5799_v0 = vmin.f32 %v5727_v63, 0.0 }
 0x4f6   : > { %v6434_v21 = vadd.f32 %v9193_v55, %v6322_v19 }
 0x4f7   : > { %v5324_v40 = vpop.f32.mrf.mxu2  ;;  %v5557_v34 = vpop.f32.mrf.mxu3 }
 0x4f8   : > { %6470 = vst [vmem:[%s9202_s7 + $0x68] sm:$0xff] %v6434_v21  ;;  %v5558_v30 = vadd.f32 %v5557_v34, %v5324_v40  ;;  %v4953_v21 = vadd.f32 %v4878_v25, %v8895_v37  ;;  %v5152_v34 = vmax.f32 %v5042_v12, 0.0  ;;  %v5043_v37 = vld [vmem:[%s7296_s29 + $0x135] sm:$0xff]  ;;  %v5730_v25 = vld [vmem:[%s7296_s29 + $0x13e] sm:$0xff] }
 0x4fa   : > { %v5637_v7 = vadd.f32 %v5558_v30, %v4951_v1  ;;  %v6013_v53 = vpop.f32.mrf.mxu0  ;;  %v6246_v54 = vpop.f32.mrf.mxu1  ;;  %v5114_v30 = vmin.f32 %v5042_v12, 0.0 }
 0x4fb   : > { %v6247_v31 = vadd.f32 %v6246_v54, %v6013_v53 }
 0x4fc   : > { %v6323_v39 = vadd.f32 %v6244_v10, %v5637_v7  ;;  %7105 = vmatmul.msk.f32.gmra.mxu2 %vm354_vm0, %v5150_v13  ;;  %7141 = vmatmul.msk.f32.gmra.mxu3 %vm354_vm0, %v5112_v44  ;;  %v5838_v10 = vmax.f32 %v5728_v41, 0.0  ;;  %v5800_v13 = vmin.f32 %v5728_v41, 0.0  ;;  %v9896_v7 = vld [vmem:[#allocation89_spill] sm:$0xff] }
 0x4fd   : > { %7179 = vmatmul.msk.f32.gmra.mxu0 %vm354_vm0, %v5836_v8  ;;  %7215 = vmatmul.msk.f32.gmra.mxu1 %vm354_vm0, %v5798_v35  ;;  %v4881_v53 = vadd.f32 %v9896_v7, %v8897_v5 }
 0x4fe   : > { %v6435_v16 = vadd.f32 %v9193_v55, %v6323_v39 }
 0x4ff   : > { %v5327_v56 = vpop.f32.mrf.mxu2  ;;  %v5560_v45 = vpop.f32.mrf.mxu3  ;;  %v4954_v39 = vadd.f32 %v4881_v53, %v9897_v52 }
 0x500   : > { %6471 = vst [vmem:[%s9202_s7 + $0x70] sm:$0xff] %v6435_v16  ;;  %v5561_v42 = vadd.f32 %v5560_v45, %v5327_v56  ;;  %v5115_v56 = vmin.f32 %v5043_v37, 0.0  ;;  %v5839_v45 = vmax.f32 %v5729_v61, 0.0 }
 0x502   : > { %v5638_v17 = vadd.f32 %v5561_v42, %v4952_v23  ;;  %v6016_v49 = vpop.f32.mrf.mxu0  ;;  %v6249_v2 = vpop.f32.mrf.mxu1  ;;  %v5153_v23 = vmax.f32 %v5043_v37, 0.0  ;;  %v5801_v42 = vmin.f32 %v5729_v61, 0.0 }
 0x503   : > { %v6250_v40 = vadd.f32 %v6249_v2, %v6016_v49  ;;  %v5044_v2 = vld [vmem:[%s7296_s29 + $0x13d] sm:$0xff] }
 0x504   : > { %v6324_v14 = vadd.f32 %v6247_v31, %v5638_v17  ;;  %7106 = vmatmul.msk.f32.gmra.mxu2 %vm354_vm0, %v5151_v28  ;;  %7142 = vmatmul.msk.f32.gmra.mxu3 %vm354_vm0, %v5113_v33 }
 0x505   : > { %7180 = vmatmul.msk.f32.gmra.mxu0 %vm354_vm0, %v5837_v48  ;;  %7216 = vmatmul.msk.f32.gmra.mxu1 %vm354_vm0, %v5799_v0  ;;  %v9898_v48 = vld [vmem:[#allocation91_spill] sm:$0xff]  ;;  %v9899_v0 = vld [vmem:[#allocation92_spill] sm:$0xff] }
 0x506   : > { %v6436_v19 = vadd.f32 %v9193_v55, %v6324_v14  ;;  %v4884_v17 = vadd.f32 %v9899_v0, %v9898_v48  ;;  %v9900_v14 = vld [vmem:[#allocation93_spill] sm:$0xff] }
 0x507   : > { %v5330_v57 = vpop.f32.mrf.mxu2  ;;  %v5563_v1 = vpop.f32.mrf.mxu3 }
 0x508   : > { %6472 = vst [vmem:[%s9202_s7 + $0x78] sm:$0xff] %v6436_v19  ;;  %v5564_v32 = vadd.f32 %v5563_v1, %v5330_v57  ;;  %v4955_v12 = vadd.f32 %v4884_v17, %v9900_v14  ;;  %v5154_v1 = vmax.f32 %v5044_v2, 0.0  ;;  %v9904_v17 = vld [vmem:[#allocation3_spill] sm:$0xff] }
 0x50a   : > { %v5639_v44 = vadd.f32 %v5564_v32, %v4953_v21  ;;  %v6019_v8 = vpop.f32.mrf.mxu0  ;;  %v6252_v35 = vpop.f32.mrf.mxu1  ;;  %v5116_v32 = vmin.f32 %v5044_v2, 0.0 }
 0x50b   : > { %v6253_v63 = vadd.f32 %v6252_v35, %v6019_v8  ;;  %v9902_v8 = vld [vmem:[#allocation95_spill] sm:$0xff] }
 0x50c   : > { %v6325_v54 = vadd.f32 %v6250_v40, %v5639_v44  ;;  %7107 = vmatmul.msk.f32.gmra.mxu2 %vm354_vm0, %v5152_v34  ;;  %7143 = vmatmul.msk.f32.gmra.mxu3 %vm354_vm0, %v5114_v30  ;;  %v5840_v40 = vmax.f32 %v5730_v25, 0.0  ;;  %v5802_v34 = vmin.f32 %v5730_v25, 0.0  ;;  %v9901_v44 = vld [vmem:[#allocation94_spill] sm:$0xff] }
 0x50d   : > { %7181 = vmatmul.msk.f32.gmra.mxu0 %vm354_vm0, %v5838_v10  ;;  %7217 = vmatmul.msk.f32.gmra.mxu1 %vm354_vm0, %v5800_v13  ;;  %v4887_v35 = vadd.f32 %v9902_v8, %v9901_v44 }
 0x50e   : > { %v6437_v47 = vadd.f32 %v9193_v55, %v6325_v54 }
 0x50f   : > { %v5333_v4 = vpop.f32.mrf.mxu2  ;;  %v5566_v16 = vpop.f32.mrf.mxu3 }
 0x510   : > { %6473 = vst [vmem:[%s9202_s7 + $0x80] sm:$0xff] %v6437_v47  ;;  %v5567_v5 = vadd.f32 %v5566_v16, %v5333_v4  ;;  %v4956_v47 = vadd.f32 %v4887_v35, %v8938_v3 }
 0x512   : > { %v5640_v31 = vadd.f32 %v5567_v5, %v4954_v39  ;;  %v6022_v28 = vpop.f32.mrf.mxu0  ;;  %v6255_v33 = vpop.f32.mrf.mxu1  ;;  %v9903_v5 = vld [vmem:[#allocation96_spill] sm:$0xff] }
 0x513   : > { %v6256_v57 = vadd.f32 %v6255_v33, %v6022_v28 }
 0x514   : > { %v6326_v49 = vadd.f32 %v6253_v63, %v5640_v31  ;;  %7108 = vmatmul.msk.f32.gmra.mxu2 %vm354_vm0, %v5153_v23  ;;  %7144 = vmatmul.msk.f32.gmra.mxu3 %vm354_vm0, %v5115_v56  ;;  %v4890_v63 = vadd.f32 %v9903_v5, %v8940_v20 }
 0x515   : > { %7182 = vmatmul.msk.f32.gmra.mxu0 %vm354_vm0, %v5839_v45  ;;  %7218 = vmatmul.msk.f32.gmra.mxu1 %vm354_vm0, %v5801_v42 }
 0x516   : > { %v6438_v18 = vadd.f32 %v9193_v55, %v6326_v49  ;;  %v4957_v31 = vadd.f32 %v4890_v63, %v8953_v15  ;;  %v9905_v49 = vld [vmem:[#allocation28_spill] sm:$0xff] }
 0x517   : > { %v5336_v19 = vpop.f32.mrf.mxu2  ;;  %v5569_v41 = vpop.f32.mrf.mxu3  ;;  %v4893_v2 = vadd.f32 %v9905_v49, %v9904_v17 }
 0x518   : > { %6474 = vst [vmem:[%s9202_s7 + $0x88] sm:$0xff] %v6438_v18  ;;  %v5570_v21 = vadd.f32 %v5569_v41, %v5336_v19 }
 0x51a   : > { %v5641_v30 = vadd.f32 %v5570_v21, %v4955_v12  ;;  %v6025_v10 = vpop.f32.mrf.mxu0  ;;  %v6258_v13 = vpop.f32.mrf.mxu1  ;;  %v4958_v12 = vadd.f32 %v4893_v2, %v8968_v24 }
 0x51b   : > { %v6259_v52 = vadd.f32 %v6258_v13, %v6025_v10 }
 0x51c   : > { %v6327_v7 = vadd.f32 %v6256_v57, %v5641_v30  ;;  %7109 = vmatmul.msk.f32.gmra.mxu2 %vm354_vm0, %v5154_v1  ;;  %7145 = vmatmul.msk.f32.gmra.mxu3 %vm354_vm0, %v5116_v32  ;;  %v9906_v1 = vld [vmem:[#allocation26_spill] sm:$0xff]  ;;  %v9907_v32 = vld [vmem:[#allocation27_spill] sm:$0xff] }
 0x51d   : > { %7183 = vmatmul.msk.f32.gmra.mxu0 %vm354_vm0, %v5840_v40  ;;  %7219 = vmatmul.msk.f32.gmra.mxu1 %vm354_vm0, %v5802_v34  ;;  %v4896_v40 = vadd.f32 %v9907_v32, %v9906_v1 }
 0x51e   : > { %v6439_v53 = vadd.f32 %v9193_v55, %v6327_v7 }
 0x51f   : > { %v5339_v54 = vpop.f32.mrf.mxu2  ;;  %v5572_v37 = vpop.f32.mrf.mxu3  ;;  %v4959_v44 = vadd.f32 %v4896_v40, %v8983_v62 }
 0x520   : > { %6475 = vst [vmem:[%s9202_s7 + $0x90] sm:$0xff] %v6439_v53  ;;  %v5573_v61 = vadd.f32 %v5572_v37, %v5339_v54  ;;  %v9908_v54 = vld [vmem:[#allocation4_spill] sm:$0xff]  ;;  %v9909_v37 = vld [vmem:[#allocation5_spill] sm:$0xff] }
 0x522   : > { %v5642_v39 = vadd.f32 %v5573_v61, %v4956_v47  ;;  %v6028_v4 = vpop.f32.mrf.mxu0  ;;  %v6261_v16 = vpop.f32.mrf.mxu1  ;;  %v4899_v47 = vadd.f32 %v9909_v37, %v9908_v54 }
 0x523   : > { %v6262_v3 = vadd.f32 %v6261_v16, %v6028_v4 }
 0x524   : > { %v6328_v23 = vadd.f32 %v6259_v52, %v5642_v39  ;;  %v4960_v16 = vadd.f32 %v4899_v47, %v8998_v29  ;;  %v9916_v47 = vld [vmem:[#allocation32_spill] sm:$0xff] }
 0x526   : > { %v6440_v56 = vadd.f32 %v9193_v55, %v6328_v23 }
 0x527   : > { %v5342_v45 = vpop.f32.mrf.mxu2  ;;  %v5575_v42 = vpop.f32.mrf.mxu3 }
 0x528   : > { %6476 = vst [vmem:[%s9202_s7 + $0x98] sm:$0xff] %v6440_v56  ;;  %v5576_v28 = vadd.f32 %v5575_v42, %v5342_v45  ;;  %v9910_v45 = vld [vmem:[#allocation31_spill] sm:$0xff]  ;;  %v9911_v42 = vld [vmem:[#allocation29_spill] sm:$0xff] }
 0x52a   : > { %v5643_v33 = vadd.f32 %v5576_v28, %v4957_v31  ;;  %v6031_v48 = vpop.f32.mrf.mxu0  ;;  %v6264_v0 = vpop.f32.mrf.mxu1  ;;  %v4902_v31 = vadd.f32 %v9911_v42, %v9910_v45  ;;  %v9918_v42 = vld [vmem:[#allocation8_spill] sm:$0xff] }
 0x52b   : > { %v6265_v15 = vadd.f32 %v6264_v0, %v6031_v48 }
 0x52c   : > { %v6329_v18 = vadd.f32 %v6262_v3, %v5643_v33  ;;  %v4961_v0 = vadd.f32 %v4902_v31, %v9013_v26  ;;  %v9919_v31 = vld [vmem:[#allocation9_spill] sm:$0xff] }
 0x52e   : > { %v6441_v20 = vadd.f32 %v9193_v55, %v6329_v18 }
 0x52f   : > { %v5345_v25 = vpop.f32.mrf.mxu2  ;;  %v5578_v14 = vpop.f32.mrf.mxu3 }
 0x530   : > { %6477 = vst [vmem:[%s9202_s7 + $0xa0] sm:$0xff] %v6441_v20  ;;  %v5579_v19 = vadd.f32 %v5578_v14, %v5345_v25  ;;  %v9912_v20 = vld [vmem:[#allocation30_spill] sm:$0xff] }
 0x531   : > { %v9913_v25 = vld [vmem:[#allocation6_spill] sm:$0xff] }
 0x532   : > { %v5644_v41 = vadd.f32 %v5579_v19, %v4958_v12  ;;  %v6034_v21 = vpop.f32.mrf.mxu0  ;;  %v6267_v57 = vpop.f32.mrf.mxu1  ;;  %v4905_v14 = vadd.f32 %v9913_v25, %v9912_v20  ;;  %v9920_v20 = vld [vmem:[#allocation37_spill] sm:$0xff]  ;;  %v9921_v25 = vld [vmem:[#allocation35_spill] sm:$0xff] }
 0x533   : > { %v6268_v24 = vadd.f32 %v6267_v57, %v6034_v21 }
 0x534   : > { %v6330_v34 = vadd.f32 %v6265_v15, %v5644_v41  ;;  %v4962_v21 = vadd.f32 %v4905_v14, %v9028_v50  ;;  %v4917_v14 = vadd.f32 %v9921_v25, %v9920_v20 }
 0x536   : > { %v6442_v30 = vadd.f32 %v9193_v55, %v6330_v34  ;;  %v9914_v34 = vld [vmem:[#allocation7_spill] sm:$0xff] }
 0x537   : > { %v5348_v10 = vpop.f32.mrf.mxu2  ;;  %v5581_v13 = vpop.f32.mrf.mxu3 }
 0x538   : > { %6478 = vst [vmem:[%s9202_s7 + $0xa8] sm:$0xff] %v6442_v30  ;;  %v5582_v8 = vadd.f32 %v5581_v13, %v5348_v10  ;;  %v9915_v30 = vld [vmem:[#allocation34_spill] sm:$0xff] }
 0x539   : > { %v4908_v10 = vadd.f32 %v9915_v30, %v9914_v34  ;;  %v9923_v34 = vld [vmem:[#allocation10_spill] sm:$0xff] }
 0x53a   : > { %v5645_v35 = vadd.f32 %v5582_v8, %v4959_v44  ;;  %v6037_v7 = vpop.f32.mrf.mxu0  ;;  %v6270_v53 = vpop.f32.mrf.mxu1 }
 0x53b   : > { %v6271_v62 = vadd.f32 %v6270_v53, %v6037_v7 }
 0x53c   : > { %v6331_v61 = vadd.f32 %v6268_v24, %v5645_v35  ;;  %v4963_v35 = vadd.f32 %v4908_v10, %v9043_v36 }
 0x53e   : > { %v6443_v52 = vadd.f32 %v9193_v55, %v6331_v61  ;;  %v9917_v61 = vld [vmem:[#allocation33_spill] sm:$0xff] }
 0x53f   : > { %v5351_v39 = vpop.f32.mrf.mxu2  ;;  %v5584_v4 = vpop.f32.mrf.mxu3 }
 0x540   : > { %6479 = vst [vmem:[%s9202_s7 + $0xb0] sm:$0xff] %v6443_v52  ;;  %v5585_v5 = vadd.f32 %v5584_v4, %v5351_v39  ;;  %v4911_v52 = vadd.f32 %v9917_v61, %v9916_v47 }
 0x542   : > { %v5646_v63 = vadd.f32 %v5585_v5, %v4960_v16  ;;  %v6040_v23 = vpop.f32.mrf.mxu0  ;;  %v6273_v56 = vpop.f32.mrf.mxu1 }
 0x543   : > { %v6274_v29 = vadd.f32 %v6273_v56, %v6040_v23 }
 0x544   : > { %v6332_v28 = vadd.f32 %v6271_v62, %v5646_v63  ;;  %v4964_v62 = vadd.f32 %v4911_v52, %v9058_v43 }
 0x546   : > { %v6444_v3 = vadd.f32 %v9193_v55, %v6332_v28  ;;  %v4914_v28 = vadd.f32 %v9919_v31, %v9918_v42 }
 0x547   : > { %v5354_v33 = vpop.f32.mrf.mxu2  ;;  %v5587_v48 = vpop.f32.mrf.mxu3 }
 0x548   : > { %6480 = vst [vmem:[%s9202_s7 + $0xb8] sm:$0xff] %v6444_v3  ;;  %v5588_v17 = vadd.f32 %v5587_v48, %v5354_v33  ;;  %v9452_v33 = vld [vmem:[%s9499_s2] ss:$0 sm:$0xff] }
 0x54a   : > { %v5647_v49 = vadd.f32 %v5588_v17, %v4961_v0  ;;  %v6043_v2 = vpop.f32.mrf.mxu0  ;;  %v6276_v18 = vpop.f32.mrf.mxu1  ;;  %v4965_v0 = vadd.f32 %v4914_v28, %v9073_v38 }
 0x54b   : > { %v6277_v26 = vadd.f32 %v6276_v18, %v6043_v2 }
 0x54c   : > { %v6333_v12 = vadd.f32 %v6274_v29, %v5647_v49 }
 0x54e   : > { %v6445_v19 = vadd.f32 %v9193_v55, %v6333_v12 }
 0x54f   : > { %v5357_v15 = vpop.f32.mrf.mxu2  ;;  %v5590_v41 = vpop.f32.mrf.mxu3 }
 0x550   : > { %6481 = vst [vmem:[%s9202_s7 + $0xc0] sm:$0xff] %v6445_v19  ;;  %v5591_v57 = vadd.f32 %v5590_v41, %v5357_v15 }
 0x552   : > { %v5648_v1 = vadd.f32 %v5591_v57, %v4962_v21  ;;  %v6046_v32 = vpop.f32.mrf.mxu0  ;;  %v6279_v40 = vpop.f32.mrf.mxu1  ;;  %v4966_v21 = vadd.f32 %v4917_v14, %v9088_v60 }
 0x553   : > { %v6280_v50 = vadd.f32 %v6279_v40, %v6046_v32  ;;  %v9922_v40 = vld [vmem:[#allocation36_spill] sm:$0xff] }
 0x554   : > { %v6334_v13 = vadd.f32 %v6277_v26, %v5648_v1  ;;  %v4920_v30 = vadd.f32 %v9923_v34, %v9922_v40 }
 0x556   : > { %v6446_v44 = vadd.f32 %v9193_v55, %v6334_v13 }
 0x557   : > { %v5360_v8 = vpop.f32.mrf.mxu2  ;;  %v5593_v24 = vpop.f32.mrf.mxu3 }
 0x558   : > { %6482 = vst [vmem:[%s9202_s7 + $0xc8] sm:$0xff] %v6446_v44  ;;  %v5594_v7 = vadd.f32 %v5593_v24, %v5360_v8  ;;  %v4967_v24 = vadd.f32 %v4920_v30, %v9103_v9 }
 0x55a   : > { %v5649_v53 = vadd.f32 %v5594_v7, %v4963_v35  ;;  %v6049_v54 = vpop.f32.mrf.mxu0  ;;  %v6282_v37 = vpop.f32.mrf.mxu1 }
 0x55b   : > { %v6283_v36 = vadd.f32 %v6282_v37, %v6049_v54  ;;  %v9924_v54 = vld [vmem:[#allocation11_spill] sm:$0xff]  ;;  %v9925_v37 = vld [vmem:[#allocation40_spill] sm:$0xff] }
 0x55c   : > { %v6335_v39 = vadd.f32 %v6280_v50, %v5649_v53  ;;  %v4923_v47 = vadd.f32 %v9925_v37, %v9924_v54 }
 0x55e   : > { %v6447_v4 = vadd.f32 %v9193_v55, %v6335_v39 }
 0x55f   : > { %v5363_v16 = vpop.f32.mrf.mxu2  ;;  %v5596_v5 = vpop.f32.mrf.mxu3 }
 0x560   : > { %6483 = vst [vmem:[%s9202_s7 + $0xd0] sm:$0xff] %v6447_v4  ;;  %v5597_v63 = vadd.f32 %v5596_v5, %v5363_v16  ;;  %v4968_v16 = vadd.f32 %v4923_v47, %v9118_v6 }
 0x562   : > { %v5650_v23 = vadd.f32 %v5597_v63, %v4964_v62  ;;  %v6052_v56 = vpop.f32.mrf.mxu0  ;;  %v6285_v45 = vpop.f32.mrf.mxu1 }
 0x563   : > { %v6286_v29 = vadd.f32 %v6285_v45, %v6052_v56  ;;  %v9927_v56 = vld [vmem:[#allocation39_spill] sm:$0xff] }
 0x564   : > { %v6336_v3 = vadd.f32 %v6283_v36, %v5650_v23  ;;  %v9926_v23 = vld [vmem:[#allocation38_spill] sm:$0xff] }
 0x565   : > { %v4926_v45 = vadd.f32 %v9927_v56, %v9926_v23 }
 0x566   : > { %v6448_v55 = vadd.f32 %v9452_v33, %v6336_v3 }
 0x567   : > { %v5366_v48 = vpop.f32.mrf.mxu2  ;;  %v5599_v43 = vpop.f32.mrf.mxu3 }
 0x568   : > { %6484 = vst [vmem:[%s9202_s7 + $0xd8] sm:$0xff] %v6448_v55  ;;  %v5600_v17 = vadd.f32 %v5599_v43, %v5366_v48  ;;  %v4969_v55 = vadd.f32 %v4926_v45, %v9133_v22 }
 0x56a   : > { %v5651_v49 = vadd.f32 %v5600_v17, %v4965_v0  ;;  %v6055_v2 = vpop.f32.mrf.mxu0  ;;  %v6288_v18 = vpop.f32.mrf.mxu1 }
 0x56b   : > { %v6289_v38 = vadd.f32 %v6288_v18, %v6055_v2 }
 0x56c   : > { %v6337_v12 = vadd.f32 %v6286_v29, %v5651_v49  ;;  %v9928_v29 = vld [vmem:[#allocation12_spill] sm:$0xff]  ;;  %v9929_v49 = vld [vmem:[#allocation13_spill] sm:$0xff] }
 0x56d   : > { %v4929_v2 = vadd.f32 %v9929_v49, %v9928_v29 }
 0x56e   : > { %v6449_v19 = vadd.f32 %v9452_v33, %v6337_v12 }
 0x56f   : > { %v5369_v15 = vpop.f32.mrf.mxu2  ;;  %v5602_v41 = vpop.f32.mrf.mxu3  ;;  %v4970_v12 = vadd.f32 %v4929_v2, %v9148_v58 }
 0x570   : > { %6485 = vst [vmem:[%s9202_s7 + $0xe0] sm:$0xff] %v6449_v19  ;;  %v5603_v57 = vadd.f32 %v5602_v41, %v5369_v15 }
 0x572   : > { %v5652_v26 = vadd.f32 %v5603_v57, %v4966_v21  ;;  %v6058_v1 = vpop.f32.mrf.mxu0  ;;  %v6291_v32 = vpop.f32.mrf.mxu1  ;;  %v9930_v57 = vld [vmem:[#allocation43_spill] sm:$0xff] }
 0x573   : > { %v6292_v60 = vadd.f32 %v6291_v32, %v6058_v1 }
 0x574   : > { %v6338_v10 = vadd.f32 %v6289_v38, %v5652_v26  ;;  %v4932_v38 = vadd.f32 %v9930_v57, %v9150_v59 }
 0x576   : > { %v6450_v13 = vadd.f32 %v9452_v33, %v6338_v10  ;;  %v4971_v34 = vadd.f32 %v4932_v38, %v9163_v46 }
 0x577   : > { %v5372_v44 = vpop.f32.mrf.mxu2  ;;  %v5605_v8 = vpop.f32.mrf.mxu3 }
 0x578   : > { %6486 = vst [vmem:[%s9202_s7 + $0xe8] sm:$0xff] %v6450_v13  ;;  %v5606_v35 = vadd.f32 %v5605_v8, %v5372_v44  ;;  %v4935_v13 = vadd.f32 %v9167_v51, %v9165_v27 }
 0x57a   : > { %v5653_v7 = vadd.f32 %v5606_v35, %v4967_v24  ;;  %v6061_v50 = vpop.f32.mrf.mxu0  ;;  %v6294_v53 = vpop.f32.mrf.mxu1 }
 0x57b   : > { %v6295_v9 = vadd.f32 %v6294_v53, %v6061_v50 }
 0x57c   : > { %v6339_v61 = vadd.f32 %v6292_v60, %v5653_v7  ;;  %v4972_v7 = vadd.f32 %v4935_v13, %v9178_v11 }
 0x57e   : > { %v6451_v52 = vadd.f32 %v9452_v33, %v6339_v61 }
 0x57f   : > { %v5375_v39 = vpop.f32.mrf.mxu2  ;;  %v5608_v4 = vpop.f32.mrf.mxu3 }
 0x580   : > { %6487 = vst [vmem:[%s9202_s7 + $0xf0] sm:$0xff] %v6451_v52  ;;  %v5609_v5 = vadd.f32 %v5608_v4, %v5375_v39 }
 0x582   : > { %v5654_v62 = vadd.f32 %v5609_v5, %v4968_v16  ;;  %v6064_v63 = vpop.f32.mrf.mxu0  ;;  %v6297_v36 = vpop.f32.mrf.mxu1 }
 0x583   : > { %v6298_v6 = vadd.f32 %v6297_v36, %v6064_v63 }
 0x584   : > { %v6340_v42 = vadd.f32 %v6295_v9, %v5654_v62 }
 0x586   : > { %v6452_v31 = vadd.f32 %v9452_v33, %v6340_v42 }
 0x587   : > { %v5378_v28 = vpop.f32.mrf.mxu2  ;;  %v5611_v3 = vpop.f32.mrf.mxu3 }
 0x588   : > { %6488 = vst [vmem:[%s9202_s7 + $0xf8] sm:$0xff] %v6452_v31  ;;  %v5612_v48 = vadd.f32 %v5611_v3, %v5378_v28 }
 0x58a   : > { %v5655_v43 = vadd.f32 %v5612_v48, %v4969_v55  ;;  %v6067_v0 = vpop.f32.mrf.mxu0  ;;  %v6300_v17 = vpop.f32.mrf.mxu1 }
 0x58b   : > { %v6301_v22 = vadd.f32 %v6300_v17, %v6067_v0 }
 0x58c   : > { %v6341_v18 = vadd.f32 %v6298_v6, %v5655_v43 }
 0x58e   : > { %v6453_v20 = vadd.f32 %v9452_v33, %v6341_v18 }
 0x58f   : > { %v5381_v25 = vpop.f32.mrf.mxu2  ;;  %v5614_v14 = vpop.f32.mrf.mxu3 }
 0x590   : > { %6489 = vst [vmem:[%s9202_s7 + $0x100] sm:$0xff] %v6453_v20  ;;  %v5615_v19 = vadd.f32 %v5614_v14, %v5381_v25 }
 0x592   : > { %v5656_v15 = vadd.f32 %v5615_v19, %v4970_v12  ;;  %v6070_v41 = vpop.f32.mrf.mxu0  ;;  %v6303_v21 = vpop.f32.mrf.mxu1 }
 0x593   : > { %v6304_v58 = vadd.f32 %v6303_v21, %v6070_v41 }
 0x594   : > { %v6342_v26 = vadd.f32 %v6301_v22, %v5656_v15 }
 0x596   : > { %v6454_v1 = vadd.f32 %v9452_v33, %v6342_v26 }
 0x597   : > { %v5384_v32 = vpop.f32.mrf.mxu2  ;;  %v5617_v40 = vpop.f32.mrf.mxu3 }
 0x598   : > { %6490 = vst [vmem:[%s9202_s7 + $0x108] sm:$0xff] %v6454_v1  ;;  %v5618_v30 = vadd.f32 %v5617_v40, %v5384_v32 }
 0x59a   : > { %v5657_v10 = vadd.f32 %v5618_v30, %v4971_v34  ;;  %v6073_v8 = vpop.f32.mrf.mxu0  ;;  %v6306_v24 = vpop.f32.mrf.mxu1 }
 0x59b   : > { %v6307_v46 = vadd.f32 %v6306_v24, %v6073_v8 }
 0x59c   : > { %v6343_v44 = vadd.f32 %v6304_v58, %v5657_v10 }
 0x59e   : > { %v6455_v59 = vadd.f32 %v9452_v33, %v6343_v44 }
 0x59f   : > { %v5387_v35 = vpop.f32.mrf.mxu2  ;;  %v5620_v60 = vpop.f32.mrf.mxu3 }
 0x5a0   : > { %6491 = vst [vmem:[%s9202_s7 + $0x110] sm:$0xff] %v6455_v59  ;;  %v5621_v50 = vadd.f32 %v5620_v60, %v5387_v35 }
 0x5a2   : > { %v5658_v53 = vadd.f32 %v5621_v50, %v4972_v7 }
 0x5a4   : > { %v6344_v54 = vadd.f32 %v6307_v46, %v5658_v53 }
 0x5a6   : > { %v6456_v37 = vadd.f32 %v9452_v33, %v6344_v54 }
 0x5a8   : > { %6492 = vst [vmem:[%s9202_s7 + $0x118] sm:$0xff] %v6456_v37 }
 0x5a9 PF: > { %s13_s12 = sadd.s32 1, %s7242_s12  }
 0x5aa   : > { %p10_p4 = scmp.ge.s32.totalorder %s13_s12, 4  }
 0x5ac   :  { %12 = sbr.rel (!%p10_p4) target bundleno = 1 (0x1), region = 79 }

</bundles_post_ra>
